<compile_context>
chip_gen: v6e
topology: v6e:2x2x1
jax: 0.10.0
libtpu: 0.0.40
codegen_flags: <defaults>
</compile_context>

<pallas_src>
import functools

import jax
import jax.numpy as jnp
import numpy as np
from jax.experimental import pallas as pl
from jax.experimental.pallas import tpu as pltpu


# ------------------------- Pallas kernels -------------------------

def _conv_pool_kernel(p00_ref, p01_ref, p10_ref, p11_ref, w_ref, o_ref):
    """Fused conv(as im2col matmul) + ReLU + 2x2 max-pool.

    Each p*_ref holds the im2col patch rows for one tap (dy, dx) of the 2x2
    pooling window; the four conv results live only in VMEM/vregs and just the
    pooled, ReLU'd block is stored.  relu(max(.)) == max(relu(.)) (monotone).
    """
    w = w_ref[...]
    a = jnp.dot(p00_ref[...], w, preferred_element_type=jnp.float32)
    b = jnp.dot(p01_ref[...], w, preferred_element_type=jnp.float32)
    c = jnp.dot(p10_ref[...], w, preferred_element_type=jnp.float32)
    d = jnp.dot(p11_ref[...], w, preferred_element_type=jnp.float32)
    m = jnp.maximum(jnp.maximum(a, b), jnp.maximum(c, d))
    o_ref[...] = jnp.maximum(m, 0.0)


def _fc_chain_kernel(x_ref, w1_ref, w2_ref, w3_ref, b3_ref, o_ref):
    """fc1+ReLU -> fc2+ReLU -> fc3+bias fused; intermediates never hit HBM."""
    h = jnp.dot(x_ref[...], w1_ref[...], preferred_element_type=jnp.float32)
    h = jnp.maximum(h, 0.0)
    h = jnp.dot(h, w2_ref[...], preferred_element_type=jnp.float32)
    h = jnp.maximum(h, 0.0)
    o_ref[...] = (jnp.dot(h, w3_ref[...], preferred_element_type=jnp.float32)
                  + b3_ref[...])          # b3 is [1, N3], broadcasts over rows


# ------------------------- Pallas wrappers -------------------------

def _block_m(M, target=512):
    """Largest multiple-of-8 divisor of M that is <= target (else M itself)."""
    if M <= target:
        return M
    for bm in range(target - target % 8, 7, -8):
        if M % bm == 0:
            return bm
    return M


def conv_relu_pool_pallas(tap_patches, w_mat):
    """Fused conv+ReLU+pool.  tap_patches: 4 x [M, K]; w_mat: [K, Cout]."""
    M, K = tap_patches[0].shape
    K2, Cout = w_mat.shape
    assert K == K2
    bm = _block_m(M)
    grid = (M // bm,)
    p_spec = pl.BlockSpec((bm, K), lambda i: (i, 0))
    w_spec = pl.BlockSpec((K, Cout), lambda i: (0, 0))
    return pl.pallas_call(
        _conv_pool_kernel,
        out_shape=jax.ShapeDtypeStruct((M, Cout), jnp.float32),
        grid=grid,
        in_specs=[p_spec, p_spec, p_spec, p_spec, w_spec],
        out_specs=pl.BlockSpec((bm, Cout), lambda i: (i, 0)),
        compiler_params=pltpu.CompilerParams(
            dimension_semantics=("parallel",)),
    )(*tap_patches, w_mat)


def fc_chain_pallas(x, w1, w2, w3, b3):
    """Fused fc1/fc2/fc3.  x:[M,400] w1:[400,120] w2:[120,84] w3:[84,10] b3:[1,10]."""
    M, K1 = x.shape
    N1, N2, N3 = w1.shape[1], w2.shape[1], w3.shape[1]
    bm = _block_m(M)
    grid = (M // bm,)
    return pl.pallas_call(
        _fc_chain_kernel,
        out_shape=jax.ShapeDtypeStruct((M, N3), jnp.float32),
        grid=grid,
        in_specs=[pl.BlockSpec((bm, K1), lambda i: (i, 0)),
                  pl.BlockSpec((K1, N1), lambda i: (0, 0)),
                  pl.BlockSpec((N1, N2), lambda i: (0, 0)),
                  pl.BlockSpec((N2, N3), lambda i: (0, 0)),
                  pl.BlockSpec((1, N3), lambda i: (0, 0))],
        out_specs=pl.BlockSpec((bm, N3), lambda i: (i, 0)),
        compiler_params=pltpu.CompilerParams(
            dimension_semantics=("parallel",)),
    )(x, w1, w2, w3, b3)


# ------------------------- XLA glue (pure data movement) -------------------------

def _pool_tap_patches(x_nhwc, k, Hp, Wp):
    """im2col patches grouped by 2x2 pooling tap.

    Returns 4 matrices (one per (dy, dx) in the pool window), each
    [N*Hp*Wp, k*k*C]; rows ordered (n, ph, pw), features ordered (i, j, cin).
    """
    N, H, W, C = x_nhwc.shape
    taps = []
    for dy in (0, 1):
        for dx in (0, 1):
            cols = []
            for i in range(k):
                for j in range(k):
                    cols.append(x_nhwc[:, dy + i: dy + i + 2 * Hp - 1: 2,
                                       dx + j: dx + j + 2 * Wp - 1: 2, :])
            taps.append(jnp.concatenate(cols, axis=-1)
                        .reshape(N * Hp * Wp, k * k * C))
    return taps


# ------------------------- model -------------------------

def init_params(key):
    """Deterministic init matching the nn.Module's parameter shapes (torch layout)."""
    ks = jax.random.split(key, 6)

    def u(k, shape, fan_in):
        bound = 1.0 / np.sqrt(fan_in)
        return jax.random.uniform(k, shape, jnp.float32, -bound, bound)

    return {
        "conv1_w": u(ks[0], (6, 3, 5, 5), 3 * 5 * 5),      # Conv2d(3, 6, 5, bias=False)
        "conv2_w": u(ks[1], (16, 6, 5, 5), 6 * 5 * 5),     # Conv2d(6, 16, 5, bias=False)
        "fc1_w": u(ks[2], (120, 16 * 5 * 5), 16 * 5 * 5),  # Linear(400, 120, bias=False)
        "fc2_w": u(ks[3], (84, 120), 120),                 # Linear(120, 84, bias=False)
        "fc3_w": u(ks[4], (10, 84), 84),                   # Linear(84, 10, bias=True)
        "fc3_b": u(ks[5], (10,), 84),
    }


def prepare_params(params):
    """One-time layout prep so the forward pass contains no weight transposes."""
    def conv_mat(w_oihw):                       # [O,I,kh,kw] -> [(i,j,cin), O]
        O, I, kh, kw = w_oihw.shape
        return jnp.transpose(w_oihw, (2, 3, 1, 0)).reshape(kh * kw * I, O)

    # fc1 input features: permute torch's (c, h, w) flatten order to our NHWC
    # (h, w, c) flatten order, so no activation transpose is needed at runtime.
    w1 = params["fc1_w"].reshape(120, 16, 5, 5)                 # [O, C, H, W]
    w1 = jnp.transpose(w1, (2, 3, 1, 0)).reshape(400, 120)      # [(h,w,c), O]

    return {
        "conv1_w": conv_mat(params["conv1_w"]),   # [75, 6]
        "conv2_w": conv_mat(params["conv2_w"]),   # [150, 16]
        "fc1_w": w1,                              # [400, 120]
        "fc2_w": params["fc2_w"].T,               # [120, 84]
        "fc3_w": params["fc3_w"].T,               # [84, 10]
        "fc3_b": params["fc3_b"][None, :],        # [1, 10]
    }


def net_with_bias_forward(prepared, x_nchw):
    N = x_nchw.shape[0]
    x = jnp.transpose(x_nchw, (0, 2, 3, 1))                       # NCHW -> NHWC
    # conv1 + ReLU + pool  -> [N, 14, 14, 6]
    taps1 = _pool_tap_patches(x, 5, 14, 14)
    h1 = conv_relu_pool_pallas(taps1, prepared["conv1_w"]).reshape(N, 14, 14, 6)
    # conv2 + ReLU + pool  -> [N, 5*5*16] in (h, w, c) feature order
    taps2 = _pool_tap_patches(h1, 5, 5, 5)
    h2 = conv_relu_pool_pallas(taps2, prepared["conv2_w"]).reshape(N, 16 * 5 * 5)
    # fused fc1/fc2/fc3 (fc1 weight pre-permuted to match the (h,w,c) flatten)
    return fc_chain_pallas(h2, prepared["fc1_w"], prepared["fc2_w"],
                           prepared["fc3_w"], prepared["fc3_b"])


# pure-JAX reference for a correctness sanity check (no torch)
def reference_forward(params, x_nchw):
    hp = jax.lax.Precision.HIGHEST

    def conv(x, w):
        return jax.lax.conv_general_dilated(
            x, w, (1, 1), "VALID",
            dimension_numbers=("NCHW", "OIHW", "NCHW"), precision=hp)

    def pool(x):
        n, c, h, w = x.shape
        return x.reshape(n, c, h // 2, 2, w // 2, 2).max(axis=(3, 5))

    x = pool(jax.nn.relu(conv(x_nchw, params["conv1_w"])))
    x = pool(jax.nn.relu(conv(x, params["conv2_w"])))
    x = x.reshape(-1, 16 * 5 * 5)
    x = jax.nn.relu(jnp.dot(x, params["fc1_w"].T, precision=hp))
    x = jax.nn.relu(jnp.dot(x, params["fc2_w"].T, precision=hp))
    return jnp.dot(x, params["fc3_w"].T, precision=hp) + params["fc3_b"]


if __name__ == "__main__":
    key = jax.random.PRNGKey(0)
    pkey, xkey = jax.random.split(key)
    params = init_params(pkey)
    prepared = prepare_params(params)
    x = jax.random.normal(xkey, (2, 3, 32, 32), jnp.float32)  # NCHW, like PyTorch

    fwd = jax.jit(net_with_bias_forward)
    out = jax.block_until_ready(fwd(prepared, x))
    assert out.shape == (2, 10), out.shape

    ref = jax.block_until_ready(reference_forward(params, x))
    np.testing.assert_allclose(np.asarray(out), np.asarray(ref),
                               rtol=2e-2, atol=2e-2)
    print("KERNEL_OK")
</pallas_src>

<mosaic_0001>
module attributes {stable_mosaic.version = 11 : i64} {
  func.func @_conv_pool_kernel(%arg0: i32, %arg1: memref<392x75xf32, #tpu.memory_space<vmem>>, %arg2: memref<392x75xf32, #tpu.memory_space<vmem>>, %arg3: memref<392x75xf32, #tpu.memory_space<vmem>>, %arg4: memref<392x75xf32, #tpu.memory_space<vmem>>, %arg5: memref<75x6xf32, #tpu.memory_space<vmem>>, %arg6: memref<392x6xf32, #tpu.memory_space<vmem>>) attributes {dimension_semantics = [#tpu.dimension_semantics<parallel>], iteration_bounds = array<i64: 1>, scalar_prefetch = 0 : i64, scratch_operands = 0 : i64, tpu.core_type = #tpu.core_type<tc>, window_params = [{transform_indices = @transform_0, window_bounds = array<i64: 392, 75>}, {transform_indices = @transform_1, window_bounds = array<i64: 392, 75>}, {transform_indices = @transform_2, window_bounds = array<i64: 392, 75>}, {transform_indices = @transform_3, window_bounds = array<i64: 392, 75>}, {pipeline_mode = #tpu.pipeline_mode<synchronous>, transform_indices = @transform_4, window_bounds = array<i64: 75, 6>}, {transform_indices = @transform_5, window_bounds = array<i64: 392, 6>}]} {
    %c0 = arith.constant 0 : index
    %c0_0 = arith.constant 0 : index
    %0 = vector.load %arg5[%c0, %c0_0] : memref<75x6xf32, #tpu.memory_space<vmem>>, vector<75x6xf32>
    %c0_1 = arith.constant 0 : index
    %c0_2 = arith.constant 0 : index
    %1 = vector.load %arg1[%c0_1, %c0_2] : memref<392x75xf32, #tpu.memory_space<vmem>>, vector<392x75xf32>
    %cst = arith.constant dense<0.000000e+00> : vector<392x6xf32>
    %2 = tpu.matmul %1, %0, %cst {dimension_numbers = #tpu.dot_dimension_numbers<[1], [0], [0], [1], [0, 0, 1, 1], [], []>} : vector<392x75xf32>, vector<75x6xf32>, vector<392x6xf32> -> vector<392x6xf32>
    %c0_3 = arith.constant 0 : index
    %c0_4 = arith.constant 0 : index
    %3 = vector.load %arg2[%c0_3, %c0_4] : memref<392x75xf32, #tpu.memory_space<vmem>>, vector<392x75xf32>
    %cst_5 = arith.constant dense<0.000000e+00> : vector<392x6xf32>
    %4 = tpu.matmul %3, %0, %cst_5 {dimension_numbers = #tpu.dot_dimension_numbers<[1], [0], [0], [1], [0, 0, 1, 1], [], []>} : vector<392x75xf32>, vector<75x6xf32>, vector<392x6xf32> -> vector<392x6xf32>
    %c0_6 = arith.constant 0 : index
    %c0_7 = arith.constant 0 : index
    %5 = vector.load %arg3[%c0_6, %c0_7] : memref<392x75xf32, #tpu.memory_space<vmem>>, vector<392x75xf32>
    %cst_8 = arith.constant dense<0.000000e+00> : vector<392x6xf32>
    %6 = tpu.matmul %5, %0, %cst_8 {dimension_numbers = #tpu.dot_dimension_numbers<[1], [0], [0], [1], [0, 0, 1, 1], [], []>} : vector<392x75xf32>, vector<75x6xf32>, vector<392x6xf32> -> vector<392x6xf32>
    %c0_9 = arith.constant 0 : index
    %c0_10 = arith.constant 0 : index
    %7 = vector.load %arg4[%c0_9, %c0_10] : memref<392x75xf32, #tpu.memory_space<vmem>>, vector<392x75xf32>
    %cst_11 = arith.constant dense<0.000000e+00> : vector<392x6xf32>
    %8 = tpu.matmul %7, %0, %cst_11 {dimension_numbers = #tpu.dot_dimension_numbers<[1], [0], [0], [1], [0, 0, 1, 1], [], []>} : vector<392x75xf32>, vector<75x6xf32>, vector<392x6xf32> -> vector<392x6xf32>
    %9 = arith.maximumf %2, %4 : vector<392x6xf32>
    %10 = arith.maximumf %6, %8 : vector<392x6xf32>
    %11 = arith.maximumf %9, %10 : vector<392x6xf32>
    %cst_12 = arith.constant 0.000000e+00 : f32
    %12 = vector.broadcast %cst_12 : f32 to vector<392x6xf32>
    %13 = arith.maximumf %11, %12 : vector<392x6xf32>
    %c0_13 = arith.constant 0 : index
    %c0_14 = arith.constant 0 : index
    %14 = vector.load %arg6[%c0_13, %c0_14] : memref<392x6xf32, #tpu.memory_space<vmem>>, vector<392x6xf32>
    tpu.vector_store %arg6[%c0_13, %c0_14], %13 {strides = array<i32>} : memref<392x6xf32, #tpu.memory_space<vmem>>, vector<392x6xf32>,
    return
  }
  func.func @transform_0(%arg0: i32) -> (i32, i32) {
    %c0_i32 = arith.constant 0 : i32
    %c0_i32_0 = arith.constant 0 : i32
    return %arg0, %c0_i32 : i32, i32
  }
  func.func @transform_1(%arg0: i32) -> (i32, i32) {
    %c0_i32 = arith.constant 0 : i32
    %c0_i32_0 = arith.constant 0 : i32
    return %arg0, %c0_i32 : i32, i32
  }
  func.func @transform_2(%arg0: i32) -> (i32, i32) {
    %c0_i32 = arith.constant 0 : i32
    %c0_i32_0 = arith.constant 0 : i32
    return %arg0, %c0_i32 : i32, i32
  }
  func.func @transform_3(%arg0: i32) -> (i32, i32) {
    %c0_i32 = arith.constant 0 : i32
    %c0_i32_0 = arith.constant 0 : i32
    return %arg0, %c0_i32 : i32, i32
  }
  func.func @transform_4(%arg0: i32) -> (i32, i32) {
    %c0_i32 = arith.constant 0 : i32
    %c0_i32_0 = arith.constant 0 : i32
    %c0_i32_1 = arith.constant 0 : i32
    return %c0_i32, %c0_i32_0 : i32, i32
  }
  func.func @transform_5(%arg0: i32) -> (i32, i32) {
    %c0_i32 = arith.constant 0 : i32
    %c0_i32_0 = arith.constant 0 : i32
    return %arg0, %c0_i32 : i32, i32
  }
}

module attributes {stable_mosaic.version = 11 : i64} {
  func.func @_conv_pool_kernel(%arg0: i32, %arg1: memref<50x150xf32, #tpu.memory_space<vmem>>, %arg2: memref<50x150xf32, #tpu.memory_space<vmem>>, %arg3: memref<50x150xf32, #tpu.memory_space<vmem>>, %arg4: memref<50x150xf32, #tpu.memory_space<vmem>>, %arg5: memref<150x16xf32, #tpu.memory_space<vmem>>, %arg6: memref<50x16xf32, #tpu.memory_space<vmem>>) attributes {dimension_semantics = [#tpu.dimension_semantics<parallel>], iteration_bounds = array<i64: 1>, scalar_prefetch = 0 : i64, scratch_operands = 0 : i64, tpu.core_type = #tpu.core_type<tc>, window_params = [{transform_indices = @transform_0, window_bounds = array<i64: 50, 150>}, {transform_indices = @transform_1, window_bounds = array<i64: 50, 150>}, {transform_indices = @transform_2, window_bounds = array<i64: 50, 150>}, {transform_indices = @transform_3, window_bounds = array<i64: 50, 150>}, {pipeline_mode = #tpu.pipeline_mode<synchronous>, transform_indices = @transform_4, window_bounds = array<i64: 150, 16>}, {transform_indices = @transform_5, window_bounds = array<i64: 50, 16>}]} {
    %c0 = arith.constant 0 : index
    %c0_0 = arith.constant 0 : index
    %0 = vector.load %arg5[%c0, %c0_0] : memref<150x16xf32, #tpu.memory_space<vmem>>, vector<150x16xf32>
    %c0_1 = arith.constant 0 : index
    %c0_2 = arith.constant 0 : index
    %1 = vector.load %arg1[%c0_1, %c0_2] : memref<50x150xf32, #tpu.memory_space<vmem>>, vector<50x150xf32>
    %cst = arith.constant dense<0.000000e+00> : vector<50x16xf32>
    %2 = tpu.matmul %1, %0, %cst {dimension_numbers = #tpu.dot_dimension_numbers<[1], [0], [0], [1], [0, 0, 1, 1], [], []>} : vector<50x150xf32>, vector<150x16xf32>, vector<50x16xf32> -> vector<50x16xf32>
    %c0_3 = arith.constant 0 : index
    %c0_4 = arith.constant 0 : index
    %3 = vector.load %arg2[%c0_3, %c0_4] : memref<50x150xf32, #tpu.memory_space<vmem>>, vector<50x150xf32>
    %cst_5 = arith.constant dense<0.000000e+00> : vector<50x16xf32>
    %4 = tpu.matmul %3, %0, %cst_5 {dimension_numbers = #tpu.dot_dimension_numbers<[1], [0], [0], [1], [0, 0, 1, 1], [], []>} : vector<50x150xf32>, vector<150x16xf32>, vector<50x16xf32> -> vector<50x16xf32>
    %c0_6 = arith.constant 0 : index
    %c0_7 = arith.constant 0 : index
    %5 = vector.load %arg3[%c0_6, %c0_7] : memref<50x150xf32, #tpu.memory_space<vmem>>, vector<50x150xf32>
    %cst_8 = arith.constant dense<0.000000e+00> : vector<50x16xf32>
    %6 = tpu.matmul %5, %0, %cst_8 {dimension_numbers = #tpu.dot_dimension_numbers<[1], [0], [0], [1], [0, 0, 1, 1], [], []>} : vector<50x150xf32>, vector<150x16xf32>, vector<50x16xf32> -> vector<50x16xf32>
    %c0_9 = arith.constant 0 : index
    %c0_10 = arith.constant 0 : index
    %7 = vector.load %arg4[%c0_9, %c0_10] : memref<50x150xf32, #tpu.memory_space<vmem>>, vector<50x150xf32>
    %cst_11 = arith.constant dense<0.000000e+00> : vector<50x16xf32>
    %8 = tpu.matmul %7, %0, %cst_11 {dimension_numbers = #tpu.dot_dimension_numbers<[1], [0], [0], [1], [0, 0, 1, 1], [], []>} : vector<50x150xf32>, vector<150x16xf32>, vector<50x16xf32> -> vector<50x16xf32>
    %9 = arith.maximumf %2, %4 : vector<50x16xf32>
    %10 = arith.maximumf %6, %8 : vector<50x16xf32>
    %11 = arith.maximumf %9, %10 : vector<50x16xf32>
    %cst_12 = arith.constant 0.000000e+00 : f32
    %12 = vector.broadcast %cst_12 : f32 to vector<50x16xf32>
    %13 = arith.maximumf %11, %12 : vector<50x16xf32>
    %c0_13 = arith.constant 0 : index
    %c0_14 = arith.constant 0 : index
    %14 = vector.load %arg6[%c0_13, %c0_14] : memref<50x16xf32, #tpu.memory_space<vmem>>, vector<50x16xf32>
    tpu.vector_store %arg6[%c0_13, %c0_14], %13 {strides = array<i32>} : memref<50x16xf32, #tpu.memory_space<vmem>>, vector<50x16xf32>,
    return
  }
  func.func @transform_0(%arg0: i32) -> (i32, i32) {
    %c0_i32 = arith.constant 0 : i32
    %c0_i32_0 = arith.constant 0 : i32
    return %arg0, %c0_i32 : i32, i32
  }
  func.func @transform_1(%arg0: i32) -> (i32, i32) {
    %c0_i32 = arith.constant 0 : i32
    %c0_i32_0 = arith.constant 0 : i32
    return %arg0, %c0_i32 : i32, i32
  }
  func.func @transform_2(%arg0: i32) -> (i32, i32) {
    %c0_i32 = arith.constant 0 : i32
    %c0_i32_0 = arith.constant 0 : i32
    return %arg0, %c0_i32 : i32, i32
  }
  func.func @transform_3(%arg0: i32) -> (i32, i32) {
    %c0_i32 = arith.constant 0 : i32
    %c0_i32_0 = arith.constant 0 : i32
    return %arg0, %c0_i32 : i32, i32
  }
  func.func @transform_4(%arg0: i32) -> (i32, i32) {
    %c0_i32 = arith.constant 0 : i32
    %c0_i32_0 = arith.constant 0 : i32
    %c0_i32_1 = arith.constant 0 : i32
    return %c0_i32, %c0_i32_0 : i32, i32
  }
  func.func @transform_5(%arg0: i32) -> (i32, i32) {
    %c0_i32 = arith.constant 0 : i32
    %c0_i32_0 = arith.constant 0 : i32
    return %arg0, %c0_i32 : i32, i32
  }
}

module attributes {stable_mosaic.version = 11 : i64} {
  func.func @_fc_chain_kernel(%arg0: i32, %arg1: memref<2x400xf32, #tpu.memory_space<vmem>>, %arg2: memref<400x120xf32, #tpu.memory_space<vmem>>, %arg3: memref<120x84xf32, #tpu.memory_space<vmem>>, %arg4: memref<84x10xf32, #tpu.memory_space<vmem>>, %arg5: memref<1x10xf32, #tpu.memory_space<vmem>>, %arg6: memref<2x10xf32, #tpu.memory_space<vmem>>) attributes {dimension_semantics = [#tpu.dimension_semantics<parallel>], iteration_bounds = array<i64: 1>, scalar_prefetch = 0 : i64, scratch_operands = 0 : i64, tpu.core_type = #tpu.core_type<tc>, window_params = [{transform_indices = @transform_0, window_bounds = array<i64: 2, 400>}, {pipeline_mode = #tpu.pipeline_mode<synchronous>, transform_indices = @transform_1, window_bounds = array<i64: 400, 120>}, {pipeline_mode = #tpu.pipeline_mode<synchronous>, transform_indices = @transform_2, window_bounds = array<i64: 120, 84>}, {pipeline_mode = #tpu.pipeline_mode<synchronous>, transform_indices = @transform_3, window_bounds = array<i64: 84, 10>}, {pipeline_mode = #tpu.pipeline_mode<synchronous>, transform_indices = @transform_4, window_bounds = array<i64: 1, 10>}, {transform_indices = @transform_5, window_bounds = array<i64: 2, 10>}]} {
    %c0 = arith.constant 0 : index
    %c0_0 = arith.constant 0 : index
    %0 = vector.load %arg1[%c0, %c0_0] : memref<2x400xf32, #tpu.memory_space<vmem>>, vector<2x400xf32>
    %c0_1 = arith.constant 0 : index
    %c0_2 = arith.constant 0 : index
    %1 = vector.load %arg2[%c0_1, %c0_2] : memref<400x120xf32, #tpu.memory_space<vmem>>, vector<400x120xf32>
    %cst = arith.constant dense<0.000000e+00> : vector<2x120xf32>
    %2 = tpu.matmul %0, %1, %cst {dimension_numbers = #tpu.dot_dimension_numbers<[1], [0], [0], [1], [0, 0, 1, 1], [], []>} : vector<2x400xf32>, vector<400x120xf32>, vector<2x120xf32> -> vector<2x120xf32>
    %cst_3 = arith.constant 0.000000e+00 : f32
    %3 = vector.broadcast %cst_3 : f32 to vector<2x120xf32>
    %4 = arith.maximumf %2, %3 : vector<2x120xf32>
    %c0_4 = arith.constant 0 : index
    %c0_5 = arith.constant 0 : index
    %5 = vector.load %arg3[%c0_4, %c0_5] : memref<120x84xf32, #tpu.memory_space<vmem>>, vector<120x84xf32>
    %cst_6 = arith.constant dense<0.000000e+00> : vector<2x84xf32>
    %6 = tpu.matmul %4, %5, %cst_6 {dimension_numbers = #tpu.dot_dimension_numbers<[1], [0], [0], [1], [0, 0, 1, 1], [], []>} : vector<2x120xf32>, vector<120x84xf32>, vector<2x84xf32> -> vector<2x84xf32>
    %cst_7 = arith.constant 0.000000e+00 : f32
    %7 = vector.broadcast %cst_7 : f32 to vector<2x84xf32>
    %8 = arith.maximumf %6, %7 : vector<2x84xf32>
    %c0_8 = arith.constant 0 : index
    %c0_9 = arith.constant 0 : index
    %9 = vector.load %arg4[%c0_8, %c0_9] : memref<84x10xf32, #tpu.memory_space<vmem>>, vector<84x10xf32>
    %cst_10 = arith.constant dense<0.000000e+00> : vector<2x10xf32>
    %10 = tpu.matmul %8, %9, %cst_10 {dimension_numbers = #tpu.dot_dimension_numbers<[1], [0], [0], [1], [0, 0, 1, 1], [], []>} : vector<2x84xf32>, vector<84x10xf32>, vector<2x10xf32> -> vector<2x10xf32>
    %c0_11 = arith.constant 0 : index
    %c0_12 = arith.constant 0 : index
    %11 = vector.load %arg5[%c0_11, %c0_12] : memref<1x10xf32, #tpu.memory_space<vmem>>, vector<1x10xf32>
    %12 = vector.broadcast %11 : vector<1x10xf32> to vector<2x10xf32>
    %13 = arith.addf %10, %12 : vector<2x10xf32>
    %c0_13 = arith.constant 0 : index
    %c0_14 = arith.constant 0 : index
    %14 = vector.load %arg6[%c0_13, %c0_14] : memref<2x10xf32, #tpu.memory_space<vmem>>, vector<2x10xf32>
    tpu.vector_store %arg6[%c0_13, %c0_14], %13 {strides = array<i32>} : memref<2x10xf32, #tpu.memory_space<vmem>>, vector<2x10xf32>,
    return
  }
  func.func @transform_0(%arg0: i32) -> (i32, i32) {
    %c0_i32 = arith.constant 0 : i32
    %c0_i32_0 = arith.constant 0 : i32
    return %arg0, %c0_i32 : i32, i32
  }
  func.func @transform_1(%arg0: i32) -> (i32, i32) {
    %c0_i32 = arith.constant 0 : i32
    %c0_i32_0 = arith.constant 0 : i32
    %c0_i32_1 = arith.constant 0 : i32
    return %c0_i32, %c0_i32_0 : i32, i32
  }
  func.func @transform_2(%arg0: i32) -> (i32, i32) {
    %c0_i32 = arith.constant 0 : i32
    %c0_i32_0 = arith.constant 0 : i32
    %c0_i32_1 = arith.constant 0 : i32
    return %c0_i32, %c0_i32_0 : i32, i32
  }
  func.func @transform_3(%arg0: i32) -> (i32, i32) {
    %c0_i32 = arith.constant 0 : i32
    %c0_i32_0 = arith.constant 0 : i32
    %c0_i32_1 = arith.constant 0 : i32
    return %c0_i32, %c0_i32_0 : i32, i32
  }
  func.func @transform_4(%arg0: i32) -> (i32, i32) {
    %c0_i32 = arith.constant 0 : i32
    %c0_i32_0 = arith.constant 0 : i32
    %c0_i32_1 = arith.constant 0 : i32
    return %c0_i32, %c0_i32_0 : i32, i32
  }
  func.func @transform_5(%arg0: i32) -> (i32, i32) {
    %c0_i32 = arith.constant 0 : i32
    %c0_i32_0 = arith.constant 0 : i32
    return %arg0, %c0_i32 : i32, i32
  }
}

</mosaic_0001>

<bundles_post_ra>
// kernel: net_with_bias_forward.3
= control target key start
LH: loop header
LB: loop body
LE: loop exit
PB: predicated region body
PF: predicated region fallthrough
CT: control target
= control target key end

     0   :  { %vm227_vm0 = vcmask 1042432   ;;  %v3415_v0 = vmov 0.0   ;;  %vm79_vm1 = vcmask 613376   ;;  %vm3416_vm2 = vmmov 0   ;;  %s5394_s4 = inlined_call_operand.vmem [shape: f32[75,6], index: 4, kind: input, shape index: {}]   ;;  %s5395_s0 = inlined_call_operand.vmem [shape: f32[392,75], index: 0, kind: input, shape index: {}]   ;;  %s5396_s1 = inlined_call_operand.vmem [shape: f32[392,75], index: 1, kind: input, shape index: {}]   ;;  %s5397_s2 = inlined_call_operand.vmem [shape: f32[392,75], index: 2, kind: input, shape index: {}]   ;;  %s5398_s3 = inlined_call_operand.vmem [shape: f32[392,75], index: 3, kind: input, shape index: {}]   ;;  %s5399_s5 = inlined_call_operand.vmem [shape: f32[392,6], index: 5, kind: output, shape index: {}]  }
   0x1   :  { %2745 = vmatprep.subr.mxu0 %v3415_v0  ;;  %2912 = vmatprep.subr.mxu1 %v3415_v0  ;;  %v3452_v1 = vld [vmem:[%s5394_s4 + $0x48] sm:$0x7]  ;;  %v3457_v2 = vld [vmem:[%s5394_s4 + $0x40] sm:$0xff]  ;;  %v3468_v3 = vld [vmem:[%s5394_s4 + $0x38] sm:$0xff]  ;;  %vm2255_vm3 = vcmask 48128  }
   0x2   :  { %2746 = vmatpush3.msk.msra.mxu0 %vm227_vm0, %v3452_v1  ;;  %2913 = vmatpush3.msk.msra.mxu1 %vm227_vm0, %v3452_v1  ;;  %v3477_v4 = vld [vmem:[%s5394_s4 + $0x30] sm:$0xff]  ;;  %v3486_v5 = vld [vmem:[%s5394_s4 + $0x28] sm:$0xff]  ;;  %v3495_v6 = vld [vmem:[%s5394_s4 + $0x20] sm:$0xff] }
   0x3   :  { %2747 = vmatprep.subr.mxu0 %v3415_v0  ;;  %2914 = vmatprep.subr.mxu1 %v3415_v0  ;;  %v3504_v7 = vld [vmem:[%s5394_s4 + $0x18] sm:$0xff]  ;;  %v3513_v8 = vld [vmem:[%s5394_s4 + $0x10] sm:$0xff]  ;;  %v3522_v9 = vld [vmem:[%s5394_s4 + $0x8] sm:$0xff] }
   0x4   :  { %2748 = vmatpush3.msra.mxu0 %v3457_v2  ;;  %2915 = vmatpush3.msra.mxu1 %v3457_v2  ;;  %v3531_v10 = vld [vmem:[%s5394_s4] sm:$0xff]  ;;  %v31_v13 = vld [vmem:[%s5395_s0 + $0x8] sm:$0xff]  ;;  %v32_v15 = vld [vmem:[%s5395_s0 + $0x10] sm:$0xff] }
   0x5   :  { %2749 = vmatprep.subr.mxu0 %v3415_v0  ;;  %2916 = vmatprep.subr.mxu1 %v3415_v0  ;;  %v30_v11 = vld [vmem:[%s5395_s0] sm:$0xff]  ;;  %v542_v14 = vld [vmem:[%s5396_s1 + $0x8] sm:$0xff]  ;;  %v543_v16 = vld [vmem:[%s5396_s1 + $0x10] sm:$0xff] }
   0x6   :  { %2750 = vmatpush3.msra.mxu0 %v3468_v3  ;;  %2917 = vmatpush3.msra.mxu1 %v3468_v3  ;;  %v541_v12 = vld [vmem:[%s5396_s1] sm:$0xff]  ;;  %v33_v17 = vld [vmem:[%s5395_s0 + $0x18] sm:$0xff]  ;;  %v35_v21 = vld [vmem:[%s5395_s0 + $0x28] sm:$0xff] }
   0x7   :  { %2751 = vmatprep.subr.mxu0 %v3415_v0  ;;  %2918 = vmatprep.subr.mxu1 %v3415_v0  ;;  %v544_v18 = vld [vmem:[%s5396_s1 + $0x18] sm:$0xff]  ;;  %v34_v19 = vld [vmem:[%s5395_s0 + $0x20] sm:$0xff]  ;;  %v546_v22 = vld [vmem:[%s5396_s1 + $0x28] sm:$0xff] }
   0x8   :  { %2752 = vmatpush3.msra.mxu0 %v3477_v4  ;;  %2919 = vmatpush3.msra.mxu1 %v3477_v4  ;;  %v545_v20 = vld [vmem:[%s5396_s1 + $0x20] sm:$0xff]  ;;  %v36_v23 = vld [vmem:[%s5395_s0 + $0x30] sm:$0xff]  ;;  %v37_v25 = vld [vmem:[%s5395_s0 + $0x38] sm:$0xff] }
   0x9   :  { %2753 = vmatprep.subr.mxu0 %v3415_v0  ;;  %2920 = vmatprep.subr.mxu1 %v3415_v0  ;;  %v547_v24 = vld [vmem:[%s5396_s1 + $0x30] sm:$0xff]  ;;  %v548_v26 = vld [vmem:[%s5396_s1 + $0x38] sm:$0xff]  ;;  %v38_v27 = vld [vmem:[%s5395_s0 + $0x40] sm:$0xff] }
   0xa   :  { %2754 = vmatpush3.msra.mxu0 %v3486_v5  ;;  %2921 = vmatpush3.msra.mxu1 %v3486_v5  ;;  %v549_v28 = vld [vmem:[%s5396_s1 + $0x40] sm:$0xff]  ;;  %v39_v29 = vld [vmem:[%s5395_s0 + $0x48] sm:$0xff]  ;;  %v40_v31 = vld [vmem:[%s5395_s0 + $0x50] sm:$0xff] }
   0xb   :  { %2755 = vmatprep.subr.mxu0 %v3415_v0  ;;  %2922 = vmatprep.subr.mxu1 %v3415_v0  ;;  %v550_v30 = vld [vmem:[%s5396_s1 + $0x48] sm:$0xff]  ;;  %v551_v32 = vld [vmem:[%s5396_s1 + $0x50] sm:$0xff]  ;;  %v41_v33 = vld [vmem:[%s5395_s0 + $0x58] sm:$0xff] }
   0xc   :  { %2756 = vmatpush3.msra.mxu0 %v3495_v6  ;;  %2923 = vmatpush3.msra.mxu1 %v3495_v6  ;;  %v552_v34 = vld [vmem:[%s5396_s1 + $0x58] sm:$0xff]  ;;  %v42_v35 = vld [vmem:[%s5395_s0 + $0x60] sm:$0xff]  ;;  %v43_v37 = vld [vmem:[%s5395_s0 + $0x68] sm:$0xff] }
   0xd   :  { %2757 = vmatprep.subr.mxu0 %v3415_v0  ;;  %2924 = vmatprep.subr.mxu1 %v3415_v0  ;;  %v553_v36 = vld [vmem:[%s5396_s1 + $0x60] sm:$0xff]  ;;  %v554_v38 = vld [vmem:[%s5396_s1 + $0x68] sm:$0xff]  ;;  %v44_v39 = vld [vmem:[%s5395_s0 + $0x70] sm:$0xff] }
   0xe   :  { %2758 = vmatpush3.msra.mxu0 %v3504_v7  ;;  %2925 = vmatpush3.msra.mxu1 %v3504_v7  ;;  %v555_v40 = vld [vmem:[%s5396_s1 + $0x70] sm:$0xff]  ;;  %v45_v41 = vld [vmem:[%s5395_s0 + $0x78] sm:$0xff]  ;;  %v46_v43 = vld [vmem:[%s5395_s0 + $0x80] sm:$0xff] }
   0xf   :  { %2759 = vmatprep.subr.mxu0 %v3415_v0  ;;  %2926 = vmatprep.subr.mxu1 %v3415_v0  ;;  %v556_v42 = vld [vmem:[%s5396_s1 + $0x78] sm:$0xff]  ;;  %v557_v44 = vld [vmem:[%s5396_s1 + $0x80] sm:$0xff]  ;;  %v47_v45 = vld [vmem:[%s5395_s0 + $0x88] sm:$0xff] }
  0x10   :  { %2760 = vmatpush3.msra.mxu0 %v3513_v8  ;;  %2927 = vmatpush3.msra.mxu1 %v3513_v8  ;;  %v558_v46 = vld [vmem:[%s5396_s1 + $0x88] sm:$0xff]  ;;  %v48_v47 = vld [vmem:[%s5395_s0 + $0x90] sm:$0xff]  ;;  %v49_v49 = vld [vmem:[%s5395_s0 + $0x98] sm:$0xff] }
  0x11   :  { %2761 = vmatprep.subr.mxu0 %v3415_v0  ;;  %2928 = vmatprep.subr.mxu1 %v3415_v0  ;;  %v559_v48 = vld [vmem:[%s5396_s1 + $0x90] sm:$0xff]  ;;  %v560_v50 = vld [vmem:[%s5396_s1 + $0x98] sm:$0xff]  ;;  %v50_v51 = vld [vmem:[%s5395_s0 + $0xa0] sm:$0xff] }
  0x12   :  { %2762 = vmatpush3.msra.mxu0 %v3522_v9  ;;  %2929 = vmatpush3.msra.mxu1 %v3522_v9  ;;  %v561_v52 = vld [vmem:[%s5396_s1 + $0xa0] sm:$0xff]  ;;  %v51_v53 = vld [vmem:[%s5395_s0 + $0xa8] sm:$0xff]  ;;  %v52_v55 = vld [vmem:[%s5395_s0 + $0xb0] sm:$0xff] }
  0x13   :  { %2763 = vmatprep.subr.mxu0 %v3415_v0  ;;  %2930 = vmatprep.subr.mxu1 %v3415_v0  ;;  %v562_v54 = vld [vmem:[%s5396_s1 + $0xa8] sm:$0xff]  ;;  %v563_v56 = vld [vmem:[%s5396_s1 + $0xb0] sm:$0xff]  ;;  %v53_v57 = vld [vmem:[%s5395_s0 + $0xb8] sm:$0xff] }
  0x14   :  { %2764 = vmatpush3.msra.mxu0 %v3531_v10  ;;  %2765 = vmatprep.mubr.msk.f32.mxu0 %vm3416_vm2, %v3415_v0  ;;  %v564_v58 = vld [vmem:[%s5396_s1 + $0xb8] sm:$0xff]  ;;  %v54_v59 = vld [vmem:[%s5395_s0 + $0xc0] sm:$0xff]  ;;  %v55_v61 = vld [vmem:[%s5395_s0 + $0xc8] sm:$0xff] }
  0x15   :  { %2931 = vmatpush3.msra.mxu1 %v3531_v10  ;;  %2932 = vmatprep.mubr.msk.f32.mxu1 %vm3416_vm2, %v3415_v0  ;;  %v565_v60 = vld [vmem:[%s5396_s1 + $0xc0] sm:$0xff]  ;;  %v566_v62 = vld [vmem:[%s5396_s1 + $0xc8] sm:$0xff]  ;;  %v56_v63 = vld [vmem:[%s5395_s0 + $0xd0] sm:$0xff] }
  0x16   :  { %2766 = vmatmul.mubr.msk.f32.vlgmr.msra.gmra.mxu0 %vm79_vm1, %v30_v11  ;;  %2933 = vmatmul.mubr.msk.f32.vlgmr.msra.gmra.mxu1 %vm79_vm1, %v541_v12  ;;  %v572_v11 = vld [vmem:[%s5396_s1 + $0xf8] sm:$0xff]  ;;  %v62_v12 = vld [vmem:[%s5395_s0 + $0x100] sm:$0xff] }
  0x17   :  { %3079 = vmatprep.subr.mxu0 %v3415_v0  ;;  %3246 = vmatprep.subr.mxu1 %v3415_v0 }
  0x18   :  { %3080 = vmatpush3.msk.msra.mxu0 %vm227_vm0, %v3452_v1  ;;  %3247 = vmatpush3.msk.msra.mxu1 %vm227_vm0, %v3452_v1  ;;  %v567_v1 = vld [vmem:[%s5396_s1 + $0xd0] sm:$0xff] }
  0x19   :  { %2768 = vmatprep.mubr.msk.f32.mxu0 %vm3416_vm2, %v3415_v0  ;;  %2935 = vmatprep.mubr.msk.f32.mxu1 %vm3416_vm2, %v3415_v0 }
  0x1a   :  { %2769 = vmatmul.mubr.msk.f32.gmra.mxu0 %vm79_vm1, %v31_v13  ;;  %2936 = vmatmul.mubr.msk.f32.gmra.mxu1 %vm79_vm1, %v542_v14  ;;  %v573_v13 = vld [vmem:[%s5396_s1 + $0x100] sm:$0xff]  ;;  %v63_v14 = vld [vmem:[%s5395_s0 + $0x108] sm:$0xff] }
  0x1b   :  { %2771 = vmatprep.mubr.msk.f32.mxu0 %vm3416_vm2, %v3415_v0  ;;  %2938 = vmatprep.mubr.msk.f32.mxu1 %vm3416_vm2, %v3415_v0 }
  0x1c   :  { %3081 = vmatprep.subr.mxu0 %v3415_v0  ;;  %3248 = vmatprep.subr.mxu1 %v3415_v0 }
  0x1d   :  { %3082 = vmatpush3.msra.mxu0 %v3457_v2  ;;  %3249 = vmatpush3.msra.mxu1 %v3457_v2  ;;  %v57_v2 = vld [vmem:[%s5395_s0 + $0xd8] sm:$0xff] }
  0x1e   :  { %2772 = vmatmul.mubr.msk.f32.gmra.mxu0 %vm79_vm1, %v32_v15  ;;  %2939 = vmatmul.mubr.msk.f32.gmra.mxu1 %vm79_vm1, %v543_v16  ;;  %v574_v15 = vld [vmem:[%s5396_s1 + $0x108] sm:$0xff]  ;;  %v64_v16 = vld [vmem:[%s5395_s0 + $0x110] sm:$0xff] }
  0x1f   :  { %2774 = vmatprep.mubr.msk.f32.mxu0 %vm3416_vm2, %v3415_v0  ;;  %2941 = vmatprep.mubr.msk.f32.mxu1 %vm3416_vm2, %v3415_v0 }
  0x20   :  { %3083 = vmatprep.subr.mxu0 %v3415_v0  ;;  %3250 = vmatprep.subr.mxu1 %v3415_v0 }
  0x21   :  { %3084 = vmatpush3.msra.mxu0 %v3468_v3  ;;  %3251 = vmatpush3.msra.mxu1 %v3468_v3  ;;  %v568_v3 = vld [vmem:[%s5396_s1 + $0xd8] sm:$0xff] }
  0x22   :  { %2775 = vmatmul.mubr.msk.f32.gmra.mxu0 %vm79_vm1, %v33_v17  ;;  %2942 = vmatmul.mubr.msk.f32.gmra.mxu1 %vm79_vm1, %v544_v18  ;;  %v575_v17 = vld [vmem:[%s5396_s1 + $0x110] sm:$0xff]  ;;  %v65_v18 = vld [vmem:[%s5395_s0 + $0x118] sm:$0xff] }
  0x23   :  { %2777 = vmatprep.mubr.msk.f32.mxu0 %vm3416_vm2, %v3415_v0  ;;  %2944 = vmatprep.mubr.msk.f32.mxu1 %vm3416_vm2, %v3415_v0 }
  0x24   :  { %3085 = vmatprep.subr.mxu0 %v3415_v0  ;;  %3252 = vmatprep.subr.mxu1 %v3415_v0 }
  0x25   :  { %3086 = vmatpush3.msra.mxu0 %v3477_v4  ;;  %3253 = vmatpush3.msra.mxu1 %v3477_v4  ;;  %v58_v4 = vld [vmem:[%s5395_s0 + $0xe0] sm:$0xff] }
  0x26   :  { %2778 = vmatmul.mubr.msk.f32.gmra.mxu0 %vm79_vm1, %v34_v19  ;;  %2945 = vmatmul.mubr.msk.f32.gmra.mxu1 %vm79_vm1, %v545_v20  ;;  %v576_v19 = vld [vmem:[%s5396_s1 + $0x118] sm:$0xff]  ;;  %v66_v20 = vld [vmem:[%s5395_s0 + $0x120] sm:$0xff] }
  0x27   :  { %2780 = vmatprep.mubr.msk.f32.mxu0 %vm3416_vm2, %v3415_v0  ;;  %2947 = vmatprep.mubr.msk.f32.mxu1 %vm3416_vm2, %v3415_v0 }
  0x28   :  { %3087 = vmatprep.subr.mxu0 %v3415_v0  ;;  %3254 = vmatprep.subr.mxu1 %v3415_v0 }
  0x29   :  { %3088 = vmatpush3.msra.mxu0 %v3486_v5  ;;  %3255 = vmatpush3.msra.mxu1 %v3486_v5  ;;  %v569_v5 = vld [vmem:[%s5396_s1 + $0xe0] sm:$0xff] }
  0x2a   :  { %2781 = vmatmul.mubr.msk.f32.gmra.mxu0 %vm79_vm1, %v35_v21  ;;  %2948 = vmatmul.mubr.msk.f32.gmra.mxu1 %vm79_vm1, %v546_v22  ;;  %v577_v21 = vld [vmem:[%s5396_s1 + $0x120] sm:$0xff]  ;;  %v67_v22 = vld [vmem:[%s5395_s0 + $0x128] sm:$0xff] }
  0x2b   :  { %2783 = vmatprep.mubr.msk.f32.mxu0 %vm3416_vm2, %v3415_v0  ;;  %2950 = vmatprep.mubr.msk.f32.mxu1 %vm3416_vm2, %v3415_v0 }
  0x2c   :  { %3089 = vmatprep.subr.mxu0 %v3415_v0  ;;  %3256 = vmatprep.subr.mxu1 %v3415_v0 }
  0x2d   :  { %3090 = vmatpush3.msra.mxu0 %v3495_v6  ;;  %3257 = vmatpush3.msra.mxu1 %v3495_v6  ;;  %v59_v6 = vld [vmem:[%s5395_s0 + $0xe8] sm:$0xff] }
  0x2e   :  { %2784 = vmatmul.mubr.msk.f32.gmra.mxu0 %vm79_vm1, %v36_v23  ;;  %2951 = vmatmul.mubr.msk.f32.gmra.mxu1 %vm79_vm1, %v547_v24  ;;  %v578_v23 = vld [vmem:[%s5396_s1 + $0x128] sm:$0xff]  ;;  %v68_v24 = vld [vmem:[%s5395_s0 + $0x130] sm:$0xff] }
  0x2f   :  { %2786 = vmatprep.mubr.msk.f32.mxu0 %vm3416_vm2, %v3415_v0  ;;  %2953 = vmatprep.mubr.msk.f32.mxu1 %vm3416_vm2, %v3415_v0 }
  0x30   :  { %3091 = vmatprep.subr.mxu0 %v3415_v0  ;;  %3258 = vmatprep.subr.mxu1 %v3415_v0 }
  0x31   :  { %3092 = vmatpush3.msra.mxu0 %v3504_v7  ;;  %3259 = vmatpush3.msra.mxu1 %v3504_v7  ;;  %v570_v7 = vld [vmem:[%s5396_s1 + $0xe8] sm:$0xff] }
  0x32   :  { %2787 = vmatmul.mubr.msk.f32.gmra.mxu0 %vm79_vm1, %v37_v25  ;;  %2954 = vmatmul.mubr.msk.f32.gmra.mxu1 %vm79_vm1, %v548_v26  ;;  %v579_v25 = vld [vmem:[%s5396_s1 + $0x130] sm:$0xff]  ;;  %v69_v26 = vld [vmem:[%s5395_s0 + $0x138] sm:$0xff] }
  0x33   :  { %2789 = vmatprep.mubr.msk.f32.mxu0 %vm3416_vm2, %v3415_v0  ;;  %2956 = vmatprep.mubr.msk.f32.mxu1 %vm3416_vm2, %v3415_v0 }
  0x34   :  { %3093 = vmatprep.subr.mxu0 %v3415_v0  ;;  %3260 = vmatprep.subr.mxu1 %v3415_v0 }
  0x35   :  { %3094 = vmatpush3.msra.mxu0 %v3513_v8  ;;  %3261 = vmatpush3.msra.mxu1 %v3513_v8  ;;  %v60_v8 = vld [vmem:[%s5395_s0 + $0xf0] sm:$0xff] }
  0x36   :  { %2790 = vmatmul.mubr.msk.f32.gmra.mxu0 %vm79_vm1, %v38_v27  ;;  %2957 = vmatmul.mubr.msk.f32.gmra.mxu1 %vm79_vm1, %v549_v28  ;;  %v580_v27 = vld [vmem:[%s5396_s1 + $0x138] sm:$0xff]  ;;  %v70_v28 = vld [vmem:[%s5395_s0 + $0x140] sm:$0xff] }
  0x37   :  { %2792 = vmatprep.mubr.msk.f32.mxu0 %vm3416_vm2, %v3415_v0  ;;  %2959 = vmatprep.mubr.msk.f32.mxu1 %vm3416_vm2, %v3415_v0 }
  0x38   :  { %3095 = vmatprep.subr.mxu0 %v3415_v0  ;;  %3262 = vmatprep.subr.mxu1 %v3415_v0 }
  0x39   :  { %3096 = vmatpush3.msra.mxu0 %v3522_v9  ;;  %3263 = vmatpush3.msra.mxu1 %v3522_v9  ;;  %v571_v9 = vld [vmem:[%s5396_s1 + $0xf0] sm:$0xff] }
  0x3a   :  { %2793 = vmatmul.mubr.msk.f32.gmra.mxu0 %vm79_vm1, %v39_v29  ;;  %2960 = vmatmul.mubr.msk.f32.gmra.mxu1 %vm79_vm1, %v550_v30  ;;  %v581_v29 = vld [vmem:[%s5396_s1 + $0x140] sm:$0xff]  ;;  %v71_v30 = vld [vmem:[%s5395_s0 + $0x148] sm:$0xff] }
  0x3b   :  { %2795 = vmatprep.mubr.msk.f32.mxu0 %vm3416_vm2, %v3415_v0  ;;  %2962 = vmatprep.mubr.msk.f32.mxu1 %vm3416_vm2, %v3415_v0 }
  0x3c   :  { %3097 = vmatprep.subr.mxu0 %v3415_v0  ;;  %3264 = vmatprep.subr.mxu1 %v3415_v0 }
  0x3d   :  { %3098 = vmatpush3.msra.mxu0 %v3531_v10  ;;  %3265 = vmatpush3.msra.mxu1 %v3531_v10  ;;  %v61_v10 = vld [vmem:[%s5395_s0 + $0xf8] sm:$0xff] }
  0x3e   :  { %2796 = vmatmul.mubr.msk.f32.gmra.mxu0 %vm79_vm1, %v40_v31  ;;  %2963 = vmatmul.mubr.msk.f32.gmra.mxu1 %vm79_vm1, %v551_v32  ;;  %v582_v31 = vld [vmem:[%s5396_s1 + $0x148] sm:$0xff]  ;;  %v72_v32 = vld [vmem:[%s5395_s0 + $0x150] sm:$0xff] }
  0x3f   :  { %2798 = vmatprep.mubr.msk.f32.mxu0 %vm3416_vm2, %v3415_v0  ;;  %2965 = vmatprep.mubr.msk.f32.mxu1 %vm3416_vm2, %v3415_v0 }
  0x42   :  { %2799 = vmatmul.mubr.msk.f32.gmra.mxu0 %vm79_vm1, %v41_v33  ;;  %2966 = vmatmul.mubr.msk.f32.gmra.mxu1 %vm79_vm1, %v552_v34  ;;  %v583_v33 = vld [vmem:[%s5396_s1 + $0x150] sm:$0xff]  ;;  %v73_v34 = vld [vmem:[%s5395_s0 + $0x158] sm:$0xff] }
  0x43   :  { %2801 = vmatprep.mubr.msk.f32.mxu0 %vm3416_vm2, %v3415_v0  ;;  %2968 = vmatprep.mubr.msk.f32.mxu1 %vm3416_vm2, %v3415_v0 }
  0x46   :  { %2802 = vmatmul.mubr.msk.f32.gmra.mxu0 %vm79_vm1, %v42_v35  ;;  %2969 = vmatmul.mubr.msk.f32.gmra.mxu1 %vm79_vm1, %v553_v36  ;;  %v584_v35 = vld [vmem:[%s5396_s1 + $0x158] sm:$0xff]  ;;  %v74_v36 = vld [vmem:[%s5395_s0 + $0x160] sm:$0xff] }
  0x47   :  { %2804 = vmatprep.mubr.msk.f32.mxu0 %vm3416_vm2, %v3415_v0  ;;  %2971 = vmatprep.mubr.msk.f32.mxu1 %vm3416_vm2, %v3415_v0 }
  0x4a   :  { %2805 = vmatmul.mubr.msk.f32.gmra.mxu0 %vm79_vm1, %v43_v37  ;;  %2972 = vmatmul.mubr.msk.f32.gmra.mxu1 %vm79_vm1, %v554_v38  ;;  %v585_v37 = vld [vmem:[%s5396_s1 + $0x160] sm:$0xff]  ;;  %v75_v38 = vld [vmem:[%s5395_s0 + $0x168] sm:$0xff] }
  0x4b   :  { %2807 = vmatprep.mubr.msk.f32.mxu0 %vm3416_vm2, %v3415_v0  ;;  %2974 = vmatprep.mubr.msk.f32.mxu1 %vm3416_vm2, %v3415_v0 }
  0x4e   :  { %2808 = vmatmul.mubr.msk.f32.gmra.mxu0 %vm79_vm1, %v44_v39  ;;  %2975 = vmatmul.mubr.msk.f32.gmra.mxu1 %vm79_vm1, %v555_v40  ;;  %v586_v39 = vld [vmem:[%s5396_s1 + $0x168] sm:$0xff]  ;;  %v76_v40 = vld [vmem:[%s5395_s0 + $0x170] sm:$0xff] }
  0x4f   :  { %2810 = vmatprep.mubr.msk.f32.mxu0 %vm3416_vm2, %v3415_v0  ;;  %2977 = vmatprep.mubr.msk.f32.mxu1 %vm3416_vm2, %v3415_v0 }
  0x52   :  { %2811 = vmatmul.mubr.msk.f32.gmra.mxu0 %vm79_vm1, %v45_v41  ;;  %2978 = vmatmul.mubr.msk.f32.gmra.mxu1 %vm79_vm1, %v556_v42  ;;  %v587_v41 = vld [vmem:[%s5396_s1 + $0x170] sm:$0xff]  ;;  %v77_v42 = vld [vmem:[%s5395_s0 + $0x178] sm:$0xff] }
  0x53   :  { %2813 = vmatprep.mubr.msk.f32.mxu0 %vm3416_vm2, %v3415_v0  ;;  %2980 = vmatprep.mubr.msk.f32.mxu1 %vm3416_vm2, %v3415_v0 }
  0x56   :  { %2814 = vmatmul.mubr.msk.f32.gmra.mxu0 %vm79_vm1, %v46_v43  ;;  %2981 = vmatmul.mubr.msk.f32.gmra.mxu1 %vm79_vm1, %v557_v44  ;;  %v588_v43 = vld [vmem:[%s5396_s1 + $0x178] sm:$0xff]  ;;  %v78_v44 = vld [vmem:[%s5395_s0 + $0x180] sm:$0xff] }
  0x57   :  { %2816 = vmatprep.mubr.msk.f32.mxu0 %vm3416_vm2, %v3415_v0  ;;  %2983 = vmatprep.mubr.msk.f32.mxu1 %vm3416_vm2, %v3415_v0 }
  0x5a   :  { %2817 = vmatmul.mubr.msk.f32.gmra.mxu0 %vm79_vm1, %v47_v45  ;;  %2984 = vmatmul.mubr.msk.f32.gmra.mxu1 %vm79_vm1, %v558_v46  ;;  %v589_v45 = vld [vmem:[%s5396_s1 + $0x180] sm:$0xff] }
  0x5b   :  { %2819 = vmatprep.mubr.msk.f32.mxu0 %vm3416_vm2, %v3415_v0  ;;  %2986 = vmatprep.mubr.msk.f32.mxu1 %vm3416_vm2, %v3415_v0 }
  0x5e   :  { %2820 = vmatmul.mubr.msk.f32.gmra.mxu0 %vm79_vm1, %v48_v47  ;;  %2987 = vmatmul.mubr.msk.f32.gmra.mxu1 %vm79_vm1, %v559_v48 }
  0x5f   :  { %2822 = vmatprep.mubr.msk.f32.mxu0 %vm3416_vm2, %v3415_v0  ;;  %2989 = vmatprep.mubr.msk.f32.mxu1 %vm3416_vm2, %v3415_v0 }
  0x62   :  { %2823 = vmatmul.mubr.msk.f32.gmra.mxu0 %vm79_vm1, %v49_v49  ;;  %2990 = vmatmul.mubr.msk.f32.gmra.mxu1 %vm79_vm1, %v560_v50  ;;  %v1047_v49 = vld [vmem:[%s5397_s2] sm:$0xff] }
  0x63   :  { %2825 = vmatprep.mubr.msk.f32.mxu0 %vm3416_vm2, %v3415_v0  ;;  %2992 = vmatprep.mubr.msk.f32.mxu1 %vm3416_vm2, %v3415_v0  ;;  %v1553_v50 = vld [vmem:[%s5398_s3] sm:$0xff] }
  0x66   :  { %2826 = vmatmul.mubr.msk.f32.gmra.mxu0 %vm79_vm1, %v50_v51  ;;  %2993 = vmatmul.mubr.msk.f32.gmra.mxu1 %vm79_vm1, %v561_v52 }
  0x67   :  { %2828 = vmatprep.mubr.msk.f32.mxu0 %vm3416_vm2, %v3415_v0  ;;  %2995 = vmatprep.mubr.msk.f32.mxu1 %vm3416_vm2, %v3415_v0 }
  0x6a   :  { %2829 = vmatmul.mubr.msk.f32.gmra.mxu0 %vm79_vm1, %v51_v53  ;;  %2996 = vmatmul.mubr.msk.f32.gmra.mxu1 %vm79_vm1, %v562_v54 }
  0x6b   :  { %2831 = vmatprep.mubr.msk.f32.mxu0 %vm3416_vm2, %v3415_v0  ;;  %2998 = vmatprep.mubr.msk.f32.mxu1 %vm3416_vm2, %v3415_v0 }
  0x6e   :  { %2832 = vmatmul.mubr.msk.f32.gmra.mxu0 %vm79_vm1, %v52_v55  ;;  %2999 = vmatmul.mubr.msk.f32.gmra.mxu1 %vm79_vm1, %v563_v56  ;;  %v1048_v56 = vld [vmem:[%s5397_s2 + $0x8] sm:$0xff] }
  0x6f   :  { %2834 = vmatprep.mubr.msk.f32.mxu0 %vm3416_vm2, %v3415_v0  ;;  %3001 = vmatprep.mubr.msk.f32.mxu1 %vm3416_vm2, %v3415_v0 }
  0x72   :  { %2835 = vmatmul.mubr.msk.f32.gmra.mxu0 %vm79_vm1, %v53_v57  ;;  %3002 = vmatmul.mubr.msk.f32.gmra.mxu1 %vm79_vm1, %v564_v58  ;;  %v1554_v57 = vld [vmem:[%s5398_s3 + $0x8] sm:$0xff] }
  0x73   :  { %2837 = vmatprep.mubr.msk.f32.mxu0 %vm3416_vm2, %v3415_v0  ;;  %3004 = vmatprep.mubr.msk.f32.mxu1 %vm3416_vm2, %v3415_v0 }
  0x76   :  { %2838 = vmatmul.mubr.msk.f32.gmra.mxu0 %vm79_vm1, %v54_v59  ;;  %3005 = vmatmul.mubr.msk.f32.gmra.mxu1 %vm79_vm1, %v565_v60 }
  0x77   :  { %2840 = vmatprep.mubr.msk.f32.mxu0 %vm3416_vm2, %v3415_v0  ;;  %3007 = vmatprep.mubr.msk.f32.mxu1 %vm3416_vm2, %v3415_v0 }
  0x7a   :  { %2841 = vmatmul.mubr.msk.f32.gmra.mxu0 %vm79_vm1, %v55_v61  ;;  %3008 = vmatmul.mubr.msk.f32.gmra.mxu1 %vm79_vm1, %v566_v62 }
  0x7b   :  { %2843 = vmatprep.mubr.msk.f32.mxu0 %vm3416_vm2, %v3415_v0  ;;  %3010 = vmatprep.mubr.msk.f32.mxu1 %vm3416_vm2, %v3415_v0 }
  0x7e   :  { %2844 = vmatmul.mubr.msk.f32.gmra.mxu0 %vm79_vm1, %v56_v63  ;;  %3011 = vmatmul.mubr.msk.f32.gmra.mxu1 %vm79_vm1, %v567_v1  ;;  %v1049_v63 = vld [vmem:[%s5397_s2 + $0x10] sm:$0xff] }
  0x7f   :  { %2846 = vmatprep.mubr.msk.f32.mxu0 %vm3416_vm2, %v3415_v0  ;;  %3013 = vmatprep.mubr.msk.f32.mxu1 %vm3416_vm2, %v3415_v0  ;;  %v1555_v1 = vld [vmem:[%s5398_s3 + $0x10] sm:$0xff] }
  0x82   :  { %2847 = vmatmul.mubr.msk.f32.gmra.mxu0 %vm79_vm1, %v57_v2  ;;  %3014 = vmatmul.mubr.msk.f32.gmra.mxu1 %vm79_vm1, %v568_v3 }
  0x83   :  { %2849 = vmatprep.mubr.msk.f32.mxu0 %vm3416_vm2, %v3415_v0  ;;  %3016 = vmatprep.mubr.msk.f32.mxu1 %vm3416_vm2, %v3415_v0 }
  0x86   :  { %2850 = vmatmul.mubr.msk.f32.gmra.mxu0 %vm79_vm1, %v58_v4  ;;  %3017 = vmatmul.mubr.msk.f32.gmra.mxu1 %vm79_vm1, %v569_v5 }
  0x87   :  { %2852 = vmatprep.mubr.msk.f32.mxu0 %vm3416_vm2, %v3415_v0  ;;  %3019 = vmatprep.mubr.msk.f32.mxu1 %vm3416_vm2, %v3415_v0 }
  0x8a   :  { %2853 = vmatmul.mubr.msk.f32.gmra.mxu0 %vm79_vm1, %v59_v6  ;;  %3020 = vmatmul.mubr.msk.f32.gmra.mxu1 %vm79_vm1, %v570_v7  ;;  %v1050_v7 = vld [vmem:[%s5397_s2 + $0x18] sm:$0xff] }
  0x8b   :  { %2855 = vmatprep.mubr.msk.f32.mxu0 %vm3416_vm2, %v3415_v0  ;;  %3022 = vmatprep.mubr.msk.f32.mxu1 %vm3416_vm2, %v3415_v0 }
  0x8e   :  { %2856 = vmatmul.mubr.msk.f32.gmra.mxu0 %vm79_vm1, %v60_v8  ;;  %3023 = vmatmul.mubr.msk.f32.gmra.mxu1 %vm79_vm1, %v571_v9  ;;  %v1556_v8 = vld [vmem:[%s5398_s3 + $0x18] sm:$0xff] }
  0x8f   :  { %2858 = vmatprep.mubr.msk.f32.mxu0 %vm3416_vm2, %v3415_v0  ;;  %3025 = vmatprep.mubr.msk.f32.mxu1 %vm3416_vm2, %v3415_v0 }
  0x92   :  { %2859 = vmatmul.mubr.msk.f32.gmra.mxu0 %vm79_vm1, %v61_v10  ;;  %3026 = vmatmul.mubr.msk.f32.gmra.mxu1 %vm79_vm1, %v572_v11 }
  0x93   :  { %2861 = vmatprep.mubr.msk.f32.mxu0 %vm3416_vm2, %v3415_v0  ;;  %3028 = vmatprep.mubr.msk.f32.mxu1 %vm3416_vm2, %v3415_v0 }
  0x96   :  { %2862 = vmatmul.mubr.msk.f32.gmra.mxu0 %vm79_vm1, %v62_v12  ;;  %3029 = vmatmul.mubr.msk.f32.gmra.mxu1 %vm79_vm1, %v573_v13 }
  0x97   :  { %2864 = vmatprep.mubr.msk.f32.mxu0 %vm3416_vm2, %v3415_v0  ;;  %3031 = vmatprep.mubr.msk.f32.mxu1 %vm3416_vm2, %v3415_v0 }
  0x9a   :  { %2865 = vmatmul.mubr.msk.f32.gmra.mxu0 %vm79_vm1, %v63_v14  ;;  %3032 = vmatmul.mubr.msk.f32.gmra.mxu1 %vm79_vm1, %v574_v15  ;;  %v1051_v14 = vld [vmem:[%s5397_s2 + $0x20] sm:$0xff] }
  0x9b   :  { %2867 = vmatprep.mubr.msk.f32.mxu0 %vm3416_vm2, %v3415_v0  ;;  %3034 = vmatprep.mubr.msk.f32.mxu1 %vm3416_vm2, %v3415_v0  ;;  %v1557_v15 = vld [vmem:[%s5398_s3 + $0x20] sm:$0xff] }
  0x9e   :  { %2868 = vmatmul.mubr.msk.f32.gmra.mxu0 %vm79_vm1, %v64_v16  ;;  %3035 = vmatmul.mubr.msk.f32.gmra.mxu1 %vm79_vm1, %v575_v17 }
  0x9f   :  { %2870 = vmatprep.mubr.msk.f32.mxu0 %vm3416_vm2, %v3415_v0  ;;  %3037 = vmatprep.mubr.msk.f32.mxu1 %vm3416_vm2, %v3415_v0 }
  0xa2   :  { %2871 = vmatmul.mubr.msk.f32.gmra.mxu0 %vm79_vm1, %v65_v18  ;;  %3038 = vmatmul.mubr.msk.f32.gmra.mxu1 %vm79_vm1, %v576_v19 }
  0xa3   :  { %2873 = vmatprep.mubr.msk.f32.mxu0 %vm3416_vm2, %v3415_v0  ;;  %3040 = vmatprep.mubr.msk.f32.mxu1 %vm3416_vm2, %v3415_v0 }
  0xa6   :  { %2874 = vmatmul.mubr.msk.f32.gmra.mxu0 %vm79_vm1, %v66_v20  ;;  %3041 = vmatmul.mubr.msk.f32.gmra.mxu1 %vm79_vm1, %v577_v21  ;;  %v1052_v21 = vld [vmem:[%s5397_s2 + $0x28] sm:$0xff] }
  0xa7   :  { %2876 = vmatprep.mubr.msk.f32.mxu0 %vm3416_vm2, %v3415_v0  ;;  %3043 = vmatprep.mubr.msk.f32.mxu1 %vm3416_vm2, %v3415_v0 }
  0xaa   :  { %2877 = vmatmul.mubr.msk.f32.gmra.mxu0 %vm79_vm1, %v67_v22  ;;  %3044 = vmatmul.mubr.msk.f32.gmra.mxu1 %vm79_vm1, %v578_v23  ;;  %v1558_v22 = vld [vmem:[%s5398_s3 + $0x28] sm:$0xff] }
  0xab   :  { %2879 = vmatprep.mubr.msk.f32.mxu0 %vm3416_vm2, %v3415_v0  ;;  %3046 = vmatprep.mubr.msk.f32.mxu1 %vm3416_vm2, %v3415_v0 }
  0xae   :  { %2880 = vmatmul.mubr.msk.f32.gmra.mxu0 %vm79_vm1, %v68_v24  ;;  %3047 = vmatmul.mubr.msk.f32.gmra.mxu1 %vm79_vm1, %v579_v25 }
  0xaf   :  { %2882 = vmatprep.mubr.msk.f32.mxu0 %vm3416_vm2, %v3415_v0  ;;  %3049 = vmatprep.mubr.msk.f32.mxu1 %vm3416_vm2, %v3415_v0 }
  0xb2   :  { %2883 = vmatmul.mubr.msk.f32.gmra.mxu0 %vm79_vm1, %v69_v26  ;;  %3050 = vmatmul.mubr.msk.f32.gmra.mxu1 %vm79_vm1, %v580_v27 }
  0xb3   :  { %2885 = vmatprep.mubr.msk.f32.mxu0 %vm3416_vm2, %v3415_v0  ;;  %3052 = vmatprep.mubr.msk.f32.mxu1 %vm3416_vm2, %v3415_v0 }
  0xb6   :  { %2886 = vmatmul.mubr.msk.f32.gmra.mxu0 %vm79_vm1, %v70_v28  ;;  %3053 = vmatmul.mubr.msk.f32.gmra.mxu1 %vm79_vm1, %v581_v29  ;;  %v1053_v28 = vld [vmem:[%s5397_s2 + $0x30] sm:$0xff] }
  0xb7   :  { %2888 = vmatprep.mubr.msk.f32.mxu0 %vm3416_vm2, %v3415_v0  ;;  %3055 = vmatprep.mubr.msk.f32.mxu1 %vm3416_vm2, %v3415_v0  ;;  %v1559_v29 = vld [vmem:[%s5398_s3 + $0x30] sm:$0xff] }
  0xba   :  { %2889 = vmatmul.mubr.msk.f32.gmra.mxu0 %vm79_vm1, %v71_v30  ;;  %3056 = vmatmul.mubr.msk.f32.gmra.mxu1 %vm79_vm1, %v582_v31 }
  0xbb   :  { %2891 = vmatprep.mubr.msk.f32.mxu0 %vm3416_vm2, %v3415_v0  ;;  %3058 = vmatprep.mubr.msk.f32.mxu1 %vm3416_vm2, %v3415_v0 }
  0xbe   :  { %2892 = vmatmul.mubr.msk.f32.gmra.mxu0 %vm79_vm1, %v72_v32  ;;  %3059 = vmatmul.mubr.msk.f32.gmra.mxu1 %vm79_vm1, %v583_v33 }
  0xbf   :  { %2894 = vmatprep.mubr.msk.f32.mxu0 %vm3416_vm2, %v3415_v0  ;;  %3061 = vmatprep.mubr.msk.f32.mxu1 %vm3416_vm2, %v3415_v0 }
  0xc2   :  { %2895 = vmatmul.mubr.msk.f32.gmra.mxu0 %vm79_vm1, %v73_v34  ;;  %3062 = vmatmul.mubr.msk.f32.gmra.mxu1 %vm79_vm1, %v584_v35  ;;  %v1054_v35 = vld [vmem:[%s5397_s2 + $0x38] sm:$0xff] }
  0xc3   :  { %2897 = vmatprep.mubr.msk.f32.mxu0 %vm3416_vm2, %v3415_v0  ;;  %3064 = vmatprep.mubr.msk.f32.mxu1 %vm3416_vm2, %v3415_v0 }
  0xc6   :  { %2898 = vmatmul.mubr.msk.f32.gmra.mxu0 %vm79_vm1, %v74_v36  ;;  %3065 = vmatmul.mubr.msk.f32.gmra.mxu1 %vm79_vm1, %v585_v37  ;;  %v1560_v36 = vld [vmem:[%s5398_s3 + $0x38] sm:$0xff] }
  0xc7   :  { %2900 = vmatprep.mubr.msk.f32.mxu0 %vm3416_vm2, %v3415_v0  ;;  %3067 = vmatprep.mubr.msk.f32.mxu1 %vm3416_vm2, %v3415_v0 }
  0xca   :  { %2901 = vmatmul.mubr.msk.f32.gmra.mxu0 %vm79_vm1, %v75_v38  ;;  %3068 = vmatmul.mubr.msk.f32.gmra.mxu1 %vm79_vm1, %v586_v39 }
  0xcb   :  { %2903 = vmatprep.mubr.msk.f32.mxu0 %vm3416_vm2, %v3415_v0  ;;  %3070 = vmatprep.mubr.msk.f32.mxu1 %vm3416_vm2, %v3415_v0 }
  0xce   :  { %2904 = vmatmul.mubr.msk.f32.gmra.mxu0 %vm79_vm1, %v76_v40  ;;  %3071 = vmatmul.mubr.msk.f32.gmra.mxu1 %vm79_vm1, %v587_v41 }
  0xcf   :  { %2906 = vmatprep.mubr.msk.f32.mxu0 %vm3416_vm2, %v3415_v0  ;;  %3073 = vmatprep.mubr.msk.f32.mxu1 %vm3416_vm2, %v3415_v0 }
  0xd2   :  { %2907 = vmatmul.mubr.msk.f32.gmra.mxu0 %vm79_vm1, %v77_v42  ;;  %3074 = vmatmul.mubr.msk.f32.gmra.mxu1 %vm79_vm1, %v588_v43  ;;  %v1055_v42 = vld [vmem:[%s5397_s2 + $0x40] sm:$0xff] }
  0xd3   :  { %2909 = vmatprep.mubr.msk.f32.mxu0 %vm3416_vm2, %v3415_v0  ;;  %3076 = vmatprep.mubr.msk.f32.mxu1 %vm3416_vm2, %v3415_v0  ;;  %v1561_v43 = vld [vmem:[%s5398_s3 + $0x40] sm:$0xff] }
  0xd6   :  { %v4167_v46 = vpop.f32.mrf.mxu0  ;;  %2910 = vmatmul.mubr.msk.f32.gmra.mxu0 %vm79_vm1, %v78_v44  ;;  %v4170_v47 = vpop.f32.mrf.mxu1  ;;  %3077 = vmatmul.mubr.msk.f32.gmra.mxu1 %vm79_vm1, %v589_v45 }
  0xd7   :  { %3099 = vmatprep.mubr.msk.f32.mxu0 %vm3416_vm2, %v3415_v0  ;;  %3266 = vmatprep.mubr.msk.f32.mxu1 %vm3416_vm2, %v3415_v0 }
  0xd8   :  { %v2767_v51 = vpop.f32.mrf.mxu0  ;;  %v2934_v52 = vpop.f32.mrf.mxu1 }
  0xd9   :  { %v1056_v52 = vld [vmem:[%s5397_s2 + $0x48] sm:$0xff] }
  0xda   :  { %v4185_v53 = vpop.f32.mrf.mxu0  ;;  %v4187_v54 = vpop.f32.mrf.mxu1  ;;  %3100 = vmatmul.mubr.msk.f32.vlgmr.msra.gmra.mxu0 %vm79_vm1, %v1047_v49  ;;  %3267 = vmatmul.mubr.msk.f32.vlgmr.msra.gmra.mxu1 %vm79_vm1, %v1553_v50 }
  0xdb   :  { %3102 = vmatprep.mubr.msk.f32.mxu0 %vm3416_vm2, %v3415_v0  ;;  %3269 = vmatprep.mubr.msk.f32.mxu1 %vm3416_vm2, %v3415_v0 }
  0xdc   :  { %v2770_v58 = vpop.f32.mrf.mxu0  ;;  %v2937_v59 = vpop.f32.mrf.mxu1 }
  0xde   :  { %v4203_v60 = vpop.f32.mrf.mxu0  ;;  %v4205_v61 = vpop.f32.mrf.mxu1  ;;  %3103 = vmatmul.mubr.msk.f32.gmra.mxu0 %vm79_vm1, %v1048_v56  ;;  %3270 = vmatmul.mubr.msk.f32.gmra.mxu1 %vm79_vm1, %v1554_v57  ;;  %v1562_v56 = vld [vmem:[%s5398_s3 + $0x48] sm:$0xff] }
  0xdf   :  { %3105 = vmatprep.mubr.msk.f32.mxu0 %vm3416_vm2, %v3415_v0  ;;  %3272 = vmatprep.mubr.msk.f32.mxu1 %vm3416_vm2, %v3415_v0 }
  0xe0   :  { %v2773_v2 = vpop.f32.mrf.mxu0  ;;  %v2940_v3 = vpop.f32.mrf.mxu1 }
  0xe1   :  { %v1057_v2 = vld [vmem:[%s5397_s2 + $0x50] sm:$0xff] }
  0xe2   :  { %v4221_v4 = vpop.f32.mrf.mxu0  ;;  %v4223_v5 = vpop.f32.mrf.mxu1  ;;  %3106 = vmatmul.mubr.msk.f32.gmra.mxu0 %vm79_vm1, %v1049_v63  ;;  %3273 = vmatmul.mubr.msk.f32.gmra.mxu1 %vm79_vm1, %v1555_v1  ;;  %v1563_v3 = vld [vmem:[%s5398_s3 + $0x50] sm:$0xff] }
  0xe3   :  { %3108 = vmatprep.mubr.msk.f32.mxu0 %vm3416_vm2, %v3415_v0  ;;  %3275 = vmatprep.mubr.msk.f32.mxu1 %vm3416_vm2, %v3415_v0 }
  0xe4   :  { %v2776_v9 = vpop.f32.mrf.mxu0  ;;  %v2943_v10 = vpop.f32.mrf.mxu1 }
  0xe6   :  { %v4239_v11 = vpop.f32.mrf.mxu0  ;;  %v4241_v12 = vpop.f32.mrf.mxu1  ;;  %3109 = vmatmul.mubr.msk.f32.gmra.mxu0 %vm79_vm1, %v1050_v7  ;;  %3276 = vmatmul.mubr.msk.f32.gmra.mxu1 %vm79_vm1, %v1556_v8 }
  0xe7   :  { %3111 = vmatprep.mubr.msk.f32.mxu0 %vm3416_vm2, %v3415_v0  ;;  %3278 = vmatprep.mubr.msk.f32.mxu1 %vm3416_vm2, %v3415_v0 }
  0xe8   :  { %v2779_v16 = vpop.f32.mrf.mxu0  ;;  %v2946_v17 = vpop.f32.mrf.mxu1 }
  0xe9   :  { %v1564_v16 = vld [vmem:[%s5398_s3 + $0x58] sm:$0xff] }
  0xea   :  { %v4257_v18 = vpop.f32.mrf.mxu0  ;;  %v4259_v19 = vpop.f32.mrf.mxu1  ;;  %3112 = vmatmul.mubr.msk.f32.gmra.mxu0 %vm79_vm1, %v1051_v14  ;;  %3279 = vmatmul.mubr.msk.f32.gmra.mxu1 %vm79_vm1, %v1557_v15  ;;  %v1058_v15 = vld [vmem:[%s5397_s2 + $0x58] sm:$0xff] }
  0xeb   :  { %3114 = vmatprep.mubr.msk.f32.mxu0 %vm3416_vm2, %v3415_v0  ;;  %3281 = vmatprep.mubr.msk.f32.mxu1 %vm3416_vm2, %v3415_v0 }
  0xec   :  { %v2782_v23 = vpop.f32.mrf.mxu0  ;;  %v2949_v24 = vpop.f32.mrf.mxu1 }
  0xee   :  { %v4275_v25 = vpop.f32.mrf.mxu0  ;;  %v4277_v26 = vpop.f32.mrf.mxu1  ;;  %3115 = vmatmul.mubr.msk.f32.gmra.mxu0 %vm79_vm1, %v1052_v21  ;;  %3282 = vmatmul.mubr.msk.f32.gmra.mxu1 %vm79_vm1, %v1558_v22 }
  0xef   :  { %3117 = vmatprep.mubr.msk.f32.mxu0 %vm3416_vm2, %v3415_v0  ;;  %3284 = vmatprep.mubr.msk.f32.mxu1 %vm3416_vm2, %v3415_v0 }
  0xf0   :  { %v2785_v30 = vpop.f32.mrf.mxu0  ;;  %v2952_v31 = vpop.f32.mrf.mxu1 }
  0xf2   :  { %v4293_v32 = vpop.f32.mrf.mxu0  ;;  %v4295_v33 = vpop.f32.mrf.mxu1  ;;  %3118 = vmatmul.mubr.msk.f32.gmra.mxu0 %vm79_vm1, %v1053_v28  ;;  %3285 = vmatmul.mubr.msk.f32.gmra.mxu1 %vm79_vm1, %v1559_v29  ;;  %v1059_v28 = vld [vmem:[%s5397_s2 + $0x60] sm:$0xff] }
  0xf3   :  { %3120 = vmatprep.mubr.msk.f32.mxu0 %vm3416_vm2, %v3415_v0  ;;  %3287 = vmatprep.mubr.msk.f32.mxu1 %vm3416_vm2, %v3415_v0  ;;  %v1565_v29 = vld [vmem:[%s5398_s3 + $0x60] sm:$0xff] }
  0xf4   :  { %v2788_v37 = vpop.f32.mrf.mxu0  ;;  %v2955_v38 = vpop.f32.mrf.mxu1 }
  0xf5   :  { %v1060_v38 = vld [vmem:[%s5397_s2 + $0x68] sm:$0xff] }
  0xf6   :  { %v4311_v39 = vpop.f32.mrf.mxu0  ;;  %v4313_v40 = vpop.f32.mrf.mxu1  ;;  %3121 = vmatmul.mubr.msk.f32.gmra.mxu0 %vm79_vm1, %v1054_v35  ;;  %3288 = vmatmul.mubr.msk.f32.gmra.mxu1 %vm79_vm1, %v1560_v36 }
  0xf7   :  { %3123 = vmatprep.mubr.msk.f32.mxu0 %vm3416_vm2, %v3415_v0  ;;  %3290 = vmatprep.mubr.msk.f32.mxu1 %vm3416_vm2, %v3415_v0 }
  0xf8   :  { %v2791_v44 = vpop.f32.mrf.mxu0  ;;  %v2958_v45 = vpop.f32.mrf.mxu1 }
  0xfa   :  { %v4329_v49 = vpop.f32.mrf.mxu0  ;;  %v4331_v50 = vpop.f32.mrf.mxu1  ;;  %3124 = vmatmul.mubr.msk.f32.gmra.mxu0 %vm79_vm1, %v1055_v42  ;;  %3291 = vmatmul.mubr.msk.f32.gmra.mxu1 %vm79_vm1, %v1561_v43  ;;  %v1566_v42 = vld [vmem:[%s5398_s3 + $0x68] sm:$0xff] }
  0xfb   :  { %3126 = vmatprep.mubr.msk.f32.mxu0 %vm3416_vm2, %v3415_v0  ;;  %3293 = vmatprep.mubr.msk.f32.mxu1 %vm3416_vm2, %v3415_v0 }
  0xfc   :  { %v2794_v57 = vpop.f32.mrf.mxu0  ;;  %v2961_v58 = vpop.f32.mrf.mxu1 }
  0xfd   :  { %v1061_v57 = vld [vmem:[%s5397_s2 + $0x70] sm:$0xff] }
  0xfe   :  { %v4347_v59 = vpop.f32.mrf.mxu0  ;;  %v4349_v63 = vpop.f32.mrf.mxu1  ;;  %3127 = vmatmul.mubr.msk.f32.gmra.mxu0 %vm79_vm1, %v1056_v52  ;;  %3294 = vmatmul.mubr.msk.f32.gmra.mxu1 %vm79_vm1, %v1562_v56  ;;  %v1567_v58 = vld [vmem:[%s5398_s3 + $0x70] sm:$0xff] }
  0xff   :  { %3129 = vmatprep.mubr.msk.f32.mxu0 %vm3416_vm2, %v3415_v0  ;;  %3296 = vmatprep.mubr.msk.f32.mxu1 %vm3416_vm2, %v3415_v0 }
 0x100   :  { %v2797_v7 = vpop.f32.mrf.mxu0  ;;  %v2964_v8 = vpop.f32.mrf.mxu1 }
 0x102   :  { %v4365_v9 = vpop.f32.mrf.mxu0  ;;  %v4367_v10 = vpop.f32.mrf.mxu1  ;;  %3130 = vmatmul.mubr.msk.f32.gmra.mxu0 %vm79_vm1, %v1057_v2  ;;  %3297 = vmatmul.mubr.msk.f32.gmra.mxu1 %vm79_vm1, %v1563_v3 }
 0x103   :  { %3132 = vmatprep.mubr.msk.f32.mxu0 %vm3416_vm2, %v3415_v0  ;;  %3299 = vmatprep.mubr.msk.f32.mxu1 %vm3416_vm2, %v3415_v0 }
 0x104   :  { %v2800_v17 = vpop.f32.mrf.mxu0  ;;  %v2967_v21 = vpop.f32.mrf.mxu1 }
 0x105   :  { %v1568_v17 = vld [vmem:[%s5398_s3 + $0x78] sm:$0xff] }
 0x106   :  { %v4383_v22 = vpop.f32.mrf.mxu0  ;;  %v4385_v23 = vpop.f32.mrf.mxu1  ;;  %3133 = vmatmul.mubr.msk.f32.gmra.mxu0 %vm79_vm1, %v1058_v15  ;;  %3300 = vmatmul.mubr.msk.f32.gmra.mxu1 %vm79_vm1, %v1564_v16  ;;  %v1062_v16 = vld [vmem:[%s5397_s2 + $0x78] sm:$0xff] }
 0x107   :  { %3135 = vmatprep.mubr.msk.f32.mxu0 %vm3416_vm2, %v3415_v0  ;;  %3302 = vmatprep.mubr.msk.f32.mxu1 %vm3416_vm2, %v3415_v0 }
 0x108   :  { %v2803_v30 = vpop.f32.mrf.mxu0  ;;  %v2970_v31 = vpop.f32.mrf.mxu1 }
 0x10a   :  { %v4401_v35 = vpop.f32.mrf.mxu0  ;;  %v4403_v36 = vpop.f32.mrf.mxu1  ;;  %3136 = vmatmul.mubr.msk.f32.gmra.mxu0 %vm79_vm1, %v1059_v28  ;;  %3303 = vmatmul.mubr.msk.f32.gmra.mxu1 %vm79_vm1, %v1565_v29 }
 0x10b   :  { %3138 = vmatprep.mubr.msk.f32.mxu0 %vm3416_vm2, %v3415_v0  ;;  %3305 = vmatprep.mubr.msk.f32.mxu1 %vm3416_vm2, %v3415_v0 }
 0x10c   :  { %v2806_v43 = vpop.f32.mrf.mxu0  ;;  %v2973_v44 = vpop.f32.mrf.mxu1 }
 0x10e   :  { %v4419_v45 = vpop.f32.mrf.mxu0  ;;  %v4421_v52 = vpop.f32.mrf.mxu1  ;;  %3139 = vmatmul.mubr.msk.f32.gmra.mxu0 %vm79_vm1, %v1060_v38  ;;  %3306 = vmatmul.mubr.msk.f32.gmra.mxu1 %vm79_vm1, %v1566_v42  ;;  %v1063_v38 = vld [vmem:[%s5397_s2 + $0x80] sm:$0xff] }
 0x10f   :  { %3141 = vmatprep.mubr.msk.f32.mxu0 %vm3416_vm2, %v3415_v0  ;;  %3308 = vmatprep.mubr.msk.f32.mxu1 %vm3416_vm2, %v3415_v0  ;;  %v1569_v42 = vld [vmem:[%s5398_s3 + $0x80] sm:$0xff] }
 0x110   :  { %v2809_v2 = vpop.f32.mrf.mxu0  ;;  %v2976_v3 = vpop.f32.mrf.mxu1 }
 0x111   :  { %v1064_v3 = vld [vmem:[%s5397_s2 + $0x88] sm:$0xff] }
 0x112   :  { %v4437_v7 = vpop.f32.mrf.mxu0  ;;  %v4439_v8 = vpop.f32.mrf.mxu1  ;;  %3142 = vmatmul.mubr.msk.f32.gmra.mxu0 %vm79_vm1, %v1061_v57  ;;  %3309 = vmatmul.mubr.msk.f32.gmra.mxu1 %vm79_vm1, %v1567_v58 }
 0x113   :  { %3144 = vmatprep.mubr.msk.f32.mxu0 %vm3416_vm2, %v3415_v0  ;;  %3311 = vmatprep.mubr.msk.f32.mxu1 %vm3416_vm2, %v3415_v0 }
 0x114   :  { %v2812_v21 = vpop.f32.mrf.mxu0  ;;  %v2979_v28 = vpop.f32.mrf.mxu1 }
 0x116   :  { %v4455_v29 = vpop.f32.mrf.mxu0  ;;  %v4457_v30 = vpop.f32.mrf.mxu1  ;;  %3145 = vmatmul.mubr.msk.f32.gmra.mxu0 %vm79_vm1, %v1062_v16  ;;  %3312 = vmatmul.mubr.msk.f32.gmra.mxu1 %vm79_vm1, %v1568_v17  ;;  %v1570_v16 = vld [vmem:[%s5398_s3 + $0x88] sm:$0xff] }
 0x117   :  { %3147 = vmatprep.mubr.msk.f32.mxu0 %vm3416_vm2, %v3415_v0  ;;  %3314 = vmatprep.mubr.msk.f32.mxu1 %vm3416_vm2, %v3415_v0 }
 0x118   :  { %v2815_v43 = vpop.f32.mrf.mxu0  ;;  %v2982_v44 = vpop.f32.mrf.mxu1 }
 0x119   :  { %v1065_v43 = vld [vmem:[%s5397_s2 + $0x90] sm:$0xff] }
 0x11a   :  { %v4473_v57 = vpop.f32.mrf.mxu0  ;;  %v4475_v58 = vpop.f32.mrf.mxu1  ;;  %3148 = vmatmul.mubr.msk.f32.gmra.mxu0 %vm79_vm1, %v1063_v38  ;;  %3315 = vmatmul.mubr.msk.f32.gmra.mxu1 %vm79_vm1, %v1569_v42  ;;  %v1571_v44 = vld [vmem:[%s5398_s3 + $0x90] sm:$0xff] }
 0x11b   :  { %3150 = vmatprep.mubr.msk.f32.mxu0 %vm3416_vm2, %v3415_v0  ;;  %3317 = vmatprep.mubr.msk.f32.mxu1 %vm3416_vm2, %v3415_v0 }
 0x11c   :  { %v2818_v17 = vpop.f32.mrf.mxu0  ;;  %v2985_v21 = vpop.f32.mrf.mxu1 }
 0x11e   :  { %v4491_v28 = vpop.f32.mrf.mxu0  ;;  %v4493_v38 = vpop.f32.mrf.mxu1  ;;  %3151 = vmatmul.mubr.msk.f32.gmra.mxu0 %vm79_vm1, %v1064_v3  ;;  %3318 = vmatmul.mubr.msk.f32.gmra.mxu1 %vm79_vm1, %v1570_v16 }
 0x11f   :  { %3153 = vmatprep.mubr.msk.f32.mxu0 %vm3416_vm2, %v3415_v0  ;;  %3320 = vmatprep.mubr.msk.f32.mxu1 %vm3416_vm2, %v3415_v0 }
 0x120   :  { %v2821_v3 = vpop.f32.mrf.mxu0  ;;  %v2988_v17 = vpop.f32.mrf.mxu1 }
 0x121   :  { %v1066_v3 = vld [vmem:[%s5397_s2 + $0x98] sm:$0xff] }
 0x122   :  { %v4509_v16 = vpop.f32.mrf.mxu0  ;;  %v4511_v21 = vpop.f32.mrf.mxu1  ;;  %3154 = vmatmul.mubr.msk.f32.gmra.mxu0 %vm79_vm1, %v1065_v43  ;;  %3321 = vmatmul.mubr.msk.f32.gmra.mxu1 %vm79_vm1, %v1571_v44  ;;  %v1572_v17 = vld [vmem:[%s5398_s3 + $0x98] sm:$0xff] }
 0x123   :  { %3156 = vmatprep.mubr.msk.f32.mxu0 %vm3416_vm2, %v3415_v0  ;;  %3323 = vmatprep.mubr.msk.f32.mxu1 %vm3416_vm2, %v3415_v0 }
 0x124   :  { %v2824_v43 = vpop.f32.mrf.mxu0  ;;  %v2991_v2 = vpop.f32.mrf.mxu1 }
 0x125   :  { %v1067_v2 = vld [vmem:[%s5397_s2 + $0xa0] sm:$0xff] }
 0x126   :  { %v4527_v44 = vpop.f32.mrf.mxu0  ;;  %v4529_v31 = vpop.f32.mrf.mxu1  ;;  %3157 = vmatmul.mubr.msk.f32.gmra.mxu0 %vm79_vm1, %v1066_v3  ;;  %3324 = vmatmul.mubr.msk.f32.gmra.mxu1 %vm79_vm1, %v1572_v17  ;;  %v1573_v43 = vld [vmem:[%s5398_s3 + $0xa0] sm:$0xff] }
 0x127   :  { %3159 = vmatprep.mubr.msk.f32.mxu0 %vm3416_vm2, %v3415_v0  ;;  %3326 = vmatprep.mubr.msk.f32.mxu1 %vm3416_vm2, %v3415_v0 }
 0x128   :  { %v2827_v3 = vpop.f32.mrf.mxu0  ;;  %v2994_v15 = vpop.f32.mrf.mxu1 }
 0x129   :  { %v1068_v15 = vld [vmem:[%s5397_s2 + $0xa8] sm:$0xff] }
 0x12a   :  { %v4545_v17 = vpop.f32.mrf.mxu0  ;;  %v4547_v56 = vpop.f32.mrf.mxu1  ;;  %3160 = vmatmul.mubr.msk.f32.gmra.mxu0 %vm79_vm1, %v1067_v2  ;;  %3327 = vmatmul.mubr.msk.f32.gmra.mxu1 %vm79_vm1, %v1573_v43  ;;  %v1574_v3 = vld [vmem:[%s5398_s3 + $0xa8] sm:$0xff] }
 0x12b   :  { %3162 = vmatprep.mubr.msk.f32.mxu0 %vm3416_vm2, %v3415_v0  ;;  %3329 = vmatprep.mubr.msk.f32.mxu1 %vm3416_vm2, %v3415_v0 }
 0x12c   :  { %v2830_v2 = vpop.f32.mrf.mxu0  ;;  %v2997_v37 = vpop.f32.mrf.mxu1 }
 0x12d   :  { %v1069_v37 = vld [vmem:[%s5397_s2 + $0xb0] sm:$0xff] }
 0x12e   :  { %v4563_v43 = vpop.f32.mrf.mxu0  ;;  %v4565_v24 = vpop.f32.mrf.mxu1  ;;  %3163 = vmatmul.mubr.msk.f32.gmra.mxu0 %vm79_vm1, %v1068_v15  ;;  %3330 = vmatmul.mubr.msk.f32.gmra.mxu1 %vm79_vm1, %v1574_v3  ;;  %v1575_v2 = vld [vmem:[%s5398_s3 + $0xb0] sm:$0xff] }
 0x12f   :  { %3165 = vmatprep.mubr.msk.f32.mxu0 %vm3416_vm2, %v3415_v0  ;;  %3332 = vmatprep.mubr.msk.f32.mxu1 %vm3416_vm2, %v3415_v0 }
 0x130   :  { %v2833_v15 = vpop.f32.mrf.mxu0  ;;  %v3000_v14 = vpop.f32.mrf.mxu1 }
 0x131   :  { %v1070_v14 = vld [vmem:[%s5397_s2 + $0xb8] sm:$0xff] }
 0x132   :  { %v4581_v3 = vpop.f32.mrf.mxu0  ;;  %v4583_v1 = vpop.f32.mrf.mxu1  ;;  %3166 = vmatmul.mubr.msk.f32.gmra.mxu0 %vm79_vm1, %v1069_v37  ;;  %3333 = vmatmul.mubr.msk.f32.gmra.mxu1 %vm79_vm1, %v1575_v2  ;;  %v1576_v15 = vld [vmem:[%s5398_s3 + $0xb8] sm:$0xff] }
 0x133   :  { %3168 = vmatprep.mubr.msk.f32.mxu0 %vm3416_vm2, %v3415_v0  ;;  %3335 = vmatprep.mubr.msk.f32.mxu1 %vm3416_vm2, %v3415_v0 }
 0x134   :  { %v2836_v37 = vpop.f32.mrf.mxu0  ;;  %v3003_v51 = vpop.f32.mrf.mxu1 }
 0x135   :  { %v1071_v51 = vld [vmem:[%s5397_s2 + $0xc0] sm:$0xff] }
 0x136   :  { %v4599_v2 = vpop.f32.mrf.mxu0  ;;  %v4601_v41 = vpop.f32.mrf.mxu1  ;;  %3169 = vmatmul.mubr.msk.f32.gmra.mxu0 %vm79_vm1, %v1070_v14  ;;  %3336 = vmatmul.mubr.msk.f32.gmra.mxu1 %vm79_vm1, %v1576_v15  ;;  %v1577_v37 = vld [vmem:[%s5398_s3 + $0xc0] sm:$0xff] }
 0x137   :  { %5449 = vst [vmem:[#allocation2_spill] sm:$0xff] %v4601_v41  ;;  %3171 = vmatprep.mubr.msk.f32.mxu0 %vm3416_vm2, %v3415_v0  ;;  %3338 = vmatprep.mubr.msk.f32.mxu1 %vm3416_vm2, %v3415_v0 }
 0x138   :  { %v2839_v14 = vpop.f32.mrf.mxu0  ;;  %v3006_v34 = vpop.f32.mrf.mxu1 }
 0x139   :  { %v1072_v34 = vld [vmem:[%s5397_s2 + $0xc8] sm:$0xff] }
 0x13a   :  { %v4617_v15 = vpop.f32.mrf.mxu0  ;;  %v4619_v27 = vpop.f32.mrf.mxu1  ;;  %3172 = vmatmul.mubr.msk.f32.gmra.mxu0 %vm79_vm1, %v1071_v51  ;;  %3339 = vmatmul.mubr.msk.f32.gmra.mxu1 %vm79_vm1, %v1577_v37  ;;  %v1578_v14 = vld [vmem:[%s5398_s3 + $0xc8] sm:$0xff] }
 0x13b   :  { %5450 = vst [vmem:[#allocation3_spill] sm:$0xff] %v4617_v15  ;;  %5451 = vst [vmem:[#allocation4_spill] sm:$0xff] %v4619_v27  ;;  %3174 = vmatprep.mubr.msk.f32.mxu0 %vm3416_vm2, %v3415_v0  ;;  %3341 = vmatprep.mubr.msk.f32.mxu1 %vm3416_vm2, %v3415_v0 }
 0x13c   :  { %v2842_v51 = vpop.f32.mrf.mxu0  ;;  %v3009_v20 = vpop.f32.mrf.mxu1 }
 0x13d   :  { %v1073_v20 = vld [vmem:[%s5397_s2 + $0xd0] sm:$0xff] }
 0x13e   :  { %v4635_v37 = vpop.f32.mrf.mxu0  ;;  %v4637_v13 = vpop.f32.mrf.mxu1  ;;  %3175 = vmatmul.mubr.msk.f32.gmra.mxu0 %vm79_vm1, %v1072_v34  ;;  %3342 = vmatmul.mubr.msk.f32.gmra.mxu1 %vm79_vm1, %v1578_v14  ;;  %v1579_v51 = vld [vmem:[%s5398_s3 + $0xd0] sm:$0xff] }
 0x13f   :  { %5452 = vst [vmem:[#allocation5_spill] sm:$0xff] %v4635_v37  ;;  %5453 = vst [vmem:[#allocation6_spill] sm:$0xff] %v4637_v13  ;;  %3177 = vmatprep.mubr.msk.f32.mxu0 %vm3416_vm2, %v3415_v0  ;;  %3344 = vmatprep.mubr.msk.f32.mxu1 %vm3416_vm2, %v3415_v0 }
 0x140   :  { %v2845_v34 = vpop.f32.mrf.mxu0  ;;  %v3012_v6 = vpop.f32.mrf.mxu1 }
 0x141   :  { %v1074_v6 = vld [vmem:[%s5397_s2 + $0xd8] sm:$0xff] }
 0x142   :  { %v4653_v14 = vpop.f32.mrf.mxu0  ;;  %v4655_v62 = vpop.f32.mrf.mxu1  ;;  %3178 = vmatmul.mubr.msk.f32.gmra.mxu0 %vm79_vm1, %v1073_v20  ;;  %3345 = vmatmul.mubr.msk.f32.gmra.mxu1 %vm79_vm1, %v1579_v51  ;;  %v1580_v34 = vld [vmem:[%s5398_s3 + $0xd8] sm:$0xff] }
 0x143   :  { %5454 = vst [vmem:[#allocation7_spill] sm:$0xff] %v4653_v14  ;;  %5455 = vst [vmem:[#allocation8_spill] sm:$0xff] %v4655_v62  ;;  %3180 = vmatprep.mubr.msk.f32.mxu0 %vm3416_vm2, %v3415_v0  ;;  %3347 = vmatprep.mubr.msk.f32.mxu1 %vm3416_vm2, %v3415_v0 }
 0x144   :  { %v2848_v20 = vpop.f32.mrf.mxu0  ;;  %v3015_v55 = vpop.f32.mrf.mxu1 }
 0x145   :  { %v1075_v55 = vld [vmem:[%s5397_s2 + $0xe0] sm:$0xff] }
 0x146   :  { %v4671_v51 = vpop.f32.mrf.mxu0  ;;  %v4673_v48 = vpop.f32.mrf.mxu1  ;;  %3181 = vmatmul.mubr.msk.f32.gmra.mxu0 %vm79_vm1, %v1074_v6  ;;  %3348 = vmatmul.mubr.msk.f32.gmra.mxu1 %vm79_vm1, %v1580_v34  ;;  %v1581_v20 = vld [vmem:[%s5398_s3 + $0xe0] sm:$0xff] }
 0x147   :  { %5456 = vst [vmem:[#allocation9_spill] sm:$0xff] %v4671_v51  ;;  %5457 = vst [vmem:[#allocation10_spill] sm:$0xff] %v4673_v48  ;;  %3183 = vmatprep.mubr.msk.f32.mxu0 %vm3416_vm2, %v3415_v0  ;;  %3350 = vmatprep.mubr.msk.f32.mxu1 %vm3416_vm2, %v3415_v0 }
 0x148   :  { %v2851_v6 = vpop.f32.mrf.mxu0  ;;  %v3018_v62 = vpop.f32.mrf.mxu1 }
 0x149   :  { %v1076_v62 = vld [vmem:[%s5397_s2 + $0xe8] sm:$0xff] }
 0x14a   :  { %v4689_v34 = vpop.f32.mrf.mxu0  ;;  %v4691_v14 = vpop.f32.mrf.mxu1  ;;  %3184 = vmatmul.mubr.msk.f32.gmra.mxu0 %vm79_vm1, %v1075_v55  ;;  %3351 = vmatmul.mubr.msk.f32.gmra.mxu1 %vm79_vm1, %v1581_v20  ;;  %v1582_v6 = vld [vmem:[%s5398_s3 + $0xe8] sm:$0xff] }
 0x14b   :  { %5458 = vst [vmem:[#allocation11_spill] sm:$0xff] %v4689_v34  ;;  %5459 = vst [vmem:[#allocation12_spill] sm:$0xff] %v4691_v14  ;;  %3186 = vmatprep.mubr.msk.f32.mxu0 %vm3416_vm2, %v3415_v0  ;;  %3353 = vmatprep.mubr.msk.f32.mxu1 %vm3416_vm2, %v3415_v0 }
 0x14c   :  { %v2854_v55 = vpop.f32.mrf.mxu0  ;;  %v3021_v48 = vpop.f32.mrf.mxu1 }
 0x14d   :  { %v1077_v48 = vld [vmem:[%s5397_s2 + $0xf0] sm:$0xff] }
 0x14e   :  { %v4707_v20 = vpop.f32.mrf.mxu0  ;;  %v4709_v51 = vpop.f32.mrf.mxu1  ;;  %3187 = vmatmul.mubr.msk.f32.gmra.mxu0 %vm79_vm1, %v1076_v62  ;;  %3354 = vmatmul.mubr.msk.f32.gmra.mxu1 %vm79_vm1, %v1582_v6  ;;  %v1583_v55 = vld [vmem:[%s5398_s3 + $0xf0] sm:$0xff] }
 0x14f   :  { %5460 = vst [vmem:[#allocation13_spill] sm:$0xff] %v4707_v20  ;;  %5461 = vst [vmem:[#allocation14_spill] sm:$0xff] %v4709_v51  ;;  %3189 = vmatprep.mubr.msk.f32.mxu0 %vm3416_vm2, %v3415_v0  ;;  %3356 = vmatprep.mubr.msk.f32.mxu1 %vm3416_vm2, %v3415_v0 }
 0x150   :  { %v2857_v62 = vpop.f32.mrf.mxu0  ;;  %v3024_v14 = vpop.f32.mrf.mxu1 }
 0x151   :  { %v1078_v14 = vld [vmem:[%s5397_s2 + $0xf8] sm:$0xff] }
 0x152   :  { %v4725_v6 = vpop.f32.mrf.mxu0  ;;  %v4727_v34 = vpop.f32.mrf.mxu1  ;;  %3190 = vmatmul.mubr.msk.f32.gmra.mxu0 %vm79_vm1, %v1077_v48  ;;  %3357 = vmatmul.mubr.msk.f32.gmra.mxu1 %vm79_vm1, %v1583_v55  ;;  %v1584_v62 = vld [vmem:[%s5398_s3 + $0xf8] sm:$0xff] }
 0x153   :  { %5462 = vst [vmem:[#allocation15_spill] sm:$0xff] %v4725_v6  ;;  %5463 = vst [vmem:[#allocation16_spill] sm:$0xff] %v4727_v34  ;;  %3192 = vmatprep.mubr.msk.f32.mxu0 %vm3416_vm2, %v3415_v0  ;;  %3359 = vmatprep.mubr.msk.f32.mxu1 %vm3416_vm2, %v3415_v0 }
 0x154   :  { %v2860_v48 = vpop.f32.mrf.mxu0  ;;  %v3027_v51 = vpop.f32.mrf.mxu1 }
 0x155   :  { %v1079_v51 = vld [vmem:[%s5397_s2 + $0x100] sm:$0xff] }
 0x156   :  { %v4743_v55 = vpop.f32.mrf.mxu0  ;;  %v4745_v20 = vpop.f32.mrf.mxu1  ;;  %3193 = vmatmul.mubr.msk.f32.gmra.mxu0 %vm79_vm1, %v1078_v14  ;;  %3360 = vmatmul.mubr.msk.f32.gmra.mxu1 %vm79_vm1, %v1584_v62  ;;  %v1585_v48 = vld [vmem:[%s5398_s3 + $0x100] sm:$0xff] }
 0x157   :  { %5464 = vst [vmem:[#allocation17_spill] sm:$0xff] %v4743_v55  ;;  %5465 = vst [vmem:[#allocation18_spill] sm:$0xff] %v4745_v20  ;;  %3195 = vmatprep.mubr.msk.f32.mxu0 %vm3416_vm2, %v3415_v0  ;;  %3362 = vmatprep.mubr.msk.f32.mxu1 %vm3416_vm2, %v3415_v0 }
 0x158   :  { %v2863_v14 = vpop.f32.mrf.mxu0  ;;  %v3030_v34 = vpop.f32.mrf.mxu1 }
 0x159   :  { %v1080_v34 = vld [vmem:[%s5397_s2 + $0x108] sm:$0xff] }
 0x15a   :  { %v4761_v62 = vpop.f32.mrf.mxu0  ;;  %v4763_v6 = vpop.f32.mrf.mxu1  ;;  %3196 = vmatmul.mubr.msk.f32.gmra.mxu0 %vm79_vm1, %v1079_v51  ;;  %3363 = vmatmul.mubr.msk.f32.gmra.mxu1 %vm79_vm1, %v1585_v48  ;;  %v1586_v14 = vld [vmem:[%s5398_s3 + $0x108] sm:$0xff] }
 0x15b   :  { %5466 = vst [vmem:[#allocation19_spill] sm:$0xff] %v4761_v62  ;;  %5467 = vst [vmem:[#allocation20_spill] sm:$0xff] %v4763_v6  ;;  %3198 = vmatprep.mubr.msk.f32.mxu0 %vm3416_vm2, %v3415_v0  ;;  %3365 = vmatprep.mubr.msk.f32.mxu1 %vm3416_vm2, %v3415_v0 }
 0x15c   :  { %v2866_v51 = vpop.f32.mrf.mxu0  ;;  %v3033_v20 = vpop.f32.mrf.mxu1 }
 0x15d   :  { %v1081_v20 = vld [vmem:[%s5397_s2 + $0x110] sm:$0xff] }
 0x15e   :  { %v4779_v48 = vpop.f32.mrf.mxu0  ;;  %v4781_v55 = vpop.f32.mrf.mxu1  ;;  %3199 = vmatmul.mubr.msk.f32.gmra.mxu0 %vm79_vm1, %v1080_v34  ;;  %3366 = vmatmul.mubr.msk.f32.gmra.mxu1 %vm79_vm1, %v1586_v14  ;;  %v1587_v51 = vld [vmem:[%s5398_s3 + $0x110] sm:$0xff] }
 0x15f   :  { %5468 = vst [vmem:[#allocation21_spill] sm:$0xff] %v4779_v48  ;;  %5469 = vst [vmem:[#allocation22_spill] sm:$0xff] %v4781_v55  ;;  %3201 = vmatprep.mubr.msk.f32.mxu0 %vm3416_vm2, %v3415_v0  ;;  %3368 = vmatprep.mubr.msk.f32.mxu1 %vm3416_vm2, %v3415_v0 }
 0x160   :  { %v2869_v34 = vpop.f32.mrf.mxu0  ;;  %v3036_v6 = vpop.f32.mrf.mxu1 }
 0x161   :  { %v1082_v6 = vld [vmem:[%s5397_s2 + $0x118] sm:$0xff] }
 0x162   :  { %v4797_v14 = vpop.f32.mrf.mxu0  ;;  %v4799_v62 = vpop.f32.mrf.mxu1  ;;  %3202 = vmatmul.mubr.msk.f32.gmra.mxu0 %vm79_vm1, %v1081_v20  ;;  %3369 = vmatmul.mubr.msk.f32.gmra.mxu1 %vm79_vm1, %v1587_v51  ;;  %v1588_v34 = vld [vmem:[%s5398_s3 + $0x118] sm:$0xff] }
 0x163   :  { %5470 = vst [vmem:[#allocation23_spill] sm:$0xff] %v4797_v14  ;;  %5471 = vst [vmem:[#allocation24_spill] sm:$0xff] %v4799_v62  ;;  %3204 = vmatprep.mubr.msk.f32.mxu0 %vm3416_vm2, %v3415_v0  ;;  %3371 = vmatprep.mubr.msk.f32.mxu1 %vm3416_vm2, %v3415_v0 }
 0x164   :  { %v2872_v20 = vpop.f32.mrf.mxu0  ;;  %v3039_v55 = vpop.f32.mrf.mxu1 }
 0x165   :  { %v1083_v55 = vld [vmem:[%s5397_s2 + $0x120] sm:$0xff] }
 0x166   :  { %v4815_v51 = vpop.f32.mrf.mxu0  ;;  %v4817_v48 = vpop.f32.mrf.mxu1  ;;  %3205 = vmatmul.mubr.msk.f32.gmra.mxu0 %vm79_vm1, %v1082_v6  ;;  %3372 = vmatmul.mubr.msk.f32.gmra.mxu1 %vm79_vm1, %v1588_v34  ;;  %v1589_v20 = vld [vmem:[%s5398_s3 + $0x120] sm:$0xff] }
 0x167   :  { %5472 = vst [vmem:[#allocation25_spill] sm:$0xff] %v4815_v51  ;;  %5473 = vst [vmem:[#allocation26_spill] sm:$0xff] %v4817_v48  ;;  %3207 = vmatprep.mubr.msk.f32.mxu0 %vm3416_vm2, %v3415_v0  ;;  %3374 = vmatprep.mubr.msk.f32.mxu1 %vm3416_vm2, %v3415_v0 }
 0x168   :  { %v2875_v6 = vpop.f32.mrf.mxu0  ;;  %v3042_v62 = vpop.f32.mrf.mxu1 }
 0x169   :  { %v1084_v62 = vld [vmem:[%s5397_s2 + $0x128] sm:$0xff] }
 0x16a   :  { %v4833_v34 = vpop.f32.mrf.mxu0  ;;  %v4835_v14 = vpop.f32.mrf.mxu1  ;;  %3208 = vmatmul.mubr.msk.f32.gmra.mxu0 %vm79_vm1, %v1083_v55  ;;  %3375 = vmatmul.mubr.msk.f32.gmra.mxu1 %vm79_vm1, %v1589_v20  ;;  %v1590_v6 = vld [vmem:[%s5398_s3 + $0x128] sm:$0xff] }
 0x16b   :  { %5474 = vst [vmem:[#allocation27_spill] sm:$0xff] %v4833_v34  ;;  %5475 = vst [vmem:[#allocation28_spill] sm:$0xff] %v4835_v14  ;;  %3210 = vmatprep.mubr.msk.f32.mxu0 %vm3416_vm2, %v3415_v0  ;;  %3377 = vmatprep.mubr.msk.f32.mxu1 %vm3416_vm2, %v3415_v0 }
 0x16c   :  { %v2878_v55 = vpop.f32.mrf.mxu0  ;;  %v3045_v48 = vpop.f32.mrf.mxu1 }
 0x16d   :  { %v1085_v48 = vld [vmem:[%s5397_s2 + $0x130] sm:$0xff] }
 0x16e   :  { %v4851_v20 = vpop.f32.mrf.mxu0  ;;  %v4853_v51 = vpop.f32.mrf.mxu1  ;;  %3211 = vmatmul.mubr.msk.f32.gmra.mxu0 %vm79_vm1, %v1084_v62  ;;  %3378 = vmatmul.mubr.msk.f32.gmra.mxu1 %vm79_vm1, %v1590_v6  ;;  %v1591_v55 = vld [vmem:[%s5398_s3 + $0x130] sm:$0xff] }
 0x16f   :  { %5476 = vst [vmem:[#allocation29_spill] sm:$0xff] %v4851_v20  ;;  %5477 = vst [vmem:[#allocation30_spill] sm:$0xff] %v4853_v51  ;;  %3213 = vmatprep.mubr.msk.f32.mxu0 %vm3416_vm2, %v3415_v0  ;;  %3380 = vmatprep.mubr.msk.f32.mxu1 %vm3416_vm2, %v3415_v0 }
 0x170   :  { %v2881_v62 = vpop.f32.mrf.mxu0  ;;  %v3048_v14 = vpop.f32.mrf.mxu1 }
 0x171   :  { %v1086_v14 = vld [vmem:[%s5397_s2 + $0x138] sm:$0xff] }
 0x172   :  { %v4869_v6 = vpop.f32.mrf.mxu0  ;;  %v4871_v34 = vpop.f32.mrf.mxu1  ;;  %3214 = vmatmul.mubr.msk.f32.gmra.mxu0 %vm79_vm1, %v1085_v48  ;;  %3381 = vmatmul.mubr.msk.f32.gmra.mxu1 %vm79_vm1, %v1591_v55  ;;  %v1592_v62 = vld [vmem:[%s5398_s3 + $0x138] sm:$0xff] }
 0x173   :  { %5478 = vst [vmem:[#allocation31_spill] sm:$0xff] %v4869_v6  ;;  %5479 = vst [vmem:[#allocation32_spill] sm:$0xff] %v4871_v34  ;;  %3216 = vmatprep.mubr.msk.f32.mxu0 %vm3416_vm2, %v3415_v0  ;;  %3383 = vmatprep.mubr.msk.f32.mxu1 %vm3416_vm2, %v3415_v0 }
 0x174   :  { %v2884_v48 = vpop.f32.mrf.mxu0  ;;  %v3051_v51 = vpop.f32.mrf.mxu1 }
 0x175   :  { %v1087_v51 = vld [vmem:[%s5397_s2 + $0x140] sm:$0xff] }
 0x176   :  { %v4887_v55 = vpop.f32.mrf.mxu0  ;;  %v4889_v20 = vpop.f32.mrf.mxu1  ;;  %3217 = vmatmul.mubr.msk.f32.gmra.mxu0 %vm79_vm1, %v1086_v14  ;;  %3384 = vmatmul.mubr.msk.f32.gmra.mxu1 %vm79_vm1, %v1592_v62  ;;  %v1593_v48 = vld [vmem:[%s5398_s3 + $0x140] sm:$0xff] }
 0x177   :  { %5480 = vst [vmem:[#allocation33_spill] sm:$0xff] %v4887_v55  ;;  %5481 = vst [vmem:[#allocation34_spill] sm:$0xff] %v4889_v20  ;;  %3219 = vmatprep.mubr.msk.f32.mxu0 %vm3416_vm2, %v3415_v0  ;;  %3386 = vmatprep.mubr.msk.f32.mxu1 %vm3416_vm2, %v3415_v0 }
 0x178   :  { %v2887_v14 = vpop.f32.mrf.mxu0  ;;  %v3054_v34 = vpop.f32.mrf.mxu1 }
 0x179   :  { %v1088_v34 = vld [vmem:[%s5397_s2 + $0x148] sm:$0xff] }
 0x17a   :  { %v4905_v62 = vpop.f32.mrf.mxu0  ;;  %v4907_v6 = vpop.f32.mrf.mxu1  ;;  %3220 = vmatmul.mubr.msk.f32.gmra.mxu0 %vm79_vm1, %v1087_v51  ;;  %3387 = vmatmul.mubr.msk.f32.gmra.mxu1 %vm79_vm1, %v1593_v48  ;;  %v1594_v14 = vld [vmem:[%s5398_s3 + $0x148] sm:$0xff] }
 0x17b   :  { %5482 = vst [vmem:[#allocation35_spill] sm:$0xff] %v4905_v62  ;;  %5483 = vst [vmem:[#allocation36_spill] sm:$0xff] %v4907_v6  ;;  %3222 = vmatprep.mubr.msk.f32.mxu0 %vm3416_vm2, %v3415_v0  ;;  %3389 = vmatprep.mubr.msk.f32.mxu1 %vm3416_vm2, %v3415_v0 }
 0x17c   :  { %v2890_v51 = vpop.f32.mrf.mxu0  ;;  %v3057_v20 = vpop.f32.mrf.mxu1 }
 0x17d   :  { %v1089_v20 = vld [vmem:[%s5397_s2 + $0x150] sm:$0xff] }
 0x17e   :  { %v4923_v48 = vpop.f32.mrf.mxu0  ;;  %v4925_v55 = vpop.f32.mrf.mxu1  ;;  %3223 = vmatmul.mubr.msk.f32.gmra.mxu0 %vm79_vm1, %v1088_v34  ;;  %3390 = vmatmul.mubr.msk.f32.gmra.mxu1 %vm79_vm1, %v1594_v14  ;;  %v1595_v51 = vld [vmem:[%s5398_s3 + $0x150] sm:$0xff] }
 0x17f   :  { %5484 = vst [vmem:[#allocation37_spill] sm:$0xff] %v4923_v48  ;;  %5485 = vst [vmem:[#allocation38_spill] sm:$0xff] %v4925_v55  ;;  %3225 = vmatprep.mubr.msk.f32.mxu0 %vm3416_vm2, %v3415_v0  ;;  %3392 = vmatprep.mubr.msk.f32.mxu1 %vm3416_vm2, %v3415_v0 }
 0x180   :  { %v2893_v34 = vpop.f32.mrf.mxu0  ;;  %v3060_v6 = vpop.f32.mrf.mxu1 }
 0x181   :  { %v1090_v6 = vld [vmem:[%s5397_s2 + $0x158] sm:$0xff] }
 0x182   :  { %v4941_v14 = vpop.f32.mrf.mxu0  ;;  %v4943_v62 = vpop.f32.mrf.mxu1  ;;  %3226 = vmatmul.mubr.msk.f32.gmra.mxu0 %vm79_vm1, %v1089_v20  ;;  %3393 = vmatmul.mubr.msk.f32.gmra.mxu1 %vm79_vm1, %v1595_v51  ;;  %v1596_v34 = vld [vmem:[%s5398_s3 + $0x158] sm:$0xff] }
 0x183   :  { %5486 = vst [vmem:[#allocation39_spill] sm:$0xff] %v4941_v14  ;;  %5487 = vst [vmem:[#allocation40_spill] sm:$0xff] %v4943_v62  ;;  %3228 = vmatprep.mubr.msk.f32.mxu0 %vm3416_vm2, %v3415_v0  ;;  %3395 = vmatprep.mubr.msk.f32.mxu1 %vm3416_vm2, %v3415_v0 }
 0x184   :  { %v2896_v20 = vpop.f32.mrf.mxu0  ;;  %v3063_v55 = vpop.f32.mrf.mxu1 }
 0x185   :  { %v1091_v55 = vld [vmem:[%s5397_s2 + $0x160] sm:$0xff] }
 0x186   :  { %v4959_v51 = vpop.f32.mrf.mxu0  ;;  %v4961_v48 = vpop.f32.mrf.mxu1  ;;  %3229 = vmatmul.mubr.msk.f32.gmra.mxu0 %vm79_vm1, %v1090_v6  ;;  %3396 = vmatmul.mubr.msk.f32.gmra.mxu1 %vm79_vm1, %v1596_v34  ;;  %v1597_v20 = vld [vmem:[%s5398_s3 + $0x160] sm:$0xff] }
 0x187   :  { %5488 = vst [vmem:[#allocation41_spill] sm:$0xff] %v4959_v51  ;;  %5489 = vst [vmem:[#allocation42_spill] sm:$0xff] %v4961_v48  ;;  %3231 = vmatprep.mubr.msk.f32.mxu0 %vm3416_vm2, %v3415_v0  ;;  %3398 = vmatprep.mubr.msk.f32.mxu1 %vm3416_vm2, %v3415_v0 }
 0x188   :  { %v2899_v6 = vpop.f32.mrf.mxu0  ;;  %v3066_v62 = vpop.f32.mrf.mxu1 }
 0x189   :  { %v1092_v62 = vld [vmem:[%s5397_s2 + $0x168] sm:$0xff] }
 0x18a   :  { %v4977_v34 = vpop.f32.mrf.mxu0  ;;  %v4979_v14 = vpop.f32.mrf.mxu1  ;;  %3232 = vmatmul.mubr.msk.f32.gmra.mxu0 %vm79_vm1, %v1091_v55  ;;  %3399 = vmatmul.mubr.msk.f32.gmra.mxu1 %vm79_vm1, %v1597_v20  ;;  %v1598_v6 = vld [vmem:[%s5398_s3 + $0x168] sm:$0xff] }
 0x18b   :  { %5490 = vst [vmem:[#allocation43_spill] sm:$0xff] %v4977_v34  ;;  %5491 = vst [vmem:[#allocation44_spill] sm:$0xff] %v4979_v14  ;;  %3234 = vmatprep.mubr.msk.f32.mxu0 %vm3416_vm2, %v3415_v0  ;;  %3401 = vmatprep.mubr.msk.f32.mxu1 %vm3416_vm2, %v3415_v0 }
 0x18c   :  { %v2902_v55 = vpop.f32.mrf.mxu0  ;;  %v3069_v48 = vpop.f32.mrf.mxu1 }
 0x18d   :  { %v1093_v48 = vld [vmem:[%s5397_s2 + $0x170] sm:$0xff] }
 0x18e   :  { %v4995_v20 = vpop.f32.mrf.mxu0  ;;  %v4997_v51 = vpop.f32.mrf.mxu1  ;;  %3235 = vmatmul.mubr.msk.f32.gmra.mxu0 %vm79_vm1, %v1092_v62  ;;  %3402 = vmatmul.mubr.msk.f32.gmra.mxu1 %vm79_vm1, %v1598_v6  ;;  %v1599_v55 = vld [vmem:[%s5398_s3 + $0x170] sm:$0xff] }
 0x18f   :  { %5492 = vst [vmem:[#allocation45_spill] sm:$0xff] %v4995_v20  ;;  %5493 = vst [vmem:[#allocation46_spill] sm:$0xff] %v4997_v51  ;;  %3237 = vmatprep.mubr.msk.f32.mxu0 %vm3416_vm2, %v3415_v0  ;;  %3404 = vmatprep.mubr.msk.f32.mxu1 %vm3416_vm2, %v3415_v0 }
 0x190   :  { %v2905_v62 = vpop.f32.mrf.mxu0  ;;  %v3072_v14 = vpop.f32.mrf.mxu1 }
 0x191   :  { %v1094_v14 = vld [vmem:[%s5397_s2 + $0x178] sm:$0xff] }
 0x192   :  { %v5013_v6 = vpop.f32.mrf.mxu0  ;;  %v5015_v34 = vpop.f32.mrf.mxu1  ;;  %3238 = vmatmul.mubr.msk.f32.gmra.mxu0 %vm79_vm1, %v1093_v48  ;;  %3405 = vmatmul.mubr.msk.f32.gmra.mxu1 %vm79_vm1, %v1599_v55  ;;  %v1600_v62 = vld [vmem:[%s5398_s3 + $0x178] sm:$0xff] }
 0x193   :  { %5494 = vst [vmem:[#allocation47_spill] sm:$0xff] %v5013_v6  ;;  %5495 = vst [vmem:[#allocation48_spill] sm:$0xff] %v5015_v34  ;;  %3240 = vmatprep.mubr.msk.f32.mxu0 %vm3416_vm2, %v3415_v0  ;;  %3407 = vmatprep.mubr.msk.f32.mxu1 %vm3416_vm2, %v3415_v0 }
 0x194   :  { %v2908_v48 = vpop.f32.mrf.mxu0  ;;  %v3075_v51 = vpop.f32.mrf.mxu1 }
 0x195   :  { %v1095_v51 = vld [vmem:[%s5397_s2 + $0x180] sm:$0xff] }
 0x196   :  { %v5031_v55 = vpop.f32.mrf.mxu0  ;;  %v5033_v20 = vpop.f32.mrf.mxu1  ;;  %3241 = vmatmul.mubr.msk.f32.gmra.mxu0 %vm79_vm1, %v1094_v14  ;;  %3408 = vmatmul.mubr.msk.f32.gmra.mxu1 %vm79_vm1, %v1600_v62  ;;  %v1601_v48 = vld [vmem:[%s5398_s3 + $0x180] sm:$0xff] }
 0x197   :  { %5496 = vst [vmem:[#allocation49_spill] sm:$0xff] %v5031_v55  ;;  %5497 = vst [vmem:[#allocation50_spill] sm:$0xff] %v5033_v20  ;;  %3243 = vmatprep.mubr.msk.f32.mxu0 %vm3416_vm2, %v3415_v0  ;;  %3410 = vmatprep.mubr.msk.f32.mxu1 %vm3416_vm2, %v3415_v0  ;;  %v5498_v0 = vmax.f32 %v4167_v46, %v4170_v47 }
 0x198   :  { %v2911_v14 = vpop.f32.mrf.mxu0  ;;  %v3078_v34 = vpop.f32.mrf.mxu1 }
 0x19a   :  { %v1309_v62 = vpop.f32.mrf.mxu0  ;;  %3244 = vmatmul.mubr.msk.f32.gmra.mxu0 %vm79_vm1, %v1095_v51  ;;  %v1815_v42 = vpop.f32.mrf.mxu1  ;;  %3411 = vmatmul.mubr.msk.f32.gmra.mxu1 %vm79_vm1, %v1601_v48 }
 0x19b   :  { %v2108_v20 = vmax.f32 %v1309_v62, %v1815_v42  ;;  %v5499_v42 = vmax.f32 %v4185_v53, %v4187_v54 }
 0x19c   :  { %v3101_v55 = vpop.f32.mrf.mxu0  ;;  %v3268_v6 = vpop.f32.mrf.mxu1 }
 0x19d   :  { %v2157_v13 = vmax.f32 %v5498_v0, %v2108_v20  ;;  %v5501_v0 = vmax.f32 %v4221_v4, %v4223_v5 }
 0x19e   :  { %v1314_v37 = vpop.f32.mrf.mxu0  ;;  %v1820_v27 = vpop.f32.mrf.mxu1 }
 0x19f   :  { %v2206_v15 = vmax.f32 %v2157_v13, 0.0  ;;  %v2109_v41 = vmax.f32 %v1314_v37, %v1820_v27  ;;  %v5500_v13 = vmax.f32 %v4203_v60, %v4205_v61 }
 0x1a0   :  { %v3104_v14 = vpop.f32.mrf.mxu0  ;;  %v3271_v34 = vpop.f32.mrf.mxu1 }
 0x1a1   :  { %2256 = vst.msk [vmem:[%s5399_s5] sm:$0xff] %vm2255_vm3, %v2206_v15  ;;  %v2158_v6 = vmax.f32 %v5499_v42, %v2109_v41 }
 0x1a2   :  { %v1319_v55 = vpop.f32.mrf.mxu0  ;;  %v1825_v51 = vpop.f32.mrf.mxu1 }
 0x1a3   :  { %v2207_v46 = vmax.f32 %v2158_v6, 0.0  ;;  %v2110_v47 = vmax.f32 %v1319_v55, %v1825_v51  ;;  %v5502_v51 = vmax.f32 %v4239_v11, %v4241_v12 }
 0x1a4   :  { %v3107_v20 = vpop.f32.mrf.mxu0  ;;  %v3274_v48 = vpop.f32.mrf.mxu1 }
 0x1a5   :  { %2257 = vst.msk [vmem:[%s5399_s5 + $0x8] sm:$0xff] %vm2255_vm3, %v2207_v46  ;;  %v2159_v27 = vmax.f32 %v5500_v13, %v2110_v47 }
 0x1a6   :  { %v1324_v15 = vpop.f32.mrf.mxu0  ;;  %v1830_v37 = vpop.f32.mrf.mxu1 }
 0x1a7   :  { %v2208_v62 = vmax.f32 %v2159_v27, 0.0  ;;  %v2111_v53 = vmax.f32 %v1324_v15, %v1830_v37  ;;  %v5503_v27 = vmax.f32 %v4257_v18, %v4259_v19 }
 0x1a8   :  { %v3110_v54 = vpop.f32.mrf.mxu0  ;;  %v3277_v41 = vpop.f32.mrf.mxu1 }
 0x1a9   :  { %2258 = vst.msk [vmem:[%s5399_s5 + $0x10] sm:$0xff] %vm2255_vm3, %v2208_v62  ;;  %v2160_v14 = vmax.f32 %v5501_v0, %v2111_v53  ;;  %v5504_v41 = vmax.f32 %v4275_v25, %v4277_v26 }
 0x1aa   :  { %v1329_v34 = vpop.f32.mrf.mxu0  ;;  %v1835_v42 = vpop.f32.mrf.mxu1 }
 0x1ab   :  { %v2209_v6 = vmax.f32 %v2160_v14, 0.0  ;;  %v2112_v60 = vmax.f32 %v1329_v34, %v1835_v42 }
 0x1ac   :  { %v3113_v61 = vpop.f32.mrf.mxu0  ;;  %v3280_v55 = vpop.f32.mrf.mxu1 }
 0x1ad   :  { %2259 = vst.msk [vmem:[%s5399_s5 + $0x18] sm:$0xff] %vm2255_vm3, %v2209_v6  ;;  %v2161_v46 = vmax.f32 %v5502_v51, %v2112_v60  ;;  %v5505_v60 = vmax.f32 %v4293_v32, %v4295_v33 }
 0x1ae   :  { %v1334_v47 = vpop.f32.mrf.mxu0  ;;  %v1840_v20 = vpop.f32.mrf.mxu1 }
 0x1af   :  { %v2210_v48 = vmax.f32 %v2161_v46, 0.0  ;;  %v2113_v4 = vmax.f32 %v1334_v47, %v1840_v20  ;;  %v5506_v20 = vmax.f32 %v4311_v39, %v4313_v40 }
 0x1b0   :  { %v3116_v5 = vpop.f32.mrf.mxu0  ;;  %v3283_v13 = vpop.f32.mrf.mxu1 }
 0x1b1   :  { %2260 = vst.msk [vmem:[%s5399_s5 + $0x20] sm:$0xff] %vm2255_vm3, %v2210_v48  ;;  %v2162_v15 = vmax.f32 %v5503_v27, %v2113_v4 }
 0x1b2   :  { %v1339_v37 = vpop.f32.mrf.mxu0  ;;  %v1845_v62 = vpop.f32.mrf.mxu1 }
 0x1b3   :  { %v2211_v53 = vmax.f32 %v2162_v15, 0.0  ;;  %v2114_v11 = vmax.f32 %v1339_v37, %v1845_v62  ;;  %v5507_v15 = vmax.f32 %v4329_v49, %v4331_v50 }
 0x1b4   :  { %v3119_v12 = vpop.f32.mrf.mxu0  ;;  %v3286_v54 = vpop.f32.mrf.mxu1 }
 0x1b5   :  { %2261 = vst.msk [vmem:[%s5399_s5 + $0x28] sm:$0xff] %vm2255_vm3, %v2211_v53  ;;  %v2163_v0 = vmax.f32 %v5504_v41, %v2114_v11  ;;  %v5508_v54 = vmax.f32 %v4347_v59, %v4349_v63 }
 0x1b6   :  { %v1344_v14 = vpop.f32.mrf.mxu0  ;;  %v1850_v34 = vpop.f32.mrf.mxu1 }
 0x1b7   :  { %v2212_v42 = vmax.f32 %v2163_v0, 0.0  ;;  %v2115_v18 = vmax.f32 %v1344_v14, %v1850_v34 }
 0x1b8   :  { %v3122_v19 = vpop.f32.mrf.mxu0  ;;  %v3289_v6 = vpop.f32.mrf.mxu1 }
 0x1b9   :  { %2262 = vst.msk [vmem:[%s5399_s5 + $0x30] sm:$0xff] %vm2255_vm3, %v2212_v42  ;;  %v2164_v61 = vmax.f32 %v5505_v60, %v2115_v18  ;;  %v5509_v18 = vmax.f32 %v4365_v9, %v4367_v10 }
 0x1ba   :  { %v1349_v55 = vpop.f32.mrf.mxu0  ;;  %v1855_v51 = vpop.f32.mrf.mxu1 }
 0x1bb   :  { %v2213_v46 = vmax.f32 %v2164_v61, 0.0  ;;  %v2116_v25 = vmax.f32 %v1349_v55, %v1855_v51  ;;  %v5510_v51 = vmax.f32 %v4383_v22, %v4385_v23 }
 0x1bc   :  { %v3125_v26 = vpop.f32.mrf.mxu0  ;;  %v3292_v47 = vpop.f32.mrf.mxu1 }
 0x1bd   :  { %2263 = vst.msk [vmem:[%s5399_s5 + $0x38] sm:$0xff] %vm2255_vm3, %v2213_v46  ;;  %v2165_v48 = vmax.f32 %v5506_v20, %v2116_v25 }
 0x1be   :  { %v1354_v4 = vpop.f32.mrf.mxu0  ;;  %v1860_v5 = vpop.f32.mrf.mxu1 }
 0x1bf   :  { %v2214_v13 = vmax.f32 %v2165_v48, 0.0  ;;  %v2117_v32 = vmax.f32 %v1354_v4, %v1860_v5  ;;  %v5511_v48 = vmax.f32 %v4401_v35, %v4403_v36 }
 0x1c0   :  { %v3128_v33 = vpop.f32.mrf.mxu0  ;;  %v3295_v27 = vpop.f32.mrf.mxu1 }
 0x1c1   :  { %2264 = vst.msk [vmem:[%s5399_s5 + $0x40] sm:$0xff] %vm2255_vm3, %v2214_v13  ;;  %v2166_v37 = vmax.f32 %v5507_v15, %v2117_v32  ;;  %v5512_v27 = vmax.f32 %v4419_v45, %v4421_v52 }
 0x1c2   :  { %v1359_v62 = vpop.f32.mrf.mxu0  ;;  %v1865_v53 = vpop.f32.mrf.mxu1 }
 0x1c3   :  { %v2215_v11 = vmax.f32 %v2166_v37, 0.0  ;;  %v2118_v39 = vmax.f32 %v1359_v62, %v1865_v53 }
 0x1c4   :  { %v3131_v40 = vpop.f32.mrf.mxu0  ;;  %v3298_v12 = vpop.f32.mrf.mxu1 }
 0x1c5   :  { %2265 = vst.msk [vmem:[%s5399_s5 + $0x48] sm:$0xff] %vm2255_vm3, %v2215_v11  ;;  %v2167_v41 = vmax.f32 %v5508_v54, %v2118_v39  ;;  %v5513_v39 = vmax.f32 %v4437_v7, %v4439_v8 }
 0x1c6   :  { %v1364_v0 = vpop.f32.mrf.mxu0  ;;  %v1870_v14 = vpop.f32.mrf.mxu1 }
 0x1c7   :  { %v2216_v34 = vmax.f32 %v2167_v41, 0.0  ;;  %v2119_v49 = vmax.f32 %v1364_v0, %v1870_v14  ;;  %v5514_v14 = vmax.f32 %v4455_v29, %v4457_v30 }
 0x1c8   :  { %v3134_v50 = vpop.f32.mrf.mxu0  ;;  %v3301_v42 = vpop.f32.mrf.mxu1 }
 0x1c9   :  { %2266 = vst.msk [vmem:[%s5399_s5 + $0x50] sm:$0xff] %vm2255_vm3, %v2216_v34  ;;  %v2168_v19 = vmax.f32 %v5509_v18, %v2119_v49 }
 0x1ca   :  { %v1369_v6 = vpop.f32.mrf.mxu0  ;;  %v1875_v60 = vpop.f32.mrf.mxu1 }
 0x1cb   :  { %v2217_v61 = vmax.f32 %v2168_v19, 0.0  ;;  %v2120_v59 = vmax.f32 %v1369_v6, %v1875_v60  ;;  %v5515_v19 = vmax.f32 %v4473_v57, %v4475_v58 }
 0x1cc   :  { %v3137_v63 = vpop.f32.mrf.mxu0  ;;  %v3304_v55 = vpop.f32.mrf.mxu1 }
 0x1cd   :  { %2267 = vst.msk [vmem:[%s5399_s5 + $0x58] sm:$0xff] %vm2255_vm3, %v2217_v61  ;;  %v2169_v46 = vmax.f32 %v5510_v51, %v2120_v59  ;;  %v5516_v55 = vmax.f32 %v4491_v28, %v4493_v38 }
 0x1ce   :  { %v1374_v25 = vpop.f32.mrf.mxu0  ;;  %v1880_v26 = vpop.f32.mrf.mxu1 }
 0x1cf   :  { %v2218_v47 = vmax.f32 %v2169_v46, 0.0  ;;  %v2121_v9 = vmax.f32 %v1374_v25, %v1880_v26 }
 0x1d0   :  { %v3140_v10 = vpop.f32.mrf.mxu0  ;;  %v3307_v20 = vpop.f32.mrf.mxu1 }
 0x1d1   :  { %2268 = vst.msk [vmem:[%s5399_s5 + $0x60] sm:$0xff] %vm2255_vm3, %v2218_v47  ;;  %v2170_v4 = vmax.f32 %v5511_v48, %v2121_v9  ;;  %v5517_v9 = vmax.f32 %v4509_v16, %v4511_v21 }
 0x1d2   :  { %v1379_v5 = vpop.f32.mrf.mxu0  ;;  %v1885_v13 = vpop.f32.mrf.mxu1 }
 0x1d3   :  { %v2219_v32 = vmax.f32 %v2170_v4, 0.0  ;;  %v2122_v22 = vmax.f32 %v1379_v5, %v1885_v13  ;;  %v5518_v13 = vmax.f32 %v4527_v44, %v4529_v31 }
 0x1d4   :  { %v3143_v23 = vpop.f32.mrf.mxu0  ;;  %v3310_v33 = vpop.f32.mrf.mxu1 }
 0x1d5   :  { %2269 = vst.msk [vmem:[%s5399_s5 + $0x68] sm:$0xff] %vm2255_vm3, %v2219_v32  ;;  %v2171_v15 = vmax.f32 %v5512_v27, %v2122_v22 }
 0x1d6   :  { %v1384_v37 = vpop.f32.mrf.mxu0  ;;  %v1890_v62 = vpop.f32.mrf.mxu1 }
 0x1d7   :  { %v2220_v53 = vmax.f32 %v2171_v15, 0.0  ;;  %v2123_v35 = vmax.f32 %v1384_v37, %v1890_v62  ;;  %v5519_v15 = vmax.f32 %v4545_v17, %v4547_v56 }
 0x1d8   :  { %v3146_v36 = vpop.f32.mrf.mxu0  ;;  %v3313_v11 = vpop.f32.mrf.mxu1 }
 0x1d9   :  { %2270 = vst.msk [vmem:[%s5399_s5 + $0x70] sm:$0xff] %vm2255_vm3, %v2220_v53  ;;  %v2172_v40 = vmax.f32 %v5513_v39, %v2123_v35  ;;  %v5520_v11 = vmax.f32 %v4563_v43, %v4565_v24 }
 0x1da   :  { %v1389_v12 = vpop.f32.mrf.mxu0  ;;  %v1895_v54 = vpop.f32.mrf.mxu1 }
 0x1db   :  { %v2221_v41 = vmax.f32 %v2172_v40, 0.0  ;;  %v2124_v45 = vmax.f32 %v1389_v12, %v1895_v54 }
 0x1dc   :  { %v3149_v52 = vpop.f32.mrf.mxu0  ;;  %v3316_v0 = vpop.f32.mrf.mxu1 }
 0x1dd   :  { %2271 = vst.msk [vmem:[%s5399_s5 + $0x78] sm:$0xff] %vm2255_vm3, %v2221_v41  ;;  %v2173_v34 = vmax.f32 %v5514_v14, %v2124_v45  ;;  %v5521_v45 = vmax.f32 %v4581_v3, %v4583_v1 }
 0x1de   :  { %v1394_v49 = vpop.f32.mrf.mxu0  ;;  %v1900_v50 = vpop.f32.mrf.mxu1 }
 0x1df   :  { %v2222_v42 = vmax.f32 %v2173_v34, 0.0  ;;  %v2125_v7 = vmax.f32 %v1394_v49, %v1900_v50  ;;  %v5522_v50 = vld [vmem:[#allocation2_spill] sm:$0xff] }
 0x1e0   :  { %v3152_v8 = vpop.f32.mrf.mxu0  ;;  %v3319_v18 = vpop.f32.mrf.mxu1 }
 0x1e1   :  { %2272 = vst.msk [vmem:[%s5399_s5 + $0x80] sm:$0xff] %vm2255_vm3, %v2222_v42  ;;  %v2174_v6 = vmax.f32 %v5515_v19, %v2125_v7  ;;  %v5523_v42 = vmax.f32 %v4599_v2, %v5522_v50 }
 0x1e2   :  { %v1399_v60 = vpop.f32.mrf.mxu0  ;;  %v1905_v61 = vpop.f32.mrf.mxu1 }
 0x1e3   :  { %v2223_v59 = vmax.f32 %v2174_v6, 0.0  ;;  %v2126_v29 = vmax.f32 %v1399_v60, %v1905_v61  ;;  %v5524_v60 = vld [vmem:[#allocation3_spill] sm:$0xff]  ;;  %v5525_v61 = vld [vmem:[#allocation4_spill] sm:$0xff] }
 0x1e4   :  { %v3155_v30 = vpop.f32.mrf.mxu0  ;;  %v3322_v63 = vpop.f32.mrf.mxu1 }
 0x1e5   :  { %2273 = vst.msk [vmem:[%s5399_s5 + $0x88] sm:$0xff] %vm2255_vm3, %v2223_v59  ;;  %v2175_v51 = vmax.f32 %v5516_v55, %v2126_v29  ;;  %v5526_v59 = vmax.f32 %v5524_v60, %v5525_v61 }
 0x1e6   :  { %v1404_v46 = vpop.f32.mrf.mxu0  ;;  %v1910_v25 = vpop.f32.mrf.mxu1 }
 0x1e7   :  { %v2224_v26 = vmax.f32 %v2175_v51, 0.0  ;;  %v2127_v57 = vmax.f32 %v1404_v46, %v1910_v25  ;;  %v5527_v25 = vld [vmem:[#allocation5_spill] sm:$0xff] }
 0x1e8   :  { %v3158_v58 = vpop.f32.mrf.mxu0  ;;  %v3325_v47 = vpop.f32.mrf.mxu1 }
 0x1e9   :  { %2274 = vst.msk [vmem:[%s5399_s5 + $0x90] sm:$0xff] %vm2255_vm3, %v2224_v26  ;;  %v2176_v10 = vmax.f32 %v5517_v9, %v2127_v57  ;;  %v5528_v26 = vld [vmem:[#allocation6_spill] sm:$0xff] }
 0x1ea   :  { %v1409_v20 = vpop.f32.mrf.mxu0  ;;  %v1915_v48 = vpop.f32.mrf.mxu1  ;;  %v5529_v57 = vmax.f32 %v5527_v25, %v5528_v26 }
 0x1eb   :  { %v2225_v4 = vmax.f32 %v2176_v10, 0.0  ;;  %v2128_v28 = vmax.f32 %v1409_v20, %v1915_v48 }
 0x1ec   :  { %v3161_v38 = vpop.f32.mrf.mxu0  ;;  %v3328_v5 = vpop.f32.mrf.mxu1 }
 0x1ed   :  { %2275 = vst.msk [vmem:[%s5399_s5 + $0x98] sm:$0xff] %vm2255_vm3, %v2225_v4  ;;  %v2177_v32 = vmax.f32 %v5518_v13, %v2128_v28  ;;  %v5530_v28 = vld [vmem:[#allocation7_spill] sm:$0xff]  ;;  %v5531_v38 = vld [vmem:[#allocation8_spill] sm:$0xff] }
 0x1ee   :  { %v1414_v22 = vpop.f32.mrf.mxu0  ;;  %v1920_v23 = vpop.f32.mrf.mxu1  ;;  %v5532_v5 = vmax.f32 %v5530_v28, %v5531_v38 }
 0x1ef   :  { %v2226_v33 = vmax.f32 %v2177_v32, 0.0  ;;  %v2129_v16 = vmax.f32 %v1414_v22, %v1920_v23 }
 0x1f0   :  { %v3164_v21 = vpop.f32.mrf.mxu0  ;;  %v3331_v27 = vpop.f32.mrf.mxu1 }
 0x1f1   :  { %2276 = vst.msk [vmem:[%s5399_s5 + $0xa0] sm:$0xff] %vm2255_vm3, %v2226_v33  ;;  %v2178_v37 = vmax.f32 %v5519_v15, %v2129_v16  ;;  %v5533_v27 = vld [vmem:[#allocation9_spill] sm:$0xff]  ;;  %v5534_v15 = vld [vmem:[#allocation10_spill] sm:$0xff] }
 0x1f2   :  { %v1419_v62 = vpop.f32.mrf.mxu0  ;;  %v1925_v53 = vpop.f32.mrf.mxu1 }
 0x1f3   :  { %v2227_v35 = vmax.f32 %v2178_v37, 0.0  ;;  %v2130_v31 = vmax.f32 %v1419_v62, %v1925_v53  ;;  %v5535_v37 = vmax.f32 %v5533_v27, %v5534_v15 }
 0x1f4   :  { %v3167_v44 = vpop.f32.mrf.mxu0  ;;  %v3334_v36 = vpop.f32.mrf.mxu1 }
 0x1f5   :  { %2277 = vst.msk [vmem:[%s5399_s5 + $0xa8] sm:$0xff] %vm2255_vm3, %v2227_v35  ;;  %v2179_v39 = vmax.f32 %v5520_v11, %v2130_v31 }
 0x1f6   :  { %v1424_v40 = vpop.f32.mrf.mxu0  ;;  %v1930_v12 = vpop.f32.mrf.mxu1 }
 0x1f7   :  { %v2228_v54 = vmax.f32 %v2179_v39, 0.0  ;;  %v2131_v56 = vmax.f32 %v1424_v40, %v1930_v12  ;;  %v5536_v39 = vld [vmem:[#allocation11_spill] sm:$0xff]  ;;  %v5537_v40 = vld [vmem:[#allocation12_spill] sm:$0xff] }
 0x1f8   :  { %v3170_v17 = vpop.f32.mrf.mxu0  ;;  %v3337_v41 = vpop.f32.mrf.mxu1  ;;  %v5538_v12 = vmax.f32 %v5536_v39, %v5537_v40 }
 0x1f9   :  { %2278 = vst.msk [vmem:[%s5399_s5 + $0xb0] sm:$0xff] %vm2255_vm3, %v2228_v54  ;;  %v2180_v52 = vmax.f32 %v5521_v45, %v2131_v56 }
 0x1fa   :  { %v1429_v0 = vpop.f32.mrf.mxu0  ;;  %v1935_v14 = vpop.f32.mrf.mxu1 }
 0x1fb   :  { %v2229_v34 = vmax.f32 %v2180_v52, 0.0  ;;  %v2132_v24 = vmax.f32 %v1429_v0, %v1935_v14  ;;  %v5539_v14 = vld [vmem:[#allocation13_spill] sm:$0xff] }
 0x1fc   :  { %v3173_v43 = vpop.f32.mrf.mxu0  ;;  %v3340_v49 = vpop.f32.mrf.mxu1 }
 0x1fd   :  { %2279 = vst.msk [vmem:[%s5399_s5 + $0xb8] sm:$0xff] %vm2255_vm3, %v2229_v34  ;;  %v2181_v7 = vmax.f32 %v5523_v42, %v2132_v24  ;;  %v5540_v34 = vld [vmem:[#allocation14_spill] sm:$0xff] }
 0x1fe   :  { %v1434_v8 = vpop.f32.mrf.mxu0  ;;  %v1940_v18 = vpop.f32.mrf.mxu1  ;;  %v5541_v24 = vmax.f32 %v5539_v14, %v5540_v34 }
 0x1ff   :  { %v2230_v19 = vmax.f32 %v2181_v7, 0.0  ;;  %v2133_v1 = vmax.f32 %v1434_v8, %v1940_v18 }
 0x200   :  { %v3176_v3 = vpop.f32.mrf.mxu0  ;;  %v3343_v6 = vpop.f32.mrf.mxu1 }
 0x201   :  { %2280 = vst.msk [vmem:[%s5399_s5 + $0xc0] sm:$0xff] %vm2255_vm3, %v2230_v19  ;;  %v2182_v29 = vmax.f32 %v5526_v59, %v2133_v1  ;;  %v5542_v19 = vld [vmem:[#allocation15_spill] sm:$0xff]  ;;  %v5543_v1 = vld [vmem:[#allocation16_spill] sm:$0xff] }
 0x202   :  { %v1439_v30 = vpop.f32.mrf.mxu0  ;;  %v1945_v63 = vpop.f32.mrf.mxu1  ;;  %v5544_v3 = vmax.f32 %v5542_v19, %v5543_v1 }
 0x203   :  { %v2231_v55 = vmax.f32 %v2182_v29, 0.0  ;;  %v2134_v2 = vmax.f32 %v1439_v30, %v1945_v63 }
 0x204   :  { %v3179_v51 = vpop.f32.mrf.mxu0  ;;  %v3346_v46 = vpop.f32.mrf.mxu1 }
 0x205   :  { %2281 = vst.msk [vmem:[%s5399_s5 + $0xc8] sm:$0xff] %vm2255_vm3, %v2231_v55  ;;  %v2183_v58 = vmax.f32 %v5529_v57, %v2134_v2  ;;  %v5545_v55 = vld [vmem:[#allocation17_spill] sm:$0xff]  ;;  %v5546_v2 = vld [vmem:[#allocation18_spill] sm:$0xff] }
 0x206   :  { %v1444_v47 = vpop.f32.mrf.mxu0  ;;  %v1950_v9 = vpop.f32.mrf.mxu1  ;;  %v5547_v51 = vmax.f32 %v5545_v55, %v5546_v2 }
 0x207   :  { %v2232_v10 = vmax.f32 %v2183_v58, 0.0  ;;  %v2135_v20 = vmax.f32 %v1444_v47, %v1950_v9 }
 0x208   :  { %v3182_v48 = vpop.f32.mrf.mxu0  ;;  %v3349_v4 = vpop.f32.mrf.mxu1 }
 0x209   :  { %2282 = vst.msk [vmem:[%s5399_s5 + $0xd0] sm:$0xff] %vm2255_vm3, %v2232_v10  ;;  %v2184_v13 = vmax.f32 %v5532_v5, %v2135_v20  ;;  %v5548_v10 = vld [vmem:[#allocation19_spill] sm:$0xff]  ;;  %v5549_v20 = vld [vmem:[#allocation20_spill] sm:$0xff] }
 0x20a   :  { %v1449_v32 = vpop.f32.mrf.mxu0  ;;  %v1955_v22 = vpop.f32.mrf.mxu1  ;;  %v5550_v48 = vmax.f32 %v5548_v10, %v5549_v20 }
 0x20b   :  { %v2233_v23 = vmax.f32 %v2184_v13, 0.0  ;;  %v2136_v33 = vmax.f32 %v1449_v32, %v1955_v22 }
 0x20c   :  { %v3185_v16 = vpop.f32.mrf.mxu0  ;;  %v3352_v21 = vpop.f32.mrf.mxu1 }
 0x20d   :  { %2283 = vst.msk [vmem:[%s5399_s5 + $0xd8] sm:$0xff] %vm2255_vm3, %v2233_v23  ;;  %v2185_v62 = vmax.f32 %v5535_v37, %v2136_v33  ;;  %v5551_v23 = vld [vmem:[#allocation21_spill] sm:$0xff]  ;;  %v5552_v33 = vld [vmem:[#allocation22_spill] sm:$0xff] }
 0x20e   :  { %v1454_v53 = vpop.f32.mrf.mxu0  ;;  %v1960_v35 = vpop.f32.mrf.mxu1  ;;  %v5553_v16 = vmax.f32 %v5551_v23, %v5552_v33 }
 0x20f   :  { %v2234_v31 = vmax.f32 %v2185_v62, 0.0  ;;  %v2137_v44 = vmax.f32 %v1454_v53, %v1960_v35 }
 0x210   :  { %v3188_v36 = vpop.f32.mrf.mxu0  ;;  %v3355_v11 = vpop.f32.mrf.mxu1 }
 0x211   :  { %2284 = vst.msk [vmem:[%s5399_s5 + $0xe0] sm:$0xff] %vm2255_vm3, %v2234_v31  ;;  %v2186_v54 = vmax.f32 %v5538_v12, %v2137_v44  ;;  %v5554_v31 = vld [vmem:[#allocation23_spill] sm:$0xff]  ;;  %v5555_v44 = vld [vmem:[#allocation24_spill] sm:$0xff] }
 0x212   :  { %v1459_v56 = vpop.f32.mrf.mxu0  ;;  %v1965_v17 = vpop.f32.mrf.mxu1  ;;  %v5556_v36 = vmax.f32 %v5554_v31, %v5555_v44 }
 0x213   :  { %v2235_v41 = vmax.f32 %v2186_v54, 0.0  ;;  %v2138_v45 = vmax.f32 %v1459_v56, %v1965_v17 }
 0x214   :  { %v3191_v52 = vpop.f32.mrf.mxu0  ;;  %v3358_v0 = vpop.f32.mrf.mxu1 }
 0x215   :  { %2285 = vst.msk [vmem:[%s5399_s5 + $0xe8] sm:$0xff] %vm2255_vm3, %v2235_v41  ;;  %v2187_v43 = vmax.f32 %v5541_v24, %v2138_v45  ;;  %v5557_v41 = vld [vmem:[#allocation25_spill] sm:$0xff]  ;;  %v5558_v45 = vld [vmem:[#allocation26_spill] sm:$0xff] }
 0x216   :  { %v1464_v49 = vpop.f32.mrf.mxu0  ;;  %v1970_v50 = vpop.f32.mrf.mxu1  ;;  %v5559_v52 = vmax.f32 %v5557_v41, %v5558_v45 }
 0x217   :  { %v2236_v42 = vmax.f32 %v2187_v43, 0.0  ;;  %v2139_v7 = vmax.f32 %v1464_v49, %v1970_v50 }
 0x218   :  { %v3194_v8 = vpop.f32.mrf.mxu0  ;;  %v3361_v18 = vpop.f32.mrf.mxu1 }
 0x219   :  { %2286 = vst.msk [vmem:[%s5399_s5 + $0xf0] sm:$0xff] %vm2255_vm3, %v2236_v42  ;;  %v2188_v6 = vmax.f32 %v5544_v3, %v2139_v7  ;;  %v5560_v42 = vld [vmem:[#allocation27_spill] sm:$0xff]  ;;  %v5561_v7 = vld [vmem:[#allocation28_spill] sm:$0xff] }
 0x21a   :  { %v1469_v60 = vpop.f32.mrf.mxu0  ;;  %v1975_v61 = vpop.f32.mrf.mxu1  ;;  %v5562_v8 = vmax.f32 %v5560_v42, %v5561_v7 }
 0x21b   :  { %v2237_v59 = vmax.f32 %v2188_v6, 0.0  ;;  %v2140_v29 = vmax.f32 %v1469_v60, %v1975_v61 }
 0x21c   :  { %v3197_v30 = vpop.f32.mrf.mxu0  ;;  %v3364_v63 = vpop.f32.mrf.mxu1 }
 0x21d   :  { %2287 = vst.msk [vmem:[%s5399_s5 + $0xf8] sm:$0xff] %vm2255_vm3, %v2237_v59  ;;  %v2189_v46 = vmax.f32 %v5547_v51, %v2140_v29  ;;  %v5563_v59 = vld [vmem:[#allocation29_spill] sm:$0xff]  ;;  %v5564_v29 = vld [vmem:[#allocation30_spill] sm:$0xff] }
 0x21e   :  { %v1474_v25 = vpop.f32.mrf.mxu0  ;;  %v1980_v26 = vpop.f32.mrf.mxu1  ;;  %v5565_v30 = vmax.f32 %v5563_v59, %v5564_v29 }
 0x21f   :  { %v2238_v57 = vmax.f32 %v2189_v46, 0.0  ;;  %v2141_v58 = vmax.f32 %v1474_v25, %v1980_v26 }
 0x220   :  { %v3200_v47 = vpop.f32.mrf.mxu0  ;;  %v3367_v9 = vpop.f32.mrf.mxu1 }
 0x221   :  { %2288 = vst.msk [vmem:[%s5399_s5 + $0x100] sm:$0xff] %vm2255_vm3, %v2238_v57  ;;  %v2190_v4 = vmax.f32 %v5550_v48, %v2141_v58  ;;  %v5566_v57 = vld [vmem:[#allocation31_spill] sm:$0xff]  ;;  %v5567_v58 = vld [vmem:[#allocation32_spill] sm:$0xff] }
 0x222   :  { %v1479_v28 = vpop.f32.mrf.mxu0  ;;  %v1985_v38 = vpop.f32.mrf.mxu1  ;;  %v5568_v47 = vmax.f32 %v5566_v57, %v5567_v58 }
 0x223   :  { %v2239_v5 = vmax.f32 %v2190_v4, 0.0  ;;  %v2142_v13 = vmax.f32 %v1479_v28, %v1985_v38 }
 0x224   :  { %v3203_v32 = vpop.f32.mrf.mxu0  ;;  %v3370_v22 = vpop.f32.mrf.mxu1 }
 0x225   :  { %2289 = vst.msk [vmem:[%s5399_s5 + $0x108] sm:$0xff] %vm2255_vm3, %v2239_v5  ;;  %v2191_v21 = vmax.f32 %v5553_v16, %v2142_v13  ;;  %v5569_v5 = vld [vmem:[#allocation33_spill] sm:$0xff]  ;;  %v5570_v13 = vld [vmem:[#allocation34_spill] sm:$0xff] }
 0x226   :  { %v1484_v27 = vpop.f32.mrf.mxu0  ;;  %v1990_v15 = vpop.f32.mrf.mxu1  ;;  %v5571_v32 = vmax.f32 %v5569_v5, %v5570_v13 }
 0x227   :  { %v2240_v37 = vmax.f32 %v2191_v21, 0.0  ;;  %v2143_v62 = vmax.f32 %v1484_v27, %v1990_v15 }
 0x228   :  { %v3206_v53 = vpop.f32.mrf.mxu0  ;;  %v3373_v35 = vpop.f32.mrf.mxu1 }
 0x229   :  { %2290 = vst.msk [vmem:[%s5399_s5 + $0x110] sm:$0xff] %vm2255_vm3, %v2240_v37  ;;  %v2192_v11 = vmax.f32 %v5556_v36, %v2143_v62  ;;  %v5572_v37 = vld [vmem:[#allocation35_spill] sm:$0xff]  ;;  %v5573_v62 = vld [vmem:[#allocation36_spill] sm:$0xff] }
 0x22a   :  { %v1489_v39 = vpop.f32.mrf.mxu0  ;;  %v1995_v40 = vpop.f32.mrf.mxu1  ;;  %v5574_v53 = vmax.f32 %v5572_v37, %v5573_v62 }
 0x22b   :  { %v2241_v12 = vmax.f32 %v2192_v11, 0.0  ;;  %v2144_v54 = vmax.f32 %v1489_v39, %v1995_v40 }
 0x22c   :  { %v3209_v56 = vpop.f32.mrf.mxu0  ;;  %v3376_v17 = vpop.f32.mrf.mxu1 }
 0x22d   :  { %2291 = vst.msk [vmem:[%s5399_s5 + $0x118] sm:$0xff] %vm2255_vm3, %v2241_v12  ;;  %v2193_v0 = vmax.f32 %v5559_v52, %v2144_v54  ;;  %v5575_v12 = vld [vmem:[#allocation37_spill] sm:$0xff]  ;;  %v5576_v54 = vld [vmem:[#allocation38_spill] sm:$0xff] }
 0x22e   :  { %v1494_v14 = vpop.f32.mrf.mxu0  ;;  %v2000_v34 = vpop.f32.mrf.mxu1  ;;  %v5577_v56 = vmax.f32 %v5575_v12, %v5576_v54 }
 0x22f   :  { %v2242_v24 = vmax.f32 %v2193_v0, 0.0  ;;  %v2145_v43 = vmax.f32 %v1494_v14, %v2000_v34 }
 0x230   :  { %v3212_v49 = vpop.f32.mrf.mxu0  ;;  %v3379_v50 = vpop.f32.mrf.mxu1 }
 0x231   :  { %2292 = vst.msk [vmem:[%s5399_s5 + $0x120] sm:$0xff] %vm2255_vm3, %v2242_v24  ;;  %v2194_v18 = vmax.f32 %v5562_v8, %v2145_v43  ;;  %v5578_v24 = vld [vmem:[#allocation39_spill] sm:$0xff]  ;;  %v5579_v43 = vld [vmem:[#allocation40_spill] sm:$0xff] }
 0x232   :  { %v1499_v19 = vpop.f32.mrf.mxu0  ;;  %v2005_v1 = vpop.f32.mrf.mxu1  ;;  %v5580_v49 = vmax.f32 %v5578_v24, %v5579_v43 }
 0x233   :  { %v2243_v3 = vmax.f32 %v2194_v18, 0.0  ;;  %v2146_v6 = vmax.f32 %v1499_v19, %v2005_v1 }
 0x234   :  { %v3215_v60 = vpop.f32.mrf.mxu0  ;;  %v3382_v61 = vpop.f32.mrf.mxu1 }
 0x235   :  { %2293 = vst.msk [vmem:[%s5399_s5 + $0x128] sm:$0xff] %vm2255_vm3, %v2243_v3  ;;  %v2195_v63 = vmax.f32 %v5565_v30, %v2146_v6  ;;  %v5581_v3 = vld [vmem:[#allocation41_spill] sm:$0xff]  ;;  %v5582_v6 = vld [vmem:[#allocation42_spill] sm:$0xff] }
 0x236   :  { %v1504_v55 = vpop.f32.mrf.mxu0  ;;  %v2010_v2 = vpop.f32.mrf.mxu1  ;;  %v5583_v60 = vmax.f32 %v5581_v3, %v5582_v6 }
 0x237   :  { %v2244_v51 = vmax.f32 %v2195_v63, 0.0  ;;  %v2147_v46 = vmax.f32 %v1504_v55, %v2010_v2 }
 0x238   :  { %v3218_v25 = vpop.f32.mrf.mxu0  ;;  %v3385_v26 = vpop.f32.mrf.mxu1 }
 0x239   :  { %2294 = vst.msk [vmem:[%s5399_s5 + $0x130] sm:$0xff] %vm2255_vm3, %v2244_v51  ;;  %v2196_v9 = vmax.f32 %v5568_v47, %v2147_v46  ;;  %v5584_v51 = vld [vmem:[#allocation43_spill] sm:$0xff]  ;;  %v5585_v46 = vld [vmem:[#allocation44_spill] sm:$0xff] }
 0x23a   :  { %v1509_v10 = vpop.f32.mrf.mxu0  ;;  %v2015_v20 = vpop.f32.mrf.mxu1  ;;  %v5586_v25 = vmax.f32 %v5584_v51, %v5585_v46 }
 0x23b   :  { %v2245_v48 = vmax.f32 %v2196_v9, 0.0  ;;  %v2148_v4 = vmax.f32 %v1509_v10, %v2015_v20 }
 0x23c   :  { %v3221_v28 = vpop.f32.mrf.mxu0  ;;  %v3388_v38 = vpop.f32.mrf.mxu1 }
 0x23d   :  { %2295 = vst.msk [vmem:[%s5399_s5 + $0x138] sm:$0xff] %vm2255_vm3, %v2245_v48  ;;  %v2197_v22 = vmax.f32 %v5571_v32, %v2148_v4  ;;  %v5587_v48 = vld [vmem:[#allocation45_spill] sm:$0xff]  ;;  %v5588_v4 = vld [vmem:[#allocation46_spill] sm:$0xff] }
 0x23e   :  { %v1514_v23 = vpop.f32.mrf.mxu0  ;;  %v2020_v33 = vpop.f32.mrf.mxu1  ;;  %v5589_v28 = vmax.f32 %v5587_v48, %v5588_v4 }
 0x23f   :  { %v2246_v16 = vmax.f32 %v2197_v22, 0.0  ;;  %v2149_v21 = vmax.f32 %v1514_v23, %v2020_v33 }
 0x240   :  { %v3224_v27 = vpop.f32.mrf.mxu0  ;;  %v3391_v15 = vpop.f32.mrf.mxu1 }
 0x241   :  { %2296 = vst.msk [vmem:[%s5399_s5 + $0x140] sm:$0xff] %vm2255_vm3, %v2246_v16  ;;  %v2198_v35 = vmax.f32 %v5574_v53, %v2149_v21  ;;  %v5590_v16 = vld [vmem:[#allocation47_spill] sm:$0xff]  ;;  %v5591_v21 = vld [vmem:[#allocation48_spill] sm:$0xff] }
 0x242   :  { %v1519_v31 = vpop.f32.mrf.mxu0  ;;  %v2025_v44 = vpop.f32.mrf.mxu1  ;;  %v5592_v27 = vmax.f32 %v5590_v16, %v5591_v21 }
 0x243   :  { %v2247_v36 = vmax.f32 %v2198_v35, 0.0  ;;  %v2150_v11 = vmax.f32 %v1519_v31, %v2025_v44 }
 0x244   :  { %v3227_v39 = vpop.f32.mrf.mxu0  ;;  %v3394_v40 = vpop.f32.mrf.mxu1 }
 0x245   :  { %2297 = vst.msk [vmem:[%s5399_s5 + $0x148] sm:$0xff] %vm2255_vm3, %v2247_v36  ;;  %v2199_v17 = vmax.f32 %v5577_v56, %v2150_v11  ;;  %v5593_v36 = vld [vmem:[#allocation49_spill] sm:$0xff]  ;;  %v5594_v11 = vld [vmem:[#allocation50_spill] sm:$0xff] }
 0x246   :  { %v1524_v41 = vpop.f32.mrf.mxu0  ;;  %v2030_v45 = vpop.f32.mrf.mxu1  ;;  %v5595_v39 = vmax.f32 %v5593_v36, %v5594_v11 }
 0x247   :  { %v2248_v52 = vmax.f32 %v2199_v17, 0.0  ;;  %v2151_v0 = vmax.f32 %v1524_v41, %v2030_v45 }
 0x248   :  { %v3230_v14 = vpop.f32.mrf.mxu0  ;;  %v3397_v34 = vpop.f32.mrf.mxu1 }
 0x249   :  { %2298 = vst.msk [vmem:[%s5399_s5 + $0x150] sm:$0xff] %vm2255_vm3, %v2248_v52  ;;  %v2200_v50 = vmax.f32 %v5580_v49, %v2151_v0 }
 0x24a   :  { %v1529_v42 = vpop.f32.mrf.mxu0  ;;  %v2035_v7 = vpop.f32.mrf.mxu1 }
 0x24b   :  { %v2249_v8 = vmax.f32 %v2200_v50, 0.0  ;;  %v2152_v18 = vmax.f32 %v1529_v42, %v2035_v7 }
 0x24c   :  { %v3233_v19 = vpop.f32.mrf.mxu0  ;;  %v3400_v1 = vpop.f32.mrf.mxu1 }
 0x24d   :  { %2299 = vst.msk [vmem:[%s5399_s5 + $0x158] sm:$0xff] %vm2255_vm3, %v2249_v8  ;;  %v2201_v61 = vmax.f32 %v5583_v60, %v2152_v18 }
 0x24e   :  { %v1534_v59 = vpop.f32.mrf.mxu0  ;;  %v2040_v29 = vpop.f32.mrf.mxu1 }
 0x24f   :  { %v2250_v30 = vmax.f32 %v2201_v61, 0.0  ;;  %v2153_v63 = vmax.f32 %v1534_v59, %v2040_v29 }
 0x250   :  { %v3236_v55 = vpop.f32.mrf.mxu0  ;;  %v3403_v2 = vpop.f32.mrf.mxu1 }
 0x251   :  { %2300 = vst.msk [vmem:[%s5399_s5 + $0x160] sm:$0xff] %vm2255_vm3, %v2250_v30  ;;  %v2202_v26 = vmax.f32 %v5586_v25, %v2153_v63 }
 0x252   :  { %v1539_v57 = vpop.f32.mrf.mxu0  ;;  %v2045_v58 = vpop.f32.mrf.mxu1 }
 0x253   :  { %v2251_v47 = vmax.f32 %v2202_v26, 0.0  ;;  %v2154_v9 = vmax.f32 %v1539_v57, %v2045_v58 }
 0x254   :  { %v3239_v10 = vpop.f32.mrf.mxu0  ;;  %v3406_v20 = vpop.f32.mrf.mxu1 }
 0x255   :  { %2301 = vst.msk [vmem:[%s5399_s5 + $0x168] sm:$0xff] %vm2255_vm3, %v2251_v47  ;;  %v2203_v38 = vmax.f32 %v5589_v28, %v2154_v9 }
 0x256   :  { %v1544_v5 = vpop.f32.mrf.mxu0  ;;  %v2050_v13 = vpop.f32.mrf.mxu1 }
 0x257   :  { %v2252_v32 = vmax.f32 %v2203_v38, 0.0  ;;  %v2155_v22 = vmax.f32 %v1544_v5, %v2050_v13 }
 0x258   :  { %v3242_v23 = vpop.f32.mrf.mxu0  ;;  %v3409_v33 = vpop.f32.mrf.mxu1 }
 0x259   :  { %2302 = vst.msk [vmem:[%s5399_s5 + $0x170] sm:$0xff] %vm2255_vm3, %v2252_v32  ;;  %v2204_v15 = vmax.f32 %v5592_v27, %v2155_v22 }
 0x25a   :  { %v1549_v37 = vpop.f32.mrf.mxu0  ;;  %v2055_v62 = vpop.f32.mrf.mxu1 }
 0x25b   :  { %v2253_v53 = vmax.f32 %v2204_v15, 0.0  ;;  %v2156_v35 = vmax.f32 %v1549_v37, %v2055_v62 }
 0x25c   :  { %v3245_v31 = vpop.f32.mrf.mxu0  ;;  %v3412_v44 = vpop.f32.mrf.mxu1 }
 0x25d   :  { %2303 = vst.msk [vmem:[%s5399_s5 + $0x178] sm:$0xff] %vm2255_vm3, %v2253_v53  ;;  %v2205_v40 = vmax.f32 %v5595_v39, %v2156_v35 }
 0x25f   :  { %v2254_v12 = vmax.f32 %v2205_v40, 0.0 }
 0x261   :  { %2304 = vst.msk [vmem:[%s5399_s5 + $0x180] sm:$0xff] %vm2255_vm3, %v2254_v12 }

// kernel: net_with_bias_forward.4
= control target key start
LH: loop header
LB: loop body
LE: loop exit
PB: predicated region body
PF: predicated region fallthrough
CT: control target
= control target key end

     0   :  { %v658_v0 = vmov 0.0   ;;  %vm75_vm0 = vcmask 1045504   ;;  %vm53_vm1 = vcmask 179200   ;;  %vm612_vm2 = vcmask 130048   ;;  %s1169_s4 = inlined_call_operand.vmem [shape: f32[150,16], index: 4, kind: input, shape index: {}]   ;;  %s1170_s0 = inlined_call_operand.vmem [shape: f32[50,150], index: 0, kind: input, shape index: {}]   ;;  %s1171_s1 = inlined_call_operand.vmem [shape: f32[50,150], index: 1, kind: input, shape index: {}]   ;;  %s1172_s2 = inlined_call_operand.vmem [shape: f32[50,150], index: 2, kind: input, shape index: {}]   ;;  %s1173_s3 = inlined_call_operand.vmem [shape: f32[50,150], index: 3, kind: input, shape index: {}]   ;;  %s1174_s5 = inlined_call_operand.vmem [shape: f32[50,16], index: 5, kind: output, shape index: {}]  }
   0x1   :  { %79 = vmatprep.subr.mxu0 %v658_v0  ;;  %214 = vmatprep.subr.mxu1 %v658_v0  ;;  %v694_v1 = vld [vmem:[%s1169_s4 + $0x78] sm:$0xff]  ;;  %v699_v2 = vld [vmem:[%s1169_s4 + $0x70] sm:$0xff]  ;;  %v708_v3 = vld [vmem:[%s1169_s4 + $0x68] sm:$0xff]  ;;  %vm619_vm3 = vcmask 123904  }
   0x2   :  { %80 = vmatpush1.msra.mxu0 %v694_v1  ;;  %215 = vmatpush1.msra.mxu1 %v694_v1  ;;  %v717_v4 = vld [vmem:[%s1169_s4 + $0x60] sm:$0xff]  ;;  %v726_v5 = vld [vmem:[%s1169_s4 + $0x58] sm:$0xff]  ;;  %v735_v6 = vld [vmem:[%s1169_s4 + $0x50] sm:$0xff] }
   0x3   :  { %81 = vmatprep.subr.mxu0 %v658_v0  ;;  %216 = vmatprep.subr.mxu1 %v658_v0  ;;  %v744_v7 = vld [vmem:[%s1169_s4 + $0x48] sm:$0xff]  ;;  %v753_v8 = vld [vmem:[%s1169_s4 + $0x40] sm:$0xff]  ;;  %v762_v9 = vld [vmem:[%s1169_s4 + $0x38] sm:$0xff] }
   0x4   :  { %82 = vmatpush1.msra.mxu0 %v699_v2  ;;  %217 = vmatpush1.msra.mxu1 %v699_v2  ;;  %v771_v10 = vld [vmem:[%s1169_s4 + $0x30] sm:$0xff]  ;;  %v780_v11 = vld [vmem:[%s1169_s4 + $0x28] sm:$0xff]  ;;  %v789_v12 = vld [vmem:[%s1169_s4 + $0x20] sm:$0xff] }
   0x5   :  { %83 = vmatprep.subr.mxu0 %v658_v0  ;;  %218 = vmatprep.subr.mxu1 %v658_v0  ;;  %v798_v13 = vld [vmem:[%s1169_s4 + $0x18] sm:$0xff]  ;;  %v807_v14 = vld [vmem:[%s1169_s4 + $0x10] sm:$0xff]  ;;  %v816_v15 = vld [vmem:[%s1169_s4 + $0x8] sm:$0xff] }
   0x6   :  { %84 = vmatpush1.msra.mxu0 %v708_v3  ;;  %219 = vmatpush1.msra.mxu1 %v708_v3  ;;  %v825_v16 = vld [vmem:[%s1169_s4] sm:$0xff]  ;;  %v834_v17 = vld [vmem:[%s1169_s4 + $0x90] sm:$0x3f]  ;;  %v843_v18 = vld [vmem:[%s1169_s4 + $0x88] sm:$0xff] }
   0x7   :  { %85 = vmatprep.subr.mxu0 %v658_v0  ;;  %220 = vmatprep.subr.mxu1 %v658_v0  ;;  %v854_v19 = vld [vmem:[%s1169_s4 + $0x80] sm:$0xff]  ;;  %v40_v20 = vld [vmem:[%s1170_s0 + $0x8] sm:$0xff]  ;;  %v42_v24 = vld [vmem:[%s1170_s0 + $0x18] sm:$0xff] }
   0x8   :  { %86 = vmatpush1.msra.mxu0 %v717_v4  ;;  %221 = vmatpush1.msra.mxu1 %v717_v4  ;;  %v180_v21 = vld [vmem:[%s1171_s1 + $0x8] sm:$0xff]  ;;  %v39_v22 = vld [vmem:[%s1170_s0] sm:$0xff]  ;;  %v182_v25 = vld [vmem:[%s1171_s1 + $0x18] sm:$0xff] }
   0x9   :  { %87 = vmatprep.subr.mxu0 %v658_v0  ;;  %222 = vmatprep.subr.mxu1 %v658_v0  ;;  %v179_v23 = vld [vmem:[%s1171_s1] sm:$0xff]  ;;  %v41_v26 = vld [vmem:[%s1170_s0 + $0x10] sm:$0xff]  ;;  %v44_v28 = vld [vmem:[%s1170_s0 + $0x28] sm:$0xff] }
   0xa   :  { %88 = vmatpush1.msra.mxu0 %v726_v5  ;;  %223 = vmatpush1.msra.mxu1 %v726_v5  ;;  %v181_v27 = vld [vmem:[%s1171_s1 + $0x10] sm:$0xff]  ;;  %v184_v29 = vld [vmem:[%s1171_s1 + $0x28] sm:$0xff]  ;;  %v43_v30 = vld [vmem:[%s1170_s0 + $0x20] sm:$0xff] }
   0xb   :  { %89 = vmatprep.subr.mxu0 %v658_v0  ;;  %224 = vmatprep.subr.mxu1 %v658_v0  ;;  %v183_v31 = vld [vmem:[%s1171_s1 + $0x20] sm:$0xff]  ;;  %v46_v32 = vld [vmem:[%s1170_s0 + $0x38] sm:$0xff]  ;;  %v45_v34 = vld [vmem:[%s1170_s0 + $0x30] sm:$0xff] }
   0xc   :  { %90 = vmatpush1.msra.mxu0 %v735_v6  ;;  %225 = vmatpush1.msra.mxu1 %v735_v6  ;;  %v186_v33 = vld [vmem:[%s1171_s1 + $0x38] sm:$0xff]  ;;  %v185_v35 = vld [vmem:[%s1171_s1 + $0x30] sm:$0xff]  ;;  %v48_v36 = vld [vmem:[%s1170_s0 + $0x48] sm:$0xff] }
   0xd   :  { %91 = vmatprep.subr.mxu0 %v658_v0  ;;  %226 = vmatprep.subr.mxu1 %v658_v0  ;;  %v188_v37 = vld [vmem:[%s1171_s1 + $0x48] sm:$0xff]  ;;  %v47_v38 = vld [vmem:[%s1170_s0 + $0x40] sm:$0xff]  ;;  %v50_v40 = vld [vmem:[%s1170_s0 + $0x58] sm:$0xff] }
   0xe   :  { %92 = vmatpush1.msra.mxu0 %v744_v7  ;;  %227 = vmatpush1.msra.mxu1 %v744_v7  ;;  %v187_v39 = vld [vmem:[%s1171_s1 + $0x40] sm:$0xff]  ;;  %v190_v41 = vld [vmem:[%s1171_s1 + $0x58] sm:$0xff]  ;;  %v49_v42 = vld [vmem:[%s1170_s0 + $0x50] sm:$0xff] }
   0xf   :  { %93 = vmatprep.subr.mxu0 %v658_v0  ;;  %228 = vmatprep.subr.mxu1 %v658_v0  ;;  %v189_v43 = vld [vmem:[%s1171_s1 + $0x50] sm:$0xff]  ;;  %v52_v44 = vld [vmem:[%s1170_s0 + $0x68] sm:$0x3]  ;;  %v51_v46 = vld [vmem:[%s1170_s0 + $0x60] sm:$0x3] }
  0x10   :  { %94 = vmatpush1.msra.mxu0 %v753_v8  ;;  %229 = vmatpush1.msra.mxu1 %v753_v8  ;;  %v192_v45 = vld [vmem:[%s1171_s1 + $0x68] sm:$0x3]  ;;  %v191_v47 = vld [vmem:[%s1171_s1 + $0x60] sm:$0x3]  ;;  %v317_v52 = vld [vmem:[%s1172_s2 + $0x18] sm:$0xff] }
  0x11   :  { %95 = vmatprep.subr.mxu0 %v658_v0  ;;  %230 = vmatprep.subr.mxu1 %v658_v0  ;;  %v315_v48 = vld [vmem:[%s1172_s2 + $0x8] sm:$0xff]  ;;  %v314_v50 = vld [vmem:[%s1172_s2] sm:$0xff]  ;;  %v452_v53 = vld [vmem:[%s1173_s3 + $0x18] sm:$0xff] }
  0x12   :  { %96 = vmatpush1.msra.mxu0 %v762_v9  ;;  %231 = vmatpush1.msra.mxu1 %v762_v9  ;;  %v450_v49 = vld [vmem:[%s1173_s3 + $0x8] sm:$0xff]  ;;  %v449_v51 = vld [vmem:[%s1173_s3] sm:$0xff]  ;;  %v316_v54 = vld [vmem:[%s1172_s2 + $0x10] sm:$0xff] }
  0x13   :  { %97 = vmatprep.subr.mxu0 %v658_v0  ;;  %232 = vmatprep.subr.mxu1 %v658_v0  ;;  %v451_v55 = vld [vmem:[%s1173_s3 + $0x10] sm:$0xff]  ;;  %v319_v56 = vld [vmem:[%s1172_s2 + $0x28] sm:$0xff]  ;;  %v318_v58 = vld [vmem:[%s1172_s2 + $0x20] sm:$0xff] }
  0x14   :  { %98 = vmatpush1.msra.mxu0 %v771_v10  ;;  %233 = vmatpush1.msra.mxu1 %v771_v10  ;;  %v454_v57 = vld [vmem:[%s1173_s3 + $0x28] sm:$0xff]  ;;  %v453_v59 = vld [vmem:[%s1173_s3 + $0x20] sm:$0xff]  ;;  %v321_v60 = vld [vmem:[%s1172_s2 + $0x38] sm:$0xff] }
  0x15   :  { %99 = vmatprep.subr.mxu0 %v658_v0  ;;  %234 = vmatprep.subr.mxu1 %v658_v0  ;;  %v456_v61 = vld [vmem:[%s1173_s3 + $0x38] sm:$0xff]  ;;  %v320_v62 = vld [vmem:[%s1172_s2 + $0x30] sm:$0xff] }
  0x16   :  { %100 = vmatpush1.msra.mxu0 %v780_v11  ;;  %235 = vmatpush1.msra.mxu1 %v780_v11  ;;  %v455_v63 = vld [vmem:[%s1173_s3 + $0x30] sm:$0xff] }
  0x17   :  { %101 = vmatprep.subr.mxu0 %v658_v0  ;;  %236 = vmatprep.subr.mxu1 %v658_v0 }
  0x18   :  { %102 = vmatpush1.msra.mxu0 %v789_v12  ;;  %237 = vmatpush1.msra.mxu1 %v789_v12 }
  0x19   :  { %103 = vmatprep.subr.mxu0 %v658_v0  ;;  %238 = vmatprep.subr.mxu1 %v658_v0 }
  0x1a   :  { %104 = vmatpush1.msra.mxu0 %v798_v13  ;;  %239 = vmatpush1.msra.mxu1 %v798_v13 }
  0x1b   :  { %105 = vmatprep.subr.mxu0 %v658_v0  ;;  %240 = vmatprep.subr.mxu1 %v658_v0 }
  0x1c   :  { %106 = vmatpush1.msra.mxu0 %v807_v14  ;;  %241 = vmatpush1.msra.mxu1 %v807_v14 }
  0x1d   :  { %107 = vmatprep.subr.mxu0 %v658_v0  ;;  %242 = vmatprep.subr.mxu1 %v658_v0 }
  0x1e   :  { %108 = vmatpush1.msra.mxu0 %v816_v15  ;;  %243 = vmatpush1.msra.mxu1 %v816_v15 }
  0x1f   :  { %109 = vmatprep.subr.mxu0 %v658_v0  ;;  %244 = vmatprep.subr.mxu1 %v658_v0 }
  0x20   :  { %110 = vmatpush1.msra.mxu0 %v825_v16  ;;  %245 = vmatpush1.msra.mxu1 %v825_v16 }
  0x21   :  { %137 = vmatprep.subr.mxu0 %v658_v0  ;;  %272 = vmatprep.subr.mxu1 %v658_v0 }
  0x22   :  { %625 = vmatpush2.msk.msra.mxu0 %vm75_vm0, %v834_v17  ;;  %633 = vmatpush2.msk.msra.mxu1 %vm75_vm0, %v834_v17 }
  0x23   :  { %139 = vmatprep.subr.mxu0 %v658_v0  ;;  %274 = vmatprep.subr.mxu1 %v658_v0 }
  0x24   :  { %140 = vmatpush2.msra.mxu0 %v843_v18  ;;  %275 = vmatpush2.msra.mxu1 %v843_v18 }
  0x25   :  { %141 = vmatprep.subr.mxu0 %v658_v0  ;;  %276 = vmatprep.subr.mxu1 %v658_v0 }
  0x26   :  { %142 = vmatpush2.msra.mxu0 %v854_v19  ;;  %626 = vmatprep.mubr.msk.f32.mxu0 %vm53_vm1, %v40_v20 }
  0x27   :  { %277 = vmatpush2.msra.mxu1 %v854_v19  ;;  %634 = vmatprep.mubr.msk.f32.mxu1 %vm53_vm1, %v180_v21 }
  0x28   :  { %144 = vmatmul.mubr.f32.vlgmr.msra.gmra.mxu0 %v39_v22  ;;  %279 = vmatmul.mubr.f32.vlgmr.msra.gmra.mxu1 %v179_v23 }
  0x29   :  { %349 = vmatprep.subr.mxu0 %v658_v0  ;;  %484 = vmatprep.subr.mxu1 %v658_v0 }
  0x2a   :  { %350 = vmatpush1.msra.mxu0 %v694_v1  ;;  %485 = vmatpush1.msra.mxu1 %v694_v1  ;;  %v458_v1 = vld [vmem:[%s1173_s3 + $0x48] sm:$0xff] }
  0x2b   :  { %351 = vmatprep.subr.mxu0 %v658_v0  ;;  %486 = vmatprep.subr.mxu1 %v658_v0 }
  0x2c   :  { %352 = vmatpush1.msra.mxu0 %v699_v2  ;;  %487 = vmatpush1.msra.mxu1 %v699_v2  ;;  %v322_v2 = vld [vmem:[%s1172_s2 + $0x40] sm:$0xff] }
  0x2d   :  { %353 = vmatprep.subr.mxu0 %v658_v0  ;;  %488 = vmatprep.subr.mxu1 %v658_v0 }
  0x2e   :  { %354 = vmatpush1.msra.mxu0 %v708_v3  ;;  %489 = vmatpush1.msra.mxu1 %v708_v3  ;;  %v457_v3 = vld [vmem:[%s1173_s3 + $0x40] sm:$0xff] }
  0x2f   :  { %355 = vmatprep.subr.mxu0 %v658_v0  ;;  %490 = vmatprep.subr.mxu1 %v658_v0 }
  0x30   :  { %356 = vmatpush1.msra.mxu0 %v717_v4  ;;  %491 = vmatpush1.msra.mxu1 %v717_v4  ;;  %v325_v4 = vld [vmem:[%s1172_s2 + $0x58] sm:$0xff] }
  0x31   :  { %357 = vmatprep.subr.mxu0 %v658_v0  ;;  %492 = vmatprep.subr.mxu1 %v658_v0 }
  0x32   :  { %358 = vmatpush1.msra.mxu0 %v726_v5  ;;  %493 = vmatpush1.msra.mxu1 %v726_v5  ;;  %v460_v5 = vld [vmem:[%s1173_s3 + $0x58] sm:$0xff] }
  0x33   :  { %359 = vmatprep.subr.mxu0 %v658_v0  ;;  %494 = vmatprep.subr.mxu1 %v658_v0 }
  0x34   :  { %627 = vmatprep.mubr.msk.f32.mxu0 %vm53_vm1, %v42_v24  ;;  %635 = vmatprep.mubr.msk.f32.mxu1 %vm53_vm1, %v182_v25 }
  0x35   :  { %360 = vmatpush1.msra.mxu0 %v735_v6  ;;  %495 = vmatpush1.msra.mxu1 %v735_v6  ;;  %v324_v6 = vld [vmem:[%s1172_s2 + $0x50] sm:$0xff] }
  0x36   :  { %149 = vmatmul.mubr.f32.gmra.mxu0 %v41_v26  ;;  %284 = vmatmul.mubr.f32.gmra.mxu1 %v181_v27 }
  0x37   :  { %361 = vmatprep.subr.mxu0 %v658_v0  ;;  %496 = vmatprep.subr.mxu1 %v658_v0 }
  0x38   :  { %362 = vmatpush1.msra.mxu0 %v744_v7  ;;  %497 = vmatpush1.msra.mxu1 %v744_v7  ;;  %v459_v7 = vld [vmem:[%s1173_s3 + $0x50] sm:$0xff] }
  0x39   :  { %363 = vmatprep.subr.mxu0 %v658_v0  ;;  %498 = vmatprep.subr.mxu1 %v658_v0 }
  0x3a   :  { %628 = vmatprep.mubr.msk.f32.mxu0 %vm53_vm1, %v44_v28  ;;  %636 = vmatprep.mubr.msk.f32.mxu1 %vm53_vm1, %v184_v29 }
  0x3b   :  { %364 = vmatpush1.msra.mxu0 %v753_v8  ;;  %499 = vmatpush1.msra.mxu1 %v753_v8  ;;  %v327_v8 = vld [vmem:[%s1172_s2 + $0x68] sm:$0x3] }
  0x3c   :  { %154 = vmatmul.mubr.f32.gmra.mxu0 %v43_v30  ;;  %289 = vmatmul.mubr.f32.gmra.mxu1 %v183_v31 }
  0x3d   :  { %365 = vmatprep.subr.mxu0 %v658_v0  ;;  %500 = vmatprep.subr.mxu1 %v658_v0 }
  0x3e   :  { %366 = vmatpush1.msra.mxu0 %v762_v9  ;;  %501 = vmatpush1.msra.mxu1 %v762_v9  ;;  %v462_v9 = vld [vmem:[%s1173_s3 + $0x68] sm:$0x3] }
  0x3f   :  { %367 = vmatprep.subr.mxu0 %v658_v0  ;;  %502 = vmatprep.subr.mxu1 %v658_v0 }
  0x40   :  { %629 = vmatprep.mubr.msk.f32.mxu0 %vm53_vm1, %v46_v32  ;;  %637 = vmatprep.mubr.msk.f32.mxu1 %vm53_vm1, %v186_v33 }
  0x41   :  { %368 = vmatpush1.msra.mxu0 %v771_v10  ;;  %503 = vmatpush1.msra.mxu1 %v771_v10  ;;  %v326_v10 = vld [vmem:[%s1172_s2 + $0x60] sm:$0x3] }
  0x42   :  { %159 = vmatmul.mubr.f32.gmra.mxu0 %v45_v34  ;;  %294 = vmatmul.mubr.f32.gmra.mxu1 %v185_v35 }
  0x43   :  { %369 = vmatprep.subr.mxu0 %v658_v0  ;;  %504 = vmatprep.subr.mxu1 %v658_v0 }
  0x44   :  { %370 = vmatpush1.msra.mxu0 %v780_v11  ;;  %505 = vmatpush1.msra.mxu1 %v780_v11  ;;  %v461_v11 = vld [vmem:[%s1173_s3 + $0x60] sm:$0x3] }
  0x45   :  { %371 = vmatprep.subr.mxu0 %v658_v0  ;;  %506 = vmatprep.subr.mxu1 %v658_v0 }
  0x46   :  { %630 = vmatprep.mubr.msk.f32.mxu0 %vm53_vm1, %v48_v36  ;;  %638 = vmatprep.mubr.msk.f32.mxu1 %vm53_vm1, %v188_v37 }
  0x47   :  { %372 = vmatpush1.msra.mxu0 %v789_v12  ;;  %507 = vmatpush1.msra.mxu1 %v789_v12 }
  0x48   :  { %164 = vmatmul.mubr.f32.gmra.mxu0 %v47_v38  ;;  %299 = vmatmul.mubr.f32.gmra.mxu1 %v187_v39 }
  0x49   :  { %373 = vmatprep.subr.mxu0 %v658_v0  ;;  %508 = vmatprep.subr.mxu1 %v658_v0 }
  0x4a   :  { %374 = vmatpush1.msra.mxu0 %v798_v13  ;;  %509 = vmatpush1.msra.mxu1 %v798_v13 }
  0x4b   :  { %375 = vmatprep.subr.mxu0 %v658_v0  ;;  %510 = vmatprep.subr.mxu1 %v658_v0 }
  0x4c   :  { %631 = vmatprep.mubr.msk.f32.mxu0 %vm53_vm1, %v50_v40  ;;  %639 = vmatprep.mubr.msk.f32.mxu1 %vm53_vm1, %v190_v41 }
  0x4d   :  { %376 = vmatpush1.msra.mxu0 %v807_v14  ;;  %511 = vmatpush1.msra.mxu1 %v807_v14 }
  0x4e   :  { %169 = vmatmul.mubr.f32.gmra.mxu0 %v49_v42  ;;  %304 = vmatmul.mubr.f32.gmra.mxu1 %v189_v43 }
  0x4f   :  { %377 = vmatprep.subr.mxu0 %v658_v0  ;;  %512 = vmatprep.subr.mxu1 %v658_v0 }
  0x50   :  { %378 = vmatpush1.msra.mxu0 %v816_v15  ;;  %513 = vmatpush1.msra.mxu1 %v816_v15 }
  0x51   :  { %379 = vmatprep.subr.mxu0 %v658_v0  ;;  %514 = vmatprep.subr.mxu1 %v658_v0 }
  0x52   :  { %632 = vmatprep.mubr.msk.f32.mxu0 %vm53_vm1, %v52_v44  ;;  %640 = vmatprep.mubr.msk.f32.mxu1 %vm53_vm1, %v192_v45 }
  0x53   :  { %380 = vmatpush1.msra.mxu0 %v825_v16  ;;  %515 = vmatpush1.msra.mxu1 %v825_v16 }
  0x54   :  { %174 = vmatmul.mubr.f32.gmra.mxu0 %v51_v46  ;;  %309 = vmatmul.mubr.f32.gmra.mxu1 %v191_v47 }
  0x55   :  { %407 = vmatprep.subr.mxu0 %v658_v0  ;;  %542 = vmatprep.subr.mxu1 %v658_v0 }
  0x56   :  { %641 = vmatpush2.msk.msra.mxu0 %vm75_vm0, %v834_v17  ;;  %649 = vmatpush2.msk.msra.mxu1 %vm75_vm0, %v834_v17 }
  0x57   :  { %409 = vmatprep.subr.mxu0 %v658_v0  ;;  %544 = vmatprep.subr.mxu1 %v658_v0 }
  0x58   :  { %410 = vmatpush2.msra.mxu0 %v843_v18  ;;  %545 = vmatpush2.msra.mxu1 %v843_v18 }
  0x59   :  { %411 = vmatprep.subr.mxu0 %v658_v0  ;;  %546 = vmatprep.subr.mxu1 %v658_v0  ;;  %v323_v0 = vld [vmem:[%s1172_s2 + $0x48] sm:$0xff] }
  0x5a   :  { %412 = vmatpush2.msra.mxu0 %v854_v19  ;;  %642 = vmatprep.mubr.msk.f32.mxu0 %vm53_vm1, %v315_v48 }
  0x5b   :  { %547 = vmatpush2.msra.mxu1 %v854_v19  ;;  %650 = vmatprep.mubr.msk.f32.mxu1 %vm53_vm1, %v450_v49 }
  0x5c   :  { %414 = vmatmul.mubr.f32.vlgmr.msra.gmra.mxu0 %v314_v50  ;;  %549 = vmatmul.mubr.f32.vlgmr.msra.gmra.mxu1 %v449_v51 }
  0x5d   :  { %643 = vmatprep.mubr.msk.f32.mxu0 %vm53_vm1, %v317_v52  ;;  %651 = vmatprep.mubr.msk.f32.mxu1 %vm53_vm1, %v452_v53 }
  0x60   :  { %419 = vmatmul.mubr.f32.gmra.mxu0 %v316_v54  ;;  %554 = vmatmul.mubr.f32.gmra.mxu1 %v451_v55 }
  0x61   :  { %644 = vmatprep.mubr.msk.f32.mxu0 %vm53_vm1, %v319_v56  ;;  %652 = vmatprep.mubr.msk.f32.mxu1 %vm53_vm1, %v454_v57 }
  0x64   :  { %424 = vmatmul.mubr.f32.gmra.mxu0 %v318_v58  ;;  %559 = vmatmul.mubr.f32.gmra.mxu1 %v453_v59 }
  0x65   :  { %645 = vmatprep.mubr.msk.f32.mxu0 %vm53_vm1, %v321_v60  ;;  %653 = vmatprep.mubr.msk.f32.mxu1 %vm53_vm1, %v456_v61 }
  0x68   :  { %429 = vmatmul.mubr.f32.gmra.mxu0 %v320_v62  ;;  %564 = vmatmul.mubr.f32.gmra.mxu1 %v455_v63 }
  0x69   :  { %646 = vmatprep.mubr.msk.f32.mxu0 %vm53_vm1, %v323_v0  ;;  %654 = vmatprep.mubr.msk.f32.mxu1 %vm53_vm1, %v458_v1 }
  0x6c   :  { %434 = vmatmul.mubr.f32.gmra.mxu0 %v322_v2  ;;  %569 = vmatmul.mubr.f32.gmra.mxu1 %v457_v3 }
  0x6d   :  { %647 = vmatprep.mubr.msk.f32.mxu0 %vm53_vm1, %v325_v4  ;;  %655 = vmatprep.mubr.msk.f32.mxu1 %vm53_vm1, %v460_v5 }
  0x70   :  { %439 = vmatmul.mubr.f32.gmra.mxu0 %v324_v6  ;;  %574 = vmatmul.mubr.f32.gmra.mxu1 %v459_v7 }
  0x71   :  { %648 = vmatprep.mubr.msk.f32.mxu0 %vm53_vm1, %v327_v8  ;;  %656 = vmatprep.mubr.msk.f32.mxu1 %vm53_vm1, %v462_v9 }
  0x74   :  { %444 = vmatmul.mubr.f32.gmra.mxu0 %v326_v10  ;;  %579 = vmatmul.mubr.f32.gmra.mxu1 %v461_v11 }
  0xe8   :  { %v145_v12 = vpop.f32.mrf.mxu0  ;;  %v280_v13 = vpop.f32.mrf.mxu1 }
  0xe9   :  { %v584_v42 = vmax.f32 %v145_v12, %v280_v13 }
  0xea   :  { %v147_v14 = vpop.f32.mrf.mxu0  ;;  %v282_v15 = vpop.f32.mrf.mxu1 }
  0xf6   :  { %v150_v16 = vpop.f32.mrf.mxu0  ;;  %v285_v17 = vpop.f32.mrf.mxu1 }
  0xf7   :  { %v585_v49 = vmax.f32 %v150_v16, %v285_v17 }
  0xf8   :  { %v152_v18 = vpop.f32.mrf.mxu0  ;;  %v287_v19 = vpop.f32.mrf.mxu1 }
  0xfc   :  { %v155_v20 = vpop.f32.mrf.mxu0  ;;  %v290_v21 = vpop.f32.mrf.mxu1 }
  0xfd   :  { %v586_v57 = vmax.f32 %v155_v20, %v290_v21 }
  0xfe   :  { %v157_v22 = vpop.f32.mrf.mxu0  ;;  %v292_v23 = vpop.f32.mrf.mxu1 }
 0x102   :  { %v160_v24 = vpop.f32.mrf.mxu0  ;;  %v295_v25 = vpop.f32.mrf.mxu1 }
 0x103   :  { %v587_v1 = vmax.f32 %v160_v24, %v295_v25 }
 0x104   :  { %v162_v26 = vpop.f32.mrf.mxu0  ;;  %v297_v27 = vpop.f32.mrf.mxu1 }
 0x108   :  { %v165_v28 = vpop.f32.mrf.mxu0  ;;  %v300_v29 = vpop.f32.mrf.mxu1 }
 0x109   :  { %v588_v9 = vmax.f32 %v165_v28, %v300_v29 }
 0x10a   :  { %v167_v30 = vpop.f32.mrf.mxu0  ;;  %v302_v31 = vpop.f32.mrf.mxu1 }
 0x10e   :  { %v170_v32 = vpop.f32.mrf.mxu0  ;;  %v305_v33 = vpop.f32.mrf.mxu1 }
 0x10f   :  { %v589_v17 = vmax.f32 %v170_v32, %v305_v33 }
 0x110   :  { %v172_v34 = vpop.f32.mrf.mxu0  ;;  %v307_v35 = vpop.f32.mrf.mxu1 }
 0x114   :  { %v1136_v36 = vpop.f32.mrf.mxu0  ;;  %v1138_v37 = vpop.f32.mrf.mxu1 }
 0x115   :  { %v590_v25 = vmax.f32 %v1136_v36, %v1138_v37 }
 0x116   :  { %v177_v38 = vpop.f32.mrf.mxu0  ;;  %v312_v39 = vpop.f32.mrf.mxu1 }
 0x11c   :  { %v415_v40 = vpop.f32.mrf.mxu0  ;;  %v550_v41 = vpop.f32.mrf.mxu1 }
 0x11d   :  { %v591_v43 = vmax.f32 %v415_v40, %v550_v41 }
 0x11e   :  { %v417_v44 = vpop.f32.mrf.mxu0  ;;  %v552_v45 = vpop.f32.mrf.mxu1 }
 0x11f   :  { %v598_v46 = vmax.f32 %v584_v42, %v591_v43 }
 0x120   :  { %v420_v47 = vpop.f32.mrf.mxu0  ;;  %v555_v48 = vpop.f32.mrf.mxu1 }
 0x121   :  { %v605_v50 = vmax.f32 %v598_v46, 0.0  ;;  %v592_v51 = vmax.f32 %v420_v47, %v555_v48 }
 0x122   :  { %v422_v52 = vpop.f32.mrf.mxu0  ;;  %v557_v53 = vpop.f32.mrf.mxu1 }
 0x123   :  { %613 = vst.msk [vmem:[%s1174_s5] sm:$0xff] %vm612_vm2, %v605_v50  ;;  %v599_v54 = vmax.f32 %v585_v49, %v592_v51 }
 0x124   :  { %v425_v55 = vpop.f32.mrf.mxu0  ;;  %v560_v56 = vpop.f32.mrf.mxu1 }
 0x125   :  { %v606_v58 = vmax.f32 %v599_v54, 0.0  ;;  %v593_v59 = vmax.f32 %v425_v55, %v560_v56 }
 0x126   :  { %v427_v60 = vpop.f32.mrf.mxu0  ;;  %v562_v61 = vpop.f32.mrf.mxu1 }
 0x127   :  { %614 = vst.msk [vmem:[%s1174_s5 + $0x8] sm:$0xff] %vm612_vm2, %v606_v58  ;;  %v600_v62 = vmax.f32 %v586_v57, %v593_v59 }
 0x128   :  { %v430_v63 = vpop.f32.mrf.mxu0  ;;  %v565_v0 = vpop.f32.mrf.mxu1 }
 0x129   :  { %v607_v2 = vmax.f32 %v600_v62, 0.0  ;;  %v594_v3 = vmax.f32 %v430_v63, %v565_v0 }
 0x12a   :  { %v432_v4 = vpop.f32.mrf.mxu0  ;;  %v567_v5 = vpop.f32.mrf.mxu1 }
 0x12b   :  { %615 = vst.msk [vmem:[%s1174_s5 + $0x10] sm:$0xff] %vm612_vm2, %v607_v2  ;;  %v601_v6 = vmax.f32 %v587_v1, %v594_v3 }
 0x12c   :  { %v435_v7 = vpop.f32.mrf.mxu0  ;;  %v570_v8 = vpop.f32.mrf.mxu1 }
 0x12d   :  { %v608_v10 = vmax.f32 %v601_v6, 0.0  ;;  %v595_v11 = vmax.f32 %v435_v7, %v570_v8 }
 0x12e   :  { %v437_v12 = vpop.f32.mrf.mxu0  ;;  %v572_v13 = vpop.f32.mrf.mxu1 }
 0x12f   :  { %616 = vst.msk [vmem:[%s1174_s5 + $0x18] sm:$0xff] %vm612_vm2, %v608_v10  ;;  %v602_v14 = vmax.f32 %v588_v9, %v595_v11 }
 0x130   :  { %v440_v15 = vpop.f32.mrf.mxu0  ;;  %v575_v16 = vpop.f32.mrf.mxu1 }
 0x131   :  { %v609_v18 = vmax.f32 %v602_v14, 0.0  ;;  %v596_v19 = vmax.f32 %v440_v15, %v575_v16 }
 0x132   :  { %v442_v20 = vpop.f32.mrf.mxu0  ;;  %v577_v21 = vpop.f32.mrf.mxu1 }
 0x133   :  { %617 = vst.msk [vmem:[%s1174_s5 + $0x20] sm:$0xff] %vm612_vm2, %v609_v18  ;;  %v603_v22 = vmax.f32 %v589_v17, %v596_v19 }
 0x134   :  { %v445_v23 = vpop.f32.mrf.mxu0  ;;  %v580_v24 = vpop.f32.mrf.mxu1 }
 0x135   :  { %v610_v26 = vmax.f32 %v603_v22, 0.0  ;;  %v597_v27 = vmax.f32 %v445_v23, %v580_v24 }
 0x136   :  { %v447_v28 = vpop.f32.mrf.mxu0  ;;  %v582_v29 = vpop.f32.mrf.mxu1 }
 0x137   :  { %618 = vst.msk [vmem:[%s1174_s5 + $0x28] sm:$0xff] %vm612_vm2, %v610_v26  ;;  %v604_v30 = vmax.f32 %v590_v25, %v597_v27 }
 0x139   :  { %v611_v31 = vmax.f32 %v604_v30, 0.0 }
 0x13b   :  { %620 = vst.msk [vmem:[%s1174_s5 + $0x30] sm:$0x3] %vm619_vm3, %v611_v31 }

// kernel: net_with_bias_forward.5
= control target key start
LH: loop header
LB: loop body
LE: loop exit
PB: predicated region body
PF: predicated region fallthrough
CT: control target
= control target key end

     0   :  { %v592_v3 = vmov 0.0   ;;  %v593_v23 = vmov 1983009808   ;;  %v77_v25 = vlaneseq  ;;  %s909_s0 = inlined_call_operand.vmem [shape: f32[2,400], index: 0, kind: input, shape index: {}]   ;;  %s910_s1 = inlined_call_operand.vmem [shape: f32[400,120], index: 1, kind: input, shape index: {}]   ;;  %s911_s2 = inlined_call_operand.vmem [shape: f32[120,84], index: 2, kind: input, shape index: {}]   ;;  %s912_s3 = inlined_call_operand.vmem [shape: f32[84,10], index: 3, kind: input, shape index: {}]   ;;  %s913_s4 = inlined_call_operand.vmem [shape: f32[1,10], index: 4, kind: input, shape index: {}]   ;;  %s914_s5 = inlined_call_operand.hbm [shape: f32[2,10], index: 5, kind: output, shape index: {}]  }
   0x1   :  { %v53_v0 = vld [vmem:[%s910_s1 + $0xf8] sm:$0xff]  ;;  %166 = vmatprep.subr.mxu1 %v592_v3  ;;  %v52_v4 = vld [vmem:[%s910_s1 + $0xf0] sm:$0xff]  ;;  %v51_v7 = vld [vmem:[%s910_s1 + $0xe8] sm:$0xff]  ;;  %v75_v24 = vunpack.c.l.s4 %v593_v23 }
   0x2   :  { %v37_v1 = vld [vmem:[%s910_s1 + $0x78] sm:$0xff]  ;;  %444 = vmatprep.subr.mxu0 %v53_v0  ;;  %v36_v5 = vld [vmem:[%s910_s1 + $0x70] sm:$0xff]  ;;  %v35_v8 = vld [vmem:[%s910_s1 + $0x68] sm:$0xff]  ;;  %v78_v33 = vshrl.u32 %v77_v25, 7 }
   0x3   :  { %v69_v2 = vld [vmem:[%s910_s1 + $0x178] sm:$0xff]  ;;  %v68_v6 = vld [vmem:[%s910_s1 + $0x170] sm:$0xff]  ;;  %445 = vmatpush3.msra.mxu0 %v37_v1  ;;  %v67_v9 = vld [vmem:[%s910_s1 + $0x168] sm:$0xff]  ;;  %v76_v32 = vunpack.c.0.s8 %v75_v24 }
   0x4   :  { %167 = vmatpush1.msra.mxu1 %v69_v2  ;;  %446 = vmatprep.subr.mxu0 %v52_v4  ;;  %v50_v10 = vld [vmem:[%s910_s1 + $0xe0] sm:$0xff]  ;;  %v49_v13 = vld [vmem:[%s910_s1 + $0xd8] sm:$0xff]  ;;  %v48_v16 = vld [vmem:[%s910_s1 + $0xd0] sm:$0xff] }
   0x5   :  { %168 = vmatprep.subr.mxu1 %v592_v3  ;;  %447 = vmatpush3.msra.mxu0 %v36_v5  ;;  %v34_v11 = vld [vmem:[%s910_s1 + $0x60] sm:$0xff]  ;;  %v33_v14 = vld [vmem:[%s910_s1 + $0x58] sm:$0xff]  ;;  %v32_v17 = vld [vmem:[%s910_s1 + $0x50] sm:$0xff]  ;;  %v79_v40 = vsub.s32 %v76_v32, %v78_v33 }
   0x6   :  { %169 = vmatpush1.msra.mxu1 %v68_v6  ;;  %448 = vmatprep.subr.mxu0 %v51_v7  ;;  %v66_v12 = vld [vmem:[%s910_s1 + $0x160] sm:$0xff]  ;;  %v65_v15 = vld [vmem:[%s910_s1 + $0x158] sm:$0xff]  ;;  %v64_v18 = vld [vmem:[%s910_s1 + $0x150] sm:$0xff] }
   0x7   :  { %170 = vmatprep.subr.mxu1 %v592_v3  ;;  %449 = vmatpush3.msra.mxu0 %v35_v8  ;;  %v47_v19 = vld [vmem:[%s910_s1 + $0xc8] sm:$0xff]  ;;  %v46_v22 = vld [vmem:[%s910_s1 + $0xc0] sm:$0xff]  ;;  %v45_v28 = vld [vmem:[%s910_s1 + $0xb8] sm:$0xff] }
   0x8   :  { %171 = vmatpush1.msra.mxu1 %v67_v9  ;;  %450 = vmatprep.subr.mxu0 %v50_v10  ;;  %v31_v20 = vld [vmem:[%s910_s1 + $0x48] sm:$0xff]  ;;  %v30_v26 = vld [vmem:[%s910_s1 + $0x40] sm:$0xff]  ;;  %v29_v29 = vld [vmem:[%s910_s1 + $0x38] sm:$0xff] }
   0x9   :  { %172 = vmatprep.subr.mxu1 %v592_v3  ;;  %451 = vmatpush3.msra.mxu0 %v34_v11  ;;  %v63_v21 = vld [vmem:[%s910_s1 + $0x148] sm:$0xff]  ;;  %v62_v27 = vld [vmem:[%s910_s1 + $0x140] sm:$0xff]  ;;  %v61_v30 = vld [vmem:[%s910_s1 + $0x138] sm:$0xff] }
   0xa   :  { %173 = vmatpush1.msra.mxu1 %v66_v12  ;;  %452 = vmatprep.subr.mxu0 %v49_v13  ;;  %v44_v31 = vld [vmem:[%s910_s1 + $0xb0] sm:$0xff]  ;;  %v43_v36 = vld [vmem:[%s910_s1 + $0xa8] sm:$0xff]  ;;  %v42_v39 = vld [vmem:[%s910_s1 + $0xa0] sm:$0xff] }
   0xb   :  { %174 = vmatprep.subr.mxu1 %v592_v3  ;;  %453 = vmatpush3.msra.mxu0 %v33_v14  ;;  %v28_v34 = vld [vmem:[%s910_s1 + $0x30] sm:$0xff]  ;;  %v27_v37 = vld [vmem:[%s910_s1 + $0x28] sm:$0xff] }
   0xc   :  { %175 = vmatpush1.msra.mxu1 %v65_v15  ;;  %454 = vmatprep.subr.mxu0 %v48_v16  ;;  %v60_v35 = vld [vmem:[%s910_s1 + $0x130] sm:$0xff]  ;;  %v59_v38 = vld [vmem:[%s910_s1 + $0x128] sm:$0xff] }
   0xd   :  { %176 = vmatprep.subr.mxu1 %v592_v3  ;;  %455 = vmatpush3.msra.mxu0 %v32_v17 }
   0xe   :  { %177 = vmatpush1.msra.mxu1 %v64_v18  ;;  %456 = vmatprep.subr.mxu0 %v47_v19 }
   0xf   :  { %178 = vmatprep.subr.mxu1 %v592_v3  ;;  %457 = vmatpush3.msra.mxu0 %v31_v20 }
  0x10   :  { %179 = vmatpush1.msra.mxu1 %v63_v21  ;;  %458 = vmatprep.subr.mxu0 %v46_v22 }
  0x11   :  { %180 = vmatprep.subr.mxu1 %v592_v3  ;;  %459 = vmatpush3.msra.mxu0 %v30_v26 }
  0x12   :  { %181 = vmatpush1.msra.mxu1 %v62_v27  ;;  %460 = vmatprep.subr.mxu0 %v45_v28 }
  0x13   :  { %182 = vmatprep.subr.mxu1 %v592_v3  ;;  %461 = vmatpush3.msra.mxu0 %v29_v29 }
  0x14   :  { %183 = vmatpush1.msra.mxu1 %v61_v30  ;;  %462 = vmatprep.subr.mxu0 %v44_v31 }
  0x15   :  { %184 = vmatprep.subr.mxu1 %v592_v3  ;;  %463 = vmatpush3.msra.mxu0 %v28_v34 }
  0x16   :  { %185 = vmatpush1.msra.mxu1 %v60_v35 }
  0x17   :  { %10 = vsyncpa [#allocation3], 0  ;;  %464 = vmatprep.subr.mxu0 %v43_v36  ;;  %186 = vmatprep.subr.mxu1 %v592_v3  ;;  %v26_v41 = vld [vmem:[%s910_s1 + $0x20] sm:$0xff]  ;;  %v41_v44 = vld [vmem:[%s910_s1 + $0x98] sm:$0xff]  ;;  %vm93_vm0 = vcmask 130048   ;;  %vm594_vm1 = vmmov 0  }
  0x18   :  { %v58_v42 = vld [vmem:[%s910_s1 + $0x120] sm:$0xff]  ;;  %465 = vmatpush3.msra.mxu0 %v27_v37  ;;  %187 = vmatpush1.msra.mxu1 %v59_v38  ;;  %v25_v46 = vld [vmem:[%s910_s1 + $0x18] sm:$0xff]  ;;  %v40_v48 = vld [vmem:[%s910_s1 + $0x90] sm:$0xff]  ;;  %vm349_vm2 = vcmask 1043456   ;;  %vm252_vm3 = vcmask 982016   ;;  %vm345_vm4 = vcmask 687104  }
  0x19   :  { %v21_v43 = vld [vmem:[%s909_s0] sm:$0xff]  ;;  %466 = vmatprep.subr.mxu0 %v42_v39  ;;  %188 = vmatprep.subr.mxu1 %v592_v3  ;;  %v57_v47 = vld [vmem:[%s910_s1 + $0x118] sm:$0xff]  ;;  %v24_v50 = vld [vmem:[%s910_s1 + $0x10] sm:$0xff]  ;;  %s595_s18 = smov [#allocation2]   ;;  %vm423_vm5 = vcmask 74752  }
  0x1a   :  { %v73_v45 = vcombine.high %v21_v43, %v21_v43  ;;  %467 = vmatpush3.msra.mxu0 %v26_v41  ;;  %189 = vmatpush1.msra.mxu1 %v58_v42  ;;  %v80_v49 = vrot.slane %v21_v43, %v79_v40  ;;  %v56_v51 = vld [vmem:[%s910_s1 + $0x110] sm:$0xff]  ;;  %v39_v52 = vld [vmem:[%s910_s1 + $0x88] sm:$0xff]  ;;  %v38_v56 = vld [vmem:[%s910_s1 + $0x80] sm:$0xff]  ;;  %s431_s19 = sshll.u32 %s595_s18, 4  ;;  %s432_s19 = int_to_ptr.vmem [resolvable:$true] %s431_s19 }
  0x1b   :  { %468 = vmatprep.subr.mxu0 %v41_v44  ;;  %190 = vmatprep.subr.mxu1 %v592_v3  ;;  %v23_v54 = vld [vmem:[%s910_s1 + $0x8] sm:$0xff]  ;;  %v22_v58 = vld [vmem:[%s910_s1] sm:$0xff]  ;;  %v251_v62 = vld [vmem:[%s911_s2 + $0x70] sm:$0xff]  ;;  %s570_s20 = scalar_lea.vmem %s432_s19, 32  ;;  %p575_p1 = scmp.lt.s32.totalorder %s432_s19, %s432_s19 }
  0x1c   :  { %469 = vmatpush3.msra.mxu0 %v25_v46  ;;  %191 = vmatpush1.msra.mxu1 %v57_v47  ;;  %v87_v53 = vrot.slane %v73_v45, %v79_v40  ;;  %v55_v55 = vld [vmem:[%s910_s1 + $0x108] sm:$0xff]  ;;  %v88_v57 = vcombine.high %v80_v49, %v80_v49  ;;  %v54_v59 = vld [vmem:[%s910_s1 + $0x100] sm:$0xff]  ;;  %v248_v2 = vld [vmem:[%s911_s2 + $0x58] sm:$0xff]  ;;  %p571_p0 = scmp.ne.s32.totalorder %s432_s19, %s570_s20  ;;  %p576_p2 = scmp.lt.s32.totalorder %s570_s20, %s570_s20 }
  0x1d   :  { %470 = vmatprep.subr.mxu0 %v40_v48  ;;  %192 = vmatprep.subr.mxu1 %v592_v3  ;;  %v71_v61 = vld [vmem:[%s910_s1 + $0x188] sm:$0xff]  ;;  %v70_v63 = vld [vmem:[%s910_s1 + $0x180] sm:$0xff]  ;;  %v247_v4 = vld [vmem:[%s911_s2 + $0x50] sm:$0xff] }
  0x1e   :  { %471 = vmatpush3.msra.mxu0 %v24_v50  ;;  %193 = vmatpush1.msra.mxu1 %v56_v51  ;;  %v89_v60 = vcombine.high %v87_v53, %v87_v53  ;;  %v250_v0 = vld [vmem:[%s911_s2 + $0x68] sm:$0xff]  ;;  %v249_v1 = vld [vmem:[%s911_s2 + $0x60] sm:$0xff]  ;;  %v244_v7 = vld [vmem:[%s911_s2 + $0x38] sm:$0xff]  ;;  %p577_p3 = por %p576_p2, %p575_p1 }
  0x1f   :  { %472 = vmatprep.subr.mxu0 %v39_v52  ;;  %194 = vmatprep.subr.mxu1 %v592_v3  ;;  %v246_v5 = vld [vmem:[%s911_s2 + $0x48] sm:$0xff]  ;;  %v245_v6 = vld [vmem:[%s911_s2 + $0x40] sm:$0xff]  ;;  %v243_v8 = vld [vmem:[%s911_s2 + $0x30] sm:$0xff] }
  0x20   :  { %473 = vmatpush3.msra.mxu0 %v23_v54  ;;  %195 = vmatpush1.msra.mxu1 %v55_v55  ;;  %v242_v9 = vld [vmem:[%s911_s2 + $0x28] sm:$0xff]  ;;  %v241_v10 = vld [vmem:[%s911_s2 + $0x20] sm:$0xff]  ;;  %v240_v11 = vld [vmem:[%s911_s2 + $0x18] sm:$0xff]  ;;  %p578_p4 = pnand %p577_p3, %p571_p0 }
  0x21   :  { %474 = vmatprep.subr.mxu0 %v38_v56  ;;  %196 = vmatprep.subr.mxu1 %v592_v3  ;;  %v239_v12 = vld [vmem:[%s911_s2 + $0x10] sm:$0xff]  ;;  %v238_v13 = vld [vmem:[%s911_s2 + $0x8] sm:$0xff]  ;;  %v237_v14 = vld [vmem:[%s911_s2] sm:$0xff] }
  0x22   :  { %475 = vmatpush3.msra.mxu0 %v22_v58  ;;  %160 = vmatprep.mubr.f32.mxu0 %v88_v57  ;;  %v337_v15 = vld [vmem:[%s912_s3 + $0x50] sm:$0xf]  ;;  %v336_v16 = vld [vmem:[%s912_s3 + $0x48] sm:$0xff]  ;;  %v335_v17 = vld [vmem:[%s912_s3 + $0x40] sm:$0xff] }
  0x23   :  { %197 = vmatpush1.msra.mxu1 %v54_v59  ;;  %161 = vmatmul.mubr.f32.vlgmr.msra.gmra.mxu0 %v80_v49  ;;  %v334_v18 = vld [vmem:[%s912_s3 + $0x38] sm:$0xff]  ;;  %v333_v19 = vld [vmem:[%s912_s3 + $0x30] sm:$0xff]  ;;  %v332_v20 = vld [vmem:[%s912_s3 + $0x28] sm:$0xff] }
  0x24   :  { %226 = vmatprep.subr.mxu1 %v592_v3  ;;  %439 = vmatprep.mubr.msk.f32.mxu1 %vm93_vm0, %v89_v60  ;;  %v331_v21 = vld [vmem:[%s912_s3 + $0x20] sm:$0xff]  ;;  %v330_v22 = vld [vmem:[%s912_s3 + $0x18] sm:$0xff]  ;;  %v329_v23 = vld [vmem:[%s912_s3 + $0x10] sm:$0xff] }
  0x25   :  { %227 = vmatpush2.msra.mxu1 %v71_v61  ;;  %507 = vmatprep.subr.mxu0 %v592_v3  ;;  %v328_v31 = vld [vmem:[%s912_s3 + $0x8] sm:$0xff]  ;;  %v327_v32 = vld [vmem:[%s912_s3] sm:$0xff] }
  0x26   :  { %228 = vmatprep.subr.mxu1 %v592_v3  ;;  %508 = vmatpush3.msra.mxu0 %v251_v62  ;;  %v441_v36 = vld [vmem:[%s913_s4] ss:$0 sm:$0xff] }
  0x27   :  { %229 = vmatpush2.msra.mxu1 %v70_v63  ;;  %509 = vmatprep.subr.mxu0 %v592_v3 }
  0x28   :  { %231 = vmatmul.mubr.f32.vlgmr.msra.gmra.mxu1 %v87_v53  ;;  %510 = vmatpush3.msra.mxu0 %v250_v0 }
  0x29   :  { %511 = vmatprep.subr.mxu0 %v592_v3  ;;  %540 = vmatprep.subr.mxu1 %v592_v3 }
  0x2a   :  { %512 = vmatpush3.msra.mxu0 %v249_v1  ;;  %537 = vmatprep.mubr.msk.f32.mxu0 %vm594_vm1, %v592_v3 }
  0x2b   :  { %513 = vmatprep.subr.mxu0 %v592_v3  ;;  %562 = vmatprep.mubr.msk.f32.mxu1 %vm594_vm1, %v592_v3 }
  0x2c   :  { %514 = vmatpush3.msra.mxu0 %v248_v2  ;;  %541 = vmatpush3.msk.msra.mxu1 %vm349_vm2, %v337_v15 }
  0x2d   :  { %515 = vmatprep.subr.mxu0 %v592_v3  ;;  %542 = vmatprep.subr.mxu1 %v592_v3 }
  0x2e   :  { %516 = vmatpush3.msra.mxu0 %v247_v4  ;;  %543 = vmatpush3.msra.mxu1 %v336_v16 }
  0x2f   :  { %517 = vmatprep.subr.mxu0 %v592_v3  ;;  %544 = vmatprep.subr.mxu1 %v592_v3 }
  0x30   :  { %518 = vmatpush3.msra.mxu0 %v246_v5  ;;  %545 = vmatpush3.msra.mxu1 %v335_v17 }
  0x31   :  { %519 = vmatprep.subr.mxu0 %v592_v3  ;;  %546 = vmatprep.subr.mxu1 %v592_v3 }
  0x32   :  { %520 = vmatpush3.msra.mxu0 %v245_v6  ;;  %547 = vmatpush3.msra.mxu1 %v334_v18 }
  0x33   :  { %521 = vmatprep.subr.mxu0 %v592_v3  ;;  %548 = vmatprep.subr.mxu1 %v592_v3 }
  0x34   :  { %522 = vmatpush3.msra.mxu0 %v244_v7  ;;  %549 = vmatpush3.msra.mxu1 %v333_v19 }
  0x35   :  { %523 = vmatprep.subr.mxu0 %v592_v3  ;;  %550 = vmatprep.subr.mxu1 %v592_v3 }
  0x36   :  { %524 = vmatpush3.msra.mxu0 %v243_v8  ;;  %551 = vmatpush3.msra.mxu1 %v332_v20 }
  0x37   :  { %525 = vmatprep.subr.mxu0 %v592_v3  ;;  %552 = vmatprep.subr.mxu1 %v592_v3 }
  0x38   :  { %526 = vmatpush3.msra.mxu0 %v242_v9  ;;  %553 = vmatpush3.msra.mxu1 %v331_v21 }
  0x39   :  { %527 = vmatprep.subr.mxu0 %v592_v3  ;;  %554 = vmatprep.subr.mxu1 %v592_v3 }
  0x3a   :  { %528 = vmatpush3.msra.mxu0 %v241_v10  ;;  %555 = vmatpush3.msra.mxu1 %v330_v22 }
  0x3b   :  { %529 = vmatprep.subr.mxu0 %v592_v3  ;;  %556 = vmatprep.subr.mxu1 %v592_v3 }
  0x3c   :  { %530 = vmatpush3.msra.mxu0 %v240_v11  ;;  %557 = vmatpush3.msra.mxu1 %v329_v23 }
  0x3d   :  { %531 = vmatprep.subr.mxu0 %v592_v3  ;;  %558 = vmatprep.subr.mxu1 %v592_v3 }
  0x3e   :  { %532 = vmatpush3.msra.mxu0 %v239_v12  ;;  %559 = vmatpush3.msra.mxu1 %v328_v31 }
  0x3f   :  { %533 = vmatprep.subr.mxu0 %v592_v3  ;;  %560 = vmatprep.subr.mxu1 %v592_v3 }
  0x40   :  { %534 = vmatpush3.msra.mxu0 %v238_v13  ;;  %561 = vmatpush3.msra.mxu1 %v327_v32 }
  0x41   :  { %535 = vmatprep.subr.mxu0 %v592_v3 }
  0x42   :  { %536 = vmatpush3.msra.mxu0 %v237_v14 }
  0xe3   :  { %v476_v24 = vpop.f32.mrf.mxu0 }
  0xe5   :  { %v477_v25 = vpop.f32.mrf.mxu0 }
  0xe6   :  { %v478_v26 = vadd.f32 %v477_v25, %v476_v24 }
  0xe8   :  { %v232_v27 = vpop.f32.mrf.mxu1 }
  0xe9   :  { %v233_v28 = vadd.f32 %v478_v26, %v232_v27 }
  0xea   :  { %v234_v29 = vpop.f32.mrf.mxu1 }
  0xeb   :  { %v236_v30 = vmax.f32 %v233_v28, 0.0 }
  0xed   :  { %538 = vmatmul.mubr.msk.f32.vlgmr.msra.gmra.mxu0 %vm252_vm3, %v236_v30 }
 0x1ad   :  { %v322_v33 = vpop.f32.mrf.mxu0 }
 0x1ae   :  { %v326_v34 = vmax.f32 %v322_v33, 0.0 }
 0x1af   :  { %v539_v35 = vpop.f32.mrf.mxu0 }
 0x1b0   :  { %563 = vmatmul.mubr.msk.f32.vlgmr.msra.gmra.mxu1 %vm345_vm4, %v326_v34 }
 0x270   :  { %v419_v37 = vpop.f32.mrf.mxu1 }
 0x271   :  { %v420_v38 = vadd.f32 %v441_v36, %v419_v37 }
 0x272   :  { %v564_v3 = vpop.f32.mrf.mxu1 }
 0x273   :  { %424 = vst.msk [vmem:[#allocation2] sm:$0x3] %vm423_vm5, %v420_v38 }
 0x274   :  { %581 = shalt.err (!%p578_p4)
}
 0x275   :  { %434 = dma.vmem_to_hbm [thread:$0]  %s432_s19, 32, %s914_s5, [#allocation3]  }
 0x276   :  { %590 = dma.done.wait [#allocation3], 32  }
 0x277   :  { %591 = vsyncadd [#allocation3], 4294967264 }
 0x278   :  { %438 = vsyncpa [#allocation3], 1 }

</bundles_post_ra>
